<compile_context>
chip_gen: v7x
topology: tpu7x:2x2x1
jax: 0.10.0
libtpu: 0.0.40
codegen_flags: <defaults>
</compile_context>

<pallas_src>
import functools

import jax
import jax.numpy as jnp
from jax.experimental import pallas as pl
from jax.experimental.pallas import tpu as pltpu

N_MFCC = 30      # module default input_height = N_MFCC*3 + 1 + 7 + 1 + 12 (unused in demo)
LANE = 128


# ----------------------------------------------------------------------------
# helpers
# ----------------------------------------------------------------------------
def _conv_row_tile(h, out_w, cout, budget_bytes=32 * 1024):
    # Largest even divisor of h whose f32 conv accumulator (tile_h, 2*out_w, cout)
    # stays under `budget_bytes` (keeps the accumulator to a handful of vregs so
    # stage 1 -- pure VPU work for cin==1 -- does not spill).
    assert h % 2 == 0, h
    best = 2
    t = 2
    while t <= h:
        if h % t == 0 and t * (2 * out_w) * cout * 4 <= budget_bytes:
            best = t
        t += 2
    return best


def _row_tile(m, cap=256):
    if m <= cap:
        return m
    for t in range(cap - cap % 8, 7, -8):
        if m % t == 0:
            return t
    return m


# ----------------------------------------------------------------------------
# Fused Conv3x3 + BN + ReLU + MaxPool2d(2) kernel
# ----------------------------------------------------------------------------
def _conv_bn_relu_pool_kernel(x_ref, w_ref, scale_ref, shift_ref, o_ref, pool_scr,
                              *, tile_h, out_w):
    # x_ref    : (1, Hp, Wp, Cin)   padded input image (bf16), resident per batch item
    # w_ref    : (3, 3, Cin, Cout)  bf16 taps
    # scale/shift : (1, Cout)       folded BatchNorm (f32)
    # o_ref    : (1, tile_h//2, out_w, Cout) pooled output (bf16)
    # pool_scr : (tile_h//2, 2*out_w, Cout)  f32 scratch for the column pool
    r = pl.program_id(1)
    row0 = r * tile_h
    w_full = 2 * out_w
    cin = x_ref.shape[3]
    cout = o_ref.shape[3]
    th2 = tile_h // 2

    acc = jnp.zeros((th2, 2, w_full, cout), jnp.float32)
    for dh in range(3):
        for dw in range(3):
            xt = x_ref[0, pl.ds(row0 + dh, tile_h), pl.ds(dw, w_full), :]
            xt = xt.reshape(th2, 2, w_full, cin)        # major-dim split (free)
            wt = w_ref[dh, dw]                          # (cin, cout)
            if cin == 1:
                # rank-1 tap: broadcast multiply on the VPU instead of a K=1 matmul
                acc = acc + xt.astype(jnp.float32) * wt.astype(jnp.float32)
            else:
                acc = acc + jax.lax.dot_general(
                    xt, wt, (((3,), (0,)), ((), ())),
                    preferred_element_type=jnp.float32)

    y = acc * scale_ref[...] + shift_ref[...]           # fused conv-bias + BatchNorm
    y = jnp.maximum(y, 0.0)                             # ReLU
    # TODO(synk): the column pool still round-trips through a small f32 VMEM scratch
    #             (proven-lowering stride-2 ref reads); it is 4x smaller than v2
    #             thanks to the budgeted row tile.
    pool_scr[...] = jnp.max(y, axis=1)                  # pool over row pairs
    pooled = jnp.maximum(                                # pool over column pairs
        pool_scr[:, pl.ds(0, out_w, stride=2), :],
        pool_scr[:, pl.ds(1, out_w, stride=2), :],
    )
    o_ref[0] = pooled.astype(o_ref.dtype)


def conv_bn_relu_pool(x, w, scale, shift):
    # x: (B, H, W, Cin) bf16 ; returns (B, H//2, W//2, Cout) bf16
    B, H, W, Cin = x.shape
    Cout = w.shape[-1]
    assert H % 2 == 0 and W % 2 == 0, (H, W)
    xp = jnp.pad(x, ((0, 0), (1, 1), (1, 1), (0, 0)))
    Hp, Wp = H + 2, W + 2
    Ho, Wo = H // 2, W // 2
    th = _conv_row_tile(H, Wo, Cout)
    kernel = functools.partial(_conv_bn_relu_pool_kernel, tile_h=th, out_w=Wo)
    return pl.pallas_call(
        kernel,
        out_shape=jax.ShapeDtypeStruct((B, Ho, Wo, Cout), jnp.bfloat16),
        grid=(B, H // th),
        in_specs=[
            pl.BlockSpec((1, Hp, Wp, Cin), lambda b, r: (b, 0, 0, 0)),
            pl.BlockSpec((3, 3, Cin, Cout), lambda b, r: (0, 0, 0, 0)),
            pl.BlockSpec((1, Cout), lambda b, r: (0, 0)),
            pl.BlockSpec((1, Cout), lambda b, r: (0, 0)),
        ],
        out_specs=pl.BlockSpec((1, th // 2, Wo, Cout), lambda b, r: (b, r, 0, 0)),
        scratch_shapes=[pltpu.VMEM((th // 2, 2 * Wo, Cout), jnp.float32)],
        compiler_params=pltpu.CompilerParams(
            dimension_semantics=("parallel", "parallel")),
    )(xp, w, scale, shift)


# ----------------------------------------------------------------------------
# LSTM input projection:  per direction d,  sum_c x_c @ W_ih[c,d] + bias[d]
# Output is dir-major (2, M, 4H) -> lane-dense stores, no per-step stack later.
# ----------------------------------------------------------------------------
def _proj_kernel(x_ref, w_ref, b_ref, o_ref):
    # x_ref: (n_chunks, tile_m, Kc) bf16 ; w_ref: (n_chunks, 2, Kc, 4H) bf16
    # b_ref: (2, 1, 4H) f32              ; o_ref: (2, tile_m, 4H) f32
    nch, tm, _ = x_ref.shape
    n4 = w_ref.shape[3]
    for d in range(2):
        acc = jnp.zeros((tm, n4), jnp.float32)
        for ci in range(nch):
            acc = acc + jnp.dot(x_ref[ci], w_ref[ci, d],
                                preferred_element_type=jnp.float32)
        o_ref[d] = acc + b_ref[d]


def lstm_input_proj(x_chunks, w, b):
    # x_chunks: (nch, M, Kc) bf16 ; w: (nch, 2, Kc, 4H) bf16 ; b: (2,1,4H) f32
    nch, M, kc = x_chunks.shape
    n4 = w.shape[-1]
    tm = _row_tile(M)
    return pl.pallas_call(
        _proj_kernel,
        out_shape=jax.ShapeDtypeStruct((2, M, n4), jnp.float32),
        grid=(M // tm,),
        in_specs=[
            pl.BlockSpec((nch, tm, kc), lambda m: (0, m, 0)),
            pl.BlockSpec((nch, 2, kc, n4), lambda m: (0, 0, 0, 0)),
            pl.BlockSpec((2, 1, n4), lambda m: (0, 0, 0)),
        ],
        out_specs=pl.BlockSpec((2, tm, n4), lambda m: (0, m, 0)),
        compiler_params=pltpu.CompilerParams(dimension_semantics=("parallel",)),
    )(x_chunks, w, b)


# ----------------------------------------------------------------------------
# Bidirectional LSTM recurrence: grid=(2,) over direction ("parallel" -> one
# TensorCore per direction on v7x).  Temporal mean fused; hidden sequence is
# buffered in VMEM and flushed once as bf16; skipped entirely for the last layer.
# ----------------------------------------------------------------------------
def _bilstm_dir_kernel(xp_ref, whh_ref, *out_refs, hidden, write_seq):
    # xp_ref  : (1, B, T, 4H) f32  pre-projected gates for THIS direction
    # whh_ref : (1, H, 4H)    bf16 recurrent weights for THIS direction
    # if write_seq: out_refs = (hseq_ref (1,B,T,H) bf16, hmean_ref (1,B,H) f32,
    #                           hbuf (B,T,H) f32 VMEM scratch)
    # else        : out_refs = (hmean_ref (1,B,H) f32,)
    B = xp_ref.shape[1]
    T = xp_ref.shape[2]
    H = hidden
    if write_seq:
        hseq_ref, hmean_ref, hbuf = out_refs
    else:
        (hmean_ref,) = out_refs

    d = pl.program_id(0)
    whh = whh_ref[0]                                     # (H, 4H) bf16
    h = jnp.zeros((B, H), jnp.float32)
    c = jnp.zeros((B, H), jnp.float32)
    s = jnp.zeros((B, H), jnp.float32)

    # TODO(synk): switch to lax.fori_loop with dynamic time indexing once T is
    #             realistic (>~16); static unroll kept for the demo T=4.
    for t in range(T):
        t_idx = t + d * (T - 1 - 2 * t)                  # fwd: t ; bwd: T-1-t
        gx = xp_ref[0, :, t_idx, :]                      # (B, 4H)
        gates = gx + jnp.dot(h.astype(whh.dtype), whh,
                             preferred_element_type=jnp.float32)
        # PyTorch gate order: i, f, g, o
        # TODO(synk): 32-lane sub-vreg slices with hidden=32; lane-aligned at 128.
        i_g = jax.nn.sigmoid(gates[:, 0 * H:1 * H])
        f_g = jax.nn.sigmoid(gates[:, 1 * H:2 * H])
        g_g = jnp.tanh(gates[:, 2 * H:3 * H])
        o_g = jax.nn.sigmoid(gates[:, 3 * H:4 * H])
        c = f_g * c + i_g * g_g
        h = o_g * jnp.tanh(c)
        s = s + h
        if write_seq:
            hbuf[:, t_idx, :] = h                        # VMEM scratch, f32

    if write_seq:
        hseq_ref[0] = hbuf[...].astype(hseq_ref.dtype)   # single bulk bf16 flush
    hmean_ref[0] = s * (1.0 / T)


def bilstm_layer(xp, w_hh, hidden, *, return_sequence):
    # xp: (2, B, T, 4H) f32 dir-major pre-projected gates ; w_hh: (2, H, 4H) bf16
    _, B, T, G = xp.shape
    H = hidden
    assert G == 4 * H, (G, H)
    kernel = functools.partial(_bilstm_dir_kernel, hidden=H,
                               write_seq=return_sequence)
    in_specs = [
        pl.BlockSpec((1, B, T, G), lambda d: (d, 0, 0, 0)),
        pl.BlockSpec((1, H, 4 * H), lambda d: (d, 0, 0)),
    ]
    hmean_shape = jax.ShapeDtypeStruct((2, B, H), jnp.float32)
    hmean_spec = pl.BlockSpec((1, B, H), lambda d: (d, 0, 0))
    cparams = pltpu.CompilerParams(
        dimension_semantics=("parallel",),          # v7x: one TC per direction
        vmem_limit_bytes=32 * 1024 * 1024)          # explicit budget (v7x: 64 MiB phys)
    if return_sequence:
        out_shape = (jax.ShapeDtypeStruct((2, B, T, H), jnp.bfloat16), hmean_shape)
        out_specs = (pl.BlockSpec((1, B, T, H), lambda d: (d, 0, 0, 0)), hmean_spec)
        scratch = [pltpu.VMEM((B, T, H), jnp.float32)]
    else:
        out_shape = hmean_shape
        out_specs = hmean_spec
        scratch = []
    return pl.pallas_call(
        kernel,
        out_shape=out_shape,
        grid=(2,),
        in_specs=in_specs,
        out_specs=out_specs,
        scratch_shapes=scratch,
        compiler_params=cparams,
    )(xp, w_hh)


# ----------------------------------------------------------------------------
# Full forward pass
# ----------------------------------------------------------------------------
def cnn_lstm_forward(x, params, hidden):
    # x: (B, H, W) f32  ->  (B, 2*hidden) f32   (PyTorch forward has no FC head)
    h = x[..., None].astype(jnp.bfloat16)                     # NHWC, C=1
    for w, scale, shift in params["conv"]:
        h = conv_bn_relu_pool(h, w, scale, shift)             # Dropout(0.3): identity
    B, Hc, Wc, C = h.shape
    T = Wc
    # torch: NCHW.permute(0,3,1,2).reshape(B, W, C*H) -> feature index c*Hc + i
    # TODO(synk): emit the last conv stage directly in (B, W, C*H) layout to drop
    #             this XLA relayout (small at demo size).
    seq = jnp.transpose(h, (0, 2, 3, 1)).reshape(B, T, C * Hc)
    x_chunks = seq.reshape(1, B * T, C * Hc)                  # bf16
    n_layers = len(params["lstm"])
    hmean = None
    for li, (w_ih, bias, w_hh) in enumerate(params["lstm"]):
        xp = lstm_input_proj(x_chunks, w_ih, bias)            # (2, B*T, 4H) f32
        xp = xp.reshape(2, B, T, 4 * hidden)                  # dir-major (free split)
        if li == n_layers - 1:
            hmean = bilstm_layer(xp, w_hh, hidden, return_sequence=False)
        else:
            hseq, hmean = bilstm_layer(xp, w_hh, hidden, return_sequence=True)
            x_chunks = hseq.reshape(2, B * T, hidden)         # bf16; inter-layer Dropout: identity
    # concat [fwd, bwd] per batch row
    return jnp.transpose(hmean, (1, 0, 2)).reshape(B, 2 * hidden)


# ----------------------------------------------------------------------------
# Deterministic synthetic parameters (folded / padded into kernel-ready form)
# ----------------------------------------------------------------------------
def init_params(key, input_height, hidden):
    keys = iter(jax.random.split(key, 64))
    eps = 1e-5
    conv_layers = []
    cin_real, cin_pad = 1, 1
    for cout_real in (32, 64, 128):
        cout_pad = max(LANE, cout_real)
        w = jax.random.normal(next(keys), (cout_real, cin_real, 3, 3), jnp.float32)
        w = w * (1.0 / float(cin_real * 9) ** 0.5)
        b = 0.05 * jax.random.normal(next(keys), (cout_real,), jnp.float32)
        gamma = 1.0 + 0.1 * jax.random.normal(next(keys), (cout_real,), jnp.float32)
        beta = 0.1 * jax.random.normal(next(keys), (cout_real,), jnp.float32)
        rmean = 0.1 * jax.random.normal(next(keys), (cout_real,), jnp.float32)
        rvar = jax.random.uniform(next(keys), (cout_real,), jnp.float32, 0.5, 1.5)
        scale = gamma / jnp.sqrt(rvar + eps)
        shift = (b - rmean) * scale + beta
        w_k = jnp.transpose(w, (2, 3, 1, 0))                  # (3,3,cin,cout)
        w_k = jnp.pad(w_k, ((0, 0), (0, 0),
                            (0, cin_pad - cin_real),
                            (0, cout_pad - cout_real))).astype(jnp.bfloat16)
        scale = jnp.pad(scale, (0, cout_pad - cout_real)).reshape(1, cout_pad)
        shift = jnp.pad(shift, (0, cout_pad - cout_real)).reshape(1, cout_pad)
        conv_layers.append((w_k, scale, shift))
        cin_real, cin_pad = cout_real, cout_pad

    lstm_in = 128 * (input_height // 8)                       # c*h after the CNN stack
    s = float(hidden) ** -0.5
    lstm_layers = []
    for n_chunks, k_chunk in ((1, lstm_in), (2, hidden)):
        per_dir = []
        in_size = n_chunks * k_chunk
        for _d in range(2):
            w_ih = jax.random.uniform(next(keys), (4 * hidden, in_size), jnp.float32, -s, s)
            w_hh = jax.random.uniform(next(keys), (4 * hidden, hidden), jnp.float32, -s, s)
            b_ih = jax.random.uniform(next(keys), (4 * hidden,), jnp.float32, -s, s)
            b_hh = jax.random.uniform(next(keys), (4 * hidden,), jnp.float32, -s, s)
            per_dir.append((w_ih, w_hh, b_ih + b_hh))
        chunks = []
        for c in range(n_chunks):                              # chunk c = input dir c (layer 2)
            dirs = [per_dir[d][0][:, c * k_chunk:(c + 1) * k_chunk].T for d in range(2)]
            chunks.append(jnp.stack(dirs, axis=0))             # (2, Kc, 4H)
        w_ih_all = jnp.stack(chunks, axis=0).astype(jnp.bfloat16)   # (nch, 2, Kc, 4H)
        bias = jnp.stack([per_dir[0][2], per_dir[1][2]], axis=0).reshape(2, 1, 4 * hidden)
        whh = jnp.stack([per_dir[0][1].T, per_dir[1][1].T], axis=0).astype(jnp.bfloat16)
        lstm_layers.append((w_ih_all, bias, whh))

    return {"conv": conv_layers, "lstm": lstm_layers}


# ----------------------------------------------------------------------------
if __name__ == "__main__":
    BATCH = 2
    INPUT_HEIGHT = 16   # divisible by 8 (three MaxPool2d(2))
    INPUT_WIDTH = 32    # seq length after CNN = 32 // 8 = 4
    HIDDEN = 32

    key = jax.random.PRNGKey(0)
    k_x, k_p = jax.random.split(key)
    x = jax.random.normal(k_x, (BATCH, INPUT_HEIGHT, INPUT_WIDTH), jnp.float32)
    params = init_params(k_p, INPUT_HEIGHT, HIDDEN)

    fwd = jax.jit(functools.partial(cnn_lstm_forward, hidden=HIDDEN))
    out = fwd(x, params)
    out = jax.block_until_ready(out)

    assert out.shape == (BATCH, 2 * HIDDEN), out.shape
    assert bool(jnp.all(jnp.isfinite(out)))
    print("KERNEL_OK")
</pallas_src>

<mosaic_0001>
module attributes {stable_mosaic.version = 11 : i64} {
  func.func @_conv_bn_relu_pool_kernel(%arg0: i32, %arg1: i32, %arg2: memref<1x18x34x1xbf16, #tpu.memory_space<vmem>>, %arg3: memref<3x3x1x128xbf16, #tpu.memory_space<vmem>>, %arg4: memref<1x128xf32, #tpu.memory_space<vmem>>, %arg5: memref<1x128xf32, #tpu.memory_space<vmem>>, %arg6: memref<1x1x16x128xbf16, #tpu.memory_space<vmem>>, %arg7: memref<1x32x128xf32, #tpu.memory_space<vmem>>) attributes {dimension_semantics = [#tpu.dimension_semantics<parallel>, #tpu.dimension_semantics<parallel>], iteration_bounds = array<i64: 2, 8>, scalar_prefetch = 0 : i64, scratch_operands = 1 : i64, tpu.core_type = #tpu.core_type<tc>, window_params = [{transform_indices = @transform_0, window_bounds = array<i64: 1, 18, 34, 1>}, {pipeline_mode = #tpu.pipeline_mode<synchronous>, transform_indices = @transform_1, window_bounds = array<i64: 3, 3, 1, 128>}, {pipeline_mode = #tpu.pipeline_mode<synchronous>, transform_indices = @transform_2, window_bounds = array<i64: 1, 128>}, {pipeline_mode = #tpu.pipeline_mode<synchronous>, transform_indices = @transform_3, window_bounds = array<i64: 1, 128>}, {transform_indices = @transform_4, window_bounds = array<i64: 1, 1, 16, 128>}]} {
    %c2_i32 = arith.constant 2 : i32
    %0 = arith.muli %arg1, %c2_i32 : i32
    %cst = arith.constant 0.000000e+00 : f32
    %1 = vector.broadcast %cst : f32 to vector<1x2x32x128xf32>
    %c0_i32 = arith.constant 0 : i32
    %2 = arith.addi %0, %c0_i32 : i32
    %c0 = arith.constant 0 : index
    %3 = arith.index_cast %2 : i32 to index
    %c0_0 = arith.constant 0 : index
    %c0_1 = arith.constant 0 : index
    %4 = vector.load %arg2[%c0, %3, %c0_0, %c0_1] : memref<1x18x34x1xbf16, #tpu.memory_space<vmem>>, vector<1x2x32x1xbf16>
    %5 = vector.shape_cast %4 : vector<1x2x32x1xbf16> to vector<2x32x1xbf16>
    %6 = vector.shape_cast %5 : vector<2x32x1xbf16> to vector<1x2x32x1xbf16>
    %c0_2 = arith.constant 0 : index
    %c0_3 = arith.constant 0 : index
    %c0_4 = arith.constant 0 : index
    %c0_5 = arith.constant 0 : index
    %7 = vector.load %arg3[%c0_2, %c0_3, %c0_4, %c0_5] : memref<3x3x1x128xbf16, #tpu.memory_space<vmem>>, vector<1x1x1x128xbf16>
    %8 = vector.shape_cast %7 : vector<1x1x1x128xbf16> to vector<1x128xbf16>
    %9 = arith.extf %6 : vector<1x2x32x1xbf16> to vector<1x2x32x1xf32>
    %10 = arith.extf %8 : vector<1x128xbf16> to vector<1x128xf32>
    %11 = vector.shape_cast %10 : vector<1x128xf32> to vector<1x1x1x128xf32>
    %12 = vector.broadcast %9 : vector<1x2x32x1xf32> to vector<1x2x32x128xf32>
    %13 = vector.broadcast %11 : vector<1x1x1x128xf32> to vector<1x2x32x128xf32>
    %14 = arith.mulf %12, %13 : vector<1x2x32x128xf32>
    %15 = arith.addf %1, %14 : vector<1x2x32x128xf32>
    %c0_i32_6 = arith.constant 0 : i32
    %16 = arith.addi %0, %c0_i32_6 : i32
    %c0_7 = arith.constant 0 : index
    %17 = arith.index_cast %16 : i32 to index
    %c1 = arith.constant 1 : index
    %c0_8 = arith.constant 0 : index
    %18 = vector.load %arg2[%c0_7, %17, %c1, %c0_8] : memref<1x18x34x1xbf16, #tpu.memory_space<vmem>>, vector<1x2x32x1xbf16>
    %19 = vector.shape_cast %18 : vector<1x2x32x1xbf16> to vector<2x32x1xbf16>
    %20 = vector.shape_cast %19 : vector<2x32x1xbf16> to vector<1x2x32x1xbf16>
    %c0_9 = arith.constant 0 : index
    %c1_10 = arith.constant 1 : index
    %c0_11 = arith.constant 0 : index
    %c0_12 = arith.constant 0 : index
    %21 = vector.load %arg3[%c0_9, %c1_10, %c0_11, %c0_12] : memref<3x3x1x128xbf16, #tpu.memory_space<vmem>>, vector<1x1x1x128xbf16>
    %22 = vector.shape_cast %21 : vector<1x1x1x128xbf16> to vector<1x128xbf16>
    %23 = arith.extf %20 : vector<1x2x32x1xbf16> to vector<1x2x32x1xf32>
    %24 = arith.extf %22 : vector<1x128xbf16> to vector<1x128xf32>
    %25 = vector.shape_cast %24 : vector<1x128xf32> to vector<1x1x1x128xf32>
    %26 = vector.broadcast %23 : vector<1x2x32x1xf32> to vector<1x2x32x128xf32>
    %27 = vector.broadcast %25 : vector<1x1x1x128xf32> to vector<1x2x32x128xf32>
    %28 = arith.mulf %26, %27 : vector<1x2x32x128xf32>
    %29 = arith.addf %15, %28 : vector<1x2x32x128xf32>
    %c0_i32_13 = arith.constant 0 : i32
    %30 = arith.addi %0, %c0_i32_13 : i32
    %c0_14 = arith.constant 0 : index
    %31 = arith.index_cast %30 : i32 to index
    %c2 = arith.constant 2 : index
    %c0_15 = arith.constant 0 : index
    %32 = vector.load %arg2[%c0_14, %31, %c2, %c0_15] : memref<1x18x34x1xbf16, #tpu.memory_space<vmem>>, vector<1x2x32x1xbf16>
    %33 = vector.shape_cast %32 : vector<1x2x32x1xbf16> to vector<2x32x1xbf16>
    %34 = vector.shape_cast %33 : vector<2x32x1xbf16> to vector<1x2x32x1xbf16>
    %c0_16 = arith.constant 0 : index
    %c2_17 = arith.constant 2 : index
    %c0_18 = arith.constant 0 : index
    %c0_19 = arith.constant 0 : index
    %35 = vector.load %arg3[%c0_16, %c2_17, %c0_18, %c0_19] : memref<3x3x1x128xbf16, #tpu.memory_space<vmem>>, vector<1x1x1x128xbf16>
    %36 = vector.shape_cast %35 : vector<1x1x1x128xbf16> to vector<1x128xbf16>
    %37 = arith.extf %34 : vector<1x2x32x1xbf16> to vector<1x2x32x1xf32>
    %38 = arith.extf %36 : vector<1x128xbf16> to vector<1x128xf32>
    %39 = vector.shape_cast %38 : vector<1x128xf32> to vector<1x1x1x128xf32>
    %40 = vector.broadcast %37 : vector<1x2x32x1xf32> to vector<1x2x32x128xf32>
    %41 = vector.broadcast %39 : vector<1x1x1x128xf32> to vector<1x2x32x128xf32>
    %42 = arith.mulf %40, %41 : vector<1x2x32x128xf32>
    %43 = arith.addf %29, %42 : vector<1x2x32x128xf32>
    %c1_i32 = arith.constant 1 : i32
    %44 = arith.addi %0, %c1_i32 : i32
    %c0_20 = arith.constant 0 : index
    %45 = arith.index_cast %44 : i32 to index
    %c0_21 = arith.constant 0 : index
    %c0_22 = arith.constant 0 : index
    %46 = vector.load %arg2[%c0_20, %45, %c0_21, %c0_22] : memref<1x18x34x1xbf16, #tpu.memory_space<vmem>>, vector<1x2x32x1xbf16>
    %47 = vector.shape_cast %46 : vector<1x2x32x1xbf16> to vector<2x32x1xbf16>
    %48 = vector.shape_cast %47 : vector<2x32x1xbf16> to vector<1x2x32x1xbf16>
    %c1_23 = arith.constant 1 : index
    %c0_24 = arith.constant 0 : index
    %c0_25 = arith.constant 0 : index
    %c0_26 = arith.constant 0 : index
    %49 = vector.load %arg3[%c1_23, %c0_24, %c0_25, %c0_26] : memref<3x3x1x128xbf16, #tpu.memory_space<vmem>>, vector<1x1x1x128xbf16>
    %50 = vector.shape_cast %49 : vector<1x1x1x128xbf16> to vector<1x128xbf16>
    %51 = arith.extf %48 : vector<1x2x32x1xbf16> to vector<1x2x32x1xf32>
    %52 = arith.extf %50 : vector<1x128xbf16> to vector<1x128xf32>
    %53 = vector.shape_cast %52 : vector<1x128xf32> to vector<1x1x1x128xf32>
    %54 = vector.broadcast %51 : vector<1x2x32x1xf32> to vector<1x2x32x128xf32>
    %55 = vector.broadcast %53 : vector<1x1x1x128xf32> to vector<1x2x32x128xf32>
    %56 = arith.mulf %54, %55 : vector<1x2x32x128xf32>
    %57 = arith.addf %43, %56 : vector<1x2x32x128xf32>
    %c1_i32_27 = arith.constant 1 : i32
    %58 = arith.addi %0, %c1_i32_27 : i32
    %c0_28 = arith.constant 0 : index
    %59 = arith.index_cast %58 : i32 to index
    %c1_29 = arith.constant 1 : index
    %c0_30 = arith.constant 0 : index
    %60 = vector.load %arg2[%c0_28, %59, %c1_29, %c0_30] : memref<1x18x34x1xbf16, #tpu.memory_space<vmem>>, vector<1x2x32x1xbf16>
    %61 = vector.shape_cast %60 : vector<1x2x32x1xbf16> to vector<2x32x1xbf16>
    %62 = vector.shape_cast %61 : vector<2x32x1xbf16> to vector<1x2x32x1xbf16>
    %c1_31 = arith.constant 1 : index
    %c1_32 = arith.constant 1 : index
    %c0_33 = arith.constant 0 : index
    %c0_34 = arith.constant 0 : index
    %63 = vector.load %arg3[%c1_31, %c1_32, %c0_33, %c0_34] : memref<3x3x1x128xbf16, #tpu.memory_space<vmem>>, vector<1x1x1x128xbf16>
    %64 = vector.shape_cast %63 : vector<1x1x1x128xbf16> to vector<1x128xbf16>
    %65 = arith.extf %62 : vector<1x2x32x1xbf16> to vector<1x2x32x1xf32>
    %66 = arith.extf %64 : vector<1x128xbf16> to vector<1x128xf32>
    %67 = vector.shape_cast %66 : vector<1x128xf32> to vector<1x1x1x128xf32>
    %68 = vector.broadcast %65 : vector<1x2x32x1xf32> to vector<1x2x32x128xf32>
    %69 = vector.broadcast %67 : vector<1x1x1x128xf32> to vector<1x2x32x128xf32>
    %70 = arith.mulf %68, %69 : vector<1x2x32x128xf32>
    %71 = arith.addf %57, %70 : vector<1x2x32x128xf32>
    %c1_i32_35 = arith.constant 1 : i32
    %72 = arith.addi %0, %c1_i32_35 : i32
    %c0_36 = arith.constant 0 : index
    %73 = arith.index_cast %72 : i32 to index
    %c2_37 = arith.constant 2 : index
    %c0_38 = arith.constant 0 : index
    %74 = vector.load %arg2[%c0_36, %73, %c2_37, %c0_38] : memref<1x18x34x1xbf16, #tpu.memory_space<vmem>>, vector<1x2x32x1xbf16>
    %75 = vector.shape_cast %74 : vector<1x2x32x1xbf16> to vector<2x32x1xbf16>
    %76 = vector.shape_cast %75 : vector<2x32x1xbf16> to vector<1x2x32x1xbf16>
    %c1_39 = arith.constant 1 : index
    %c2_40 = arith.constant 2 : index
    %c0_41 = arith.constant 0 : index
    %c0_42 = arith.constant 0 : index
    %77 = vector.load %arg3[%c1_39, %c2_40, %c0_41, %c0_42] : memref<3x3x1x128xbf16, #tpu.memory_space<vmem>>, vector<1x1x1x128xbf16>
    %78 = vector.shape_cast %77 : vector<1x1x1x128xbf16> to vector<1x128xbf16>
    %79 = arith.extf %76 : vector<1x2x32x1xbf16> to vector<1x2x32x1xf32>
    %80 = arith.extf %78 : vector<1x128xbf16> to vector<1x128xf32>
    %81 = vector.shape_cast %80 : vector<1x128xf32> to vector<1x1x1x128xf32>
    %82 = vector.broadcast %79 : vector<1x2x32x1xf32> to vector<1x2x32x128xf32>
    %83 = vector.broadcast %81 : vector<1x1x1x128xf32> to vector<1x2x32x128xf32>
    %84 = arith.mulf %82, %83 : vector<1x2x32x128xf32>
    %85 = arith.addf %71, %84 : vector<1x2x32x128xf32>
    %c2_i32_43 = arith.constant 2 : i32
    %86 = arith.addi %0, %c2_i32_43 : i32
    %c0_44 = arith.constant 0 : index
    %87 = arith.index_cast %86 : i32 to index
    %c0_45 = arith.constant 0 : index
    %c0_46 = arith.constant 0 : index
    %88 = vector.load %arg2[%c0_44, %87, %c0_45, %c0_46] : memref<1x18x34x1xbf16, #tpu.memory_space<vmem>>, vector<1x2x32x1xbf16>
    %89 = vector.shape_cast %88 : vector<1x2x32x1xbf16> to vector<2x32x1xbf16>
    %90 = vector.shape_cast %89 : vector<2x32x1xbf16> to vector<1x2x32x1xbf16>
    %c2_47 = arith.constant 2 : index
    %c0_48 = arith.constant 0 : index
    %c0_49 = arith.constant 0 : index
    %c0_50 = arith.constant 0 : index
    %91 = vector.load %arg3[%c2_47, %c0_48, %c0_49, %c0_50] : memref<3x3x1x128xbf16, #tpu.memory_space<vmem>>, vector<1x1x1x128xbf16>
    %92 = vector.shape_cast %91 : vector<1x1x1x128xbf16> to vector<1x128xbf16>
    %93 = arith.extf %90 : vector<1x2x32x1xbf16> to vector<1x2x32x1xf32>
    %94 = arith.extf %92 : vector<1x128xbf16> to vector<1x128xf32>
    %95 = vector.shape_cast %94 : vector<1x128xf32> to vector<1x1x1x128xf32>
    %96 = vector.broadcast %93 : vector<1x2x32x1xf32> to vector<1x2x32x128xf32>
    %97 = vector.broadcast %95 : vector<1x1x1x128xf32> to vector<1x2x32x128xf32>
    %98 = arith.mulf %96, %97 : vector<1x2x32x128xf32>
    %99 = arith.addf %85, %98 : vector<1x2x32x128xf32>
    %c2_i32_51 = arith.constant 2 : i32
    %100 = arith.addi %0, %c2_i32_51 : i32
    %c0_52 = arith.constant 0 : index
    %101 = arith.index_cast %100 : i32 to index
    %c1_53 = arith.constant 1 : index
    %c0_54 = arith.constant 0 : index
    %102 = vector.load %arg2[%c0_52, %101, %c1_53, %c0_54] : memref<1x18x34x1xbf16, #tpu.memory_space<vmem>>, vector<1x2x32x1xbf16>
    %103 = vector.shape_cast %102 : vector<1x2x32x1xbf16> to vector<2x32x1xbf16>
    %104 = vector.shape_cast %103 : vector<2x32x1xbf16> to vector<1x2x32x1xbf16>
    %c2_55 = arith.constant 2 : index
    %c1_56 = arith.constant 1 : index
    %c0_57 = arith.constant 0 : index
    %c0_58 = arith.constant 0 : index
    %105 = vector.load %arg3[%c2_55, %c1_56, %c0_57, %c0_58] : memref<3x3x1x128xbf16, #tpu.memory_space<vmem>>, vector<1x1x1x128xbf16>
    %106 = vector.shape_cast %105 : vector<1x1x1x128xbf16> to vector<1x128xbf16>
    %107 = arith.extf %104 : vector<1x2x32x1xbf16> to vector<1x2x32x1xf32>
    %108 = arith.extf %106 : vector<1x128xbf16> to vector<1x128xf32>
    %109 = vector.shape_cast %108 : vector<1x128xf32> to vector<1x1x1x128xf32>
    %110 = vector.broadcast %107 : vector<1x2x32x1xf32> to vector<1x2x32x128xf32>
    %111 = vector.broadcast %109 : vector<1x1x1x128xf32> to vector<1x2x32x128xf32>
    %112 = arith.mulf %110, %111 : vector<1x2x32x128xf32>
    %113 = arith.addf %99, %112 : vector<1x2x32x128xf32>
    %c2_i32_59 = arith.constant 2 : i32
    %114 = arith.addi %0, %c2_i32_59 : i32
    %c0_60 = arith.constant 0 : index
    %115 = arith.index_cast %114 : i32 to index
    %c2_61 = arith.constant 2 : index
    %c0_62 = arith.constant 0 : index
    %116 = vector.load %arg2[%c0_60, %115, %c2_61, %c0_62] : memref<1x18x34x1xbf16, #tpu.memory_space<vmem>>, vector<1x2x32x1xbf16>
    %117 = vector.shape_cast %116 : vector<1x2x32x1xbf16> to vector<2x32x1xbf16>
    %118 = vector.shape_cast %117 : vector<2x32x1xbf16> to vector<1x2x32x1xbf16>
    %c2_63 = arith.constant 2 : index
    %c2_64 = arith.constant 2 : index
    %c0_65 = arith.constant 0 : index
    %c0_66 = arith.constant 0 : index
    %119 = vector.load %arg3[%c2_63, %c2_64, %c0_65, %c0_66] : memref<3x3x1x128xbf16, #tpu.memory_space<vmem>>, vector<1x1x1x128xbf16>
    %120 = vector.shape_cast %119 : vector<1x1x1x128xbf16> to vector<1x128xbf16>
    %121 = arith.extf %118 : vector<1x2x32x1xbf16> to vector<1x2x32x1xf32>
    %122 = arith.extf %120 : vector<1x128xbf16> to vector<1x128xf32>
    %123 = vector.shape_cast %122 : vector<1x128xf32> to vector<1x1x1x128xf32>
    %124 = vector.broadcast %121 : vector<1x2x32x1xf32> to vector<1x2x32x128xf32>
    %125 = vector.broadcast %123 : vector<1x1x1x128xf32> to vector<1x2x32x128xf32>
    %126 = arith.mulf %124, %125 : vector<1x2x32x128xf32>
    %127 = arith.addf %113, %126 : vector<1x2x32x128xf32>
    %c0_67 = arith.constant 0 : index
    %c0_68 = arith.constant 0 : index
    %128 = vector.load %arg4[%c0_67, %c0_68] : memref<1x128xf32, #tpu.memory_space<vmem>>, vector<1x128xf32>
    %129 = vector.shape_cast %128 : vector<1x128xf32> to vector<1x1x1x128xf32>
    %130 = vector.broadcast %129 : vector<1x1x1x128xf32> to vector<1x2x32x128xf32>
    %131 = arith.mulf %127, %130 : vector<1x2x32x128xf32>
    %c0_69 = arith.constant 0 : index
    %c0_70 = arith.constant 0 : index
    %132 = vector.load %arg5[%c0_69, %c0_70] : memref<1x128xf32, #tpu.memory_space<vmem>>, vector<1x128xf32>
    %133 = vector.shape_cast %132 : vector<1x128xf32> to vector<1x1x1x128xf32>
    %134 = vector.broadcast %133 : vector<1x1x1x128xf32> to vector<1x2x32x128xf32>
    %135 = arith.addf %131, %134 : vector<1x2x32x128xf32>
    %cst_71 = arith.constant 0.000000e+00 : f32
    %136 = vector.broadcast %cst_71 : f32 to vector<1x2x32x128xf32>
    %137 = arith.maximumf %135, %136 : vector<1x2x32x128xf32>
    %cst_72 = arith.constant dense<0xFF800000> : vector<1x32x128xf32>
    %138 = vector.multi_reduction <maximumf>, %137, %cst_72 [1] : vector<1x2x32x128xf32> to vector<1x32x128xf32>
    %c0_73 = arith.constant 0 : index
    %c0_74 = arith.constant 0 : index
    %c0_75 = arith.constant 0 : index
    %139 = vector.load %arg7[%c0_73, %c0_74, %c0_75] : memref<1x32x128xf32, #tpu.memory_space<vmem>>, vector<1x32x128xf32>
    tpu.vector_store %arg7[%c0_73, %c0_74, %c0_75], %138 {strides = array<i32>} : memref<1x32x128xf32, #tpu.memory_space<vmem>>, vector<1x32x128xf32>,
    %c0_76 = arith.constant 0 : index
    %c0_77 = arith.constant 0 : index
    %c0_78 = arith.constant 0 : index
    %140 = tpu.strided_load %arg7[%c0_76, %c0_77, %c0_78] {strides = array<i32: 1, 2, 1>} : memref<1x32x128xf32, #tpu.memory_space<vmem>>, vector<1x16x128xf32>
    %c0_79 = arith.constant 0 : index
    %c1_80 = arith.constant 1 : index
    %c0_81 = arith.constant 0 : index
    %141 = tpu.strided_load %arg7[%c0_79, %c1_80, %c0_81] {strides = array<i32: 1, 2, 1>} : memref<1x32x128xf32, #tpu.memory_space<vmem>>, vector<1x16x128xf32>
    %142 = arith.maximumf %140, %141 : vector<1x16x128xf32>
    %143 = arith.truncf %142 : vector<1x16x128xf32> to vector<1x16x128xbf16>
    %c0_82 = arith.constant 0 : index
    %c0_83 = arith.constant 0 : index
    %c0_84 = arith.constant 0 : index
    %c0_85 = arith.constant 0 : index
    %144 = vector.load %arg6[%c0_82, %c0_83, %c0_84, %c0_85] : memref<1x1x16x128xbf16, #tpu.memory_space<vmem>>, vector<1x1x16x128xbf16>
    %145 = vector.shape_cast %144 : vector<1x1x16x128xbf16> to vector<1x16x128xbf16>
    %146 = vector.shape_cast %143 : vector<1x16x128xbf16> to vector<1x1x16x128xbf16>
    tpu.vector_store %arg6[%c0_82, %c0_83, %c0_84, %c0_85], %146 {strides = array<i32>} : memref<1x1x16x128xbf16, #tpu.memory_space<vmem>>, vector<1x1x16x128xbf16>,
    return
  }
  func.func @transform_0(%arg0: i32, %arg1: i32) -> (i32, i32, i32, i32) {
    %c0_i32 = arith.constant 0 : i32
    %c0_i32_0 = arith.constant 0 : i32
    %c0_i32_1 = arith.constant 0 : i32
    %c0_i32_2 = arith.constant 0 : i32
    return %arg0, %c0_i32, %c0_i32_0, %c0_i32_1 : i32, i32, i32, i32
  }
  func.func @transform_1(%arg0: i32, %arg1: i32) -> (i32, i32, i32, i32) {
    %c0_i32 = arith.constant 0 : i32
    %c0_i32_0 = arith.constant 0 : i32
    %c0_i32_1 = arith.constant 0 : i32
    %c0_i32_2 = arith.constant 0 : i32
    %c0_i32_3 = arith.constant 0 : i32
    return %c0_i32, %c0_i32_0, %c0_i32_1, %c0_i32_2 : i32, i32, i32, i32
  }
  func.func @transform_2(%arg0: i32, %arg1: i32) -> (i32, i32) {
    %c0_i32 = arith.constant 0 : i32
    %c0_i32_0 = arith.constant 0 : i32
    %c0_i32_1 = arith.constant 0 : i32
    return %c0_i32, %c0_i32_0 : i32, i32
  }
  func.func @transform_3(%arg0: i32, %arg1: i32) -> (i32, i32) {
    %c0_i32 = arith.constant 0 : i32
    %c0_i32_0 = arith.constant 0 : i32
    %c0_i32_1 = arith.constant 0 : i32
    return %c0_i32, %c0_i32_0 : i32, i32
  }
  func.func @transform_4(%arg0: i32, %arg1: i32) -> (i32, i32, i32, i32) {
    %c0_i32 = arith.constant 0 : i32
    %c0_i32_0 = arith.constant 0 : i32
    %c0_i32_1 = arith.constant 0 : i32
    return %arg0, %arg1, %c0_i32, %c0_i32_0 : i32, i32, i32, i32
  }
}

module attributes {stable_mosaic.version = 11 : i64} {
  func.func @_conv_bn_relu_pool_kernel(%arg0: i32, %arg1: i32, %arg2: memref<1x10x18x128xbf16, #tpu.memory_space<vmem>>, %arg3: memref<3x3x128x128xbf16, #tpu.memory_space<vmem>>, %arg4: memref<1x128xf32, #tpu.memory_space<vmem>>, %arg5: memref<1x128xf32, #tpu.memory_space<vmem>>, %arg6: memref<1x2x8x128xbf16, #tpu.memory_space<vmem>>, %arg7: memref<2x16x128xf32, #tpu.memory_space<vmem>>) attributes {dimension_semantics = [#tpu.dimension_semantics<parallel>, #tpu.dimension_semantics<parallel>], iteration_bounds = array<i64: 2, 2>, scalar_prefetch = 0 : i64, scratch_operands = 1 : i64, tpu.core_type = #tpu.core_type<tc>, window_params = [{transform_indices = @transform_0, window_bounds = array<i64: 1, 10, 18, 128>}, {pipeline_mode = #tpu.pipeline_mode<synchronous>, transform_indices = @transform_1, window_bounds = array<i64: 3, 3, 128, 128>}, {pipeline_mode = #tpu.pipeline_mode<synchronous>, transform_indices = @transform_2, window_bounds = array<i64: 1, 128>}, {pipeline_mode = #tpu.pipeline_mode<synchronous>, transform_indices = @transform_3, window_bounds = array<i64: 1, 128>}, {transform_indices = @transform_4, window_bounds = array<i64: 1, 2, 8, 128>}]} {
    %c4_i32 = arith.constant 4 : i32
    %0 = arith.muli %arg1, %c4_i32 : i32
    %cst = arith.constant 0.000000e+00 : f32
    %1 = vector.broadcast %cst : f32 to vector<2x2x16x128xf32>
    %c0_i32 = arith.constant 0 : i32
    %2 = arith.addi %0, %c0_i32 : i32
    %c0 = arith.constant 0 : index
    %3 = arith.index_cast %2 : i32 to index
    %c0_0 = arith.constant 0 : index
    %c0_1 = arith.constant 0 : index
    %4 = vector.load %arg2[%c0, %3, %c0_0, %c0_1] : memref<1x10x18x128xbf16, #tpu.memory_space<vmem>>, vector<1x4x16x128xbf16>
    %5 = vector.shape_cast %4 : vector<1x4x16x128xbf16> to vector<4x16x128xbf16>
    %6 = vector.shape_cast %5 : vector<4x16x128xbf16> to vector<2x2x16x128xbf16>
    %c0_2 = arith.constant 0 : index
    %c0_3 = arith.constant 0 : index
    %c0_4 = arith.constant 0 : index
    %c0_5 = arith.constant 0 : index
    %7 = vector.load %arg3[%c0_2, %c0_3, %c0_4, %c0_5] : memref<3x3x128x128xbf16, #tpu.memory_space<vmem>>, vector<1x1x128x128xbf16>
    %8 = vector.shape_cast %7 : vector<1x1x128x128xbf16> to vector<128x128xbf16>
    %cst_6 = arith.constant dense<0.000000e+00> : vector<2x2x16x128xf32>
    %9 = tpu.matmul %6, %8, %cst_6 {dimension_numbers = #tpu.dot_dimension_numbers<[3], [0], [0, 1, 2], [1], [0, 0, 0, 1, 0, 2, 1, 1], [], []>} : vector<2x2x16x128xbf16>, vector<128x128xbf16>, vector<2x2x16x128xf32> -> vector<2x2x16x128xf32>
    %10 = arith.addf %1, %9 : vector<2x2x16x128xf32>
    %c0_i32_7 = arith.constant 0 : i32
    %11 = arith.addi %0, %c0_i32_7 : i32
    %c0_8 = arith.constant 0 : index
    %12 = arith.index_cast %11 : i32 to index
    %c1 = arith.constant 1 : index
    %c0_9 = arith.constant 0 : index
    %13 = vector.load %arg2[%c0_8, %12, %c1, %c0_9] : memref<1x10x18x128xbf16, #tpu.memory_space<vmem>>, vector<1x4x16x128xbf16>
    %14 = vector.shape_cast %13 : vector<1x4x16x128xbf16> to vector<4x16x128xbf16>
    %15 = vector.shape_cast %14 : vector<4x16x128xbf16> to vector<2x2x16x128xbf16>
    %c0_10 = arith.constant 0 : index
    %c1_11 = arith.constant 1 : index
    %c0_12 = arith.constant 0 : index
    %c0_13 = arith.constant 0 : index
    %16 = vector.load %arg3[%c0_10, %c1_11, %c0_12, %c0_13] : memref<3x3x128x128xbf16, #tpu.memory_space<vmem>>, vector<1x1x128x128xbf16>
    %17 = vector.shape_cast %16 : vector<1x1x128x128xbf16> to vector<128x128xbf16>
    %cst_14 = arith.constant dense<0.000000e+00> : vector<2x2x16x128xf32>
    %18 = tpu.matmul %15, %17, %cst_14 {dimension_numbers = #tpu.dot_dimension_numbers<[3], [0], [0, 1, 2], [1], [0, 0, 0, 1, 0, 2, 1, 1], [], []>} : vector<2x2x16x128xbf16>, vector<128x128xbf16>, vector<2x2x16x128xf32> -> vector<2x2x16x128xf32>
    %19 = arith.addf %10, %18 : vector<2x2x16x128xf32>
    %c0_i32_15 = arith.constant 0 : i32
    %20 = arith.addi %0, %c0_i32_15 : i32
    %c0_16 = arith.constant 0 : index
    %21 = arith.index_cast %20 : i32 to index
    %c2 = arith.constant 2 : index
    %c0_17 = arith.constant 0 : index
    %22 = vector.load %arg2[%c0_16, %21, %c2, %c0_17] : memref<1x10x18x128xbf16, #tpu.memory_space<vmem>>, vector<1x4x16x128xbf16>
    %23 = vector.shape_cast %22 : vector<1x4x16x128xbf16> to vector<4x16x128xbf16>
    %24 = vector.shape_cast %23 : vector<4x16x128xbf16> to vector<2x2x16x128xbf16>
    %c0_18 = arith.constant 0 : index
    %c2_19 = arith.constant 2 : index
    %c0_20 = arith.constant 0 : index
    %c0_21 = arith.constant 0 : index
    %25 = vector.load %arg3[%c0_18, %c2_19, %c0_20, %c0_21] : memref<3x3x128x128xbf16, #tpu.memory_space<vmem>>, vector<1x1x128x128xbf16>
    %26 = vector.shape_cast %25 : vector<1x1x128x128xbf16> to vector<128x128xbf16>
    %cst_22 = arith.constant dense<0.000000e+00> : vector<2x2x16x128xf32>
    %27 = tpu.matmul %24, %26, %cst_22 {dimension_numbers = #tpu.dot_dimension_numbers<[3], [0], [0, 1, 2], [1], [0, 0, 0, 1, 0, 2, 1, 1], [], []>} : vector<2x2x16x128xbf16>, vector<128x128xbf16>, vector<2x2x16x128xf32> -> vector<2x2x16x128xf32>
    %28 = arith.addf %19, %27 : vector<2x2x16x128xf32>
    %c1_i32 = arith.constant 1 : i32
    %29 = arith.addi %0, %c1_i32 : i32
    %c0_23 = arith.constant 0 : index
    %30 = arith.index_cast %29 : i32 to index
    %c0_24 = arith.constant 0 : index
    %c0_25 = arith.constant 0 : index
    %31 = vector.load %arg2[%c0_23, %30, %c0_24, %c0_25] : memref<1x10x18x128xbf16, #tpu.memory_space<vmem>>, vector<1x4x16x128xbf16>
    %32 = vector.shape_cast %31 : vector<1x4x16x128xbf16> to vector<4x16x128xbf16>
    %33 = vector.shape_cast %32 : vector<4x16x128xbf16> to vector<2x2x16x128xbf16>
    %c1_26 = arith.constant 1 : index
    %c0_27 = arith.constant 0 : index
    %c0_28 = arith.constant 0 : index
    %c0_29 = arith.constant 0 : index
    %34 = vector.load %arg3[%c1_26, %c0_27, %c0_28, %c0_29] : memref<3x3x128x128xbf16, #tpu.memory_space<vmem>>, vector<1x1x128x128xbf16>
    %35 = vector.shape_cast %34 : vector<1x1x128x128xbf16> to vector<128x128xbf16>
    %cst_30 = arith.constant dense<0.000000e+00> : vector<2x2x16x128xf32>
    %36 = tpu.matmul %33, %35, %cst_30 {dimension_numbers = #tpu.dot_dimension_numbers<[3], [0], [0, 1, 2], [1], [0, 0, 0, 1, 0, 2, 1, 1], [], []>} : vector<2x2x16x128xbf16>, vector<128x128xbf16>, vector<2x2x16x128xf32> -> vector<2x2x16x128xf32>
    %37 = arith.addf %28, %36 : vector<2x2x16x128xf32>
    %c1_i32_31 = arith.constant 1 : i32
    %38 = arith.addi %0, %c1_i32_31 : i32
    %c0_32 = arith.constant 0 : index
    %39 = arith.index_cast %38 : i32 to index
    %c1_33 = arith.constant 1 : index
    %c0_34 = arith.constant 0 : index
    %40 = vector.load %arg2[%c0_32, %39, %c1_33, %c0_34] : memref<1x10x18x128xbf16, #tpu.memory_space<vmem>>, vector<1x4x16x128xbf16>
    %41 = vector.shape_cast %40 : vector<1x4x16x128xbf16> to vector<4x16x128xbf16>
    %42 = vector.shape_cast %41 : vector<4x16x128xbf16> to vector<2x2x16x128xbf16>
    %c1_35 = arith.constant 1 : index
    %c1_36 = arith.constant 1 : index
    %c0_37 = arith.constant 0 : index
    %c0_38 = arith.constant 0 : index
    %43 = vector.load %arg3[%c1_35, %c1_36, %c0_37, %c0_38] : memref<3x3x128x128xbf16, #tpu.memory_space<vmem>>, vector<1x1x128x128xbf16>
    %44 = vector.shape_cast %43 : vector<1x1x128x128xbf16> to vector<128x128xbf16>
    %cst_39 = arith.constant dense<0.000000e+00> : vector<2x2x16x128xf32>
    %45 = tpu.matmul %42, %44, %cst_39 {dimension_numbers = #tpu.dot_dimension_numbers<[3], [0], [0, 1, 2], [1], [0, 0, 0, 1, 0, 2, 1, 1], [], []>} : vector<2x2x16x128xbf16>, vector<128x128xbf16>, vector<2x2x16x128xf32> -> vector<2x2x16x128xf32>
    %46 = arith.addf %37, %45 : vector<2x2x16x128xf32>
    %c1_i32_40 = arith.constant 1 : i32
    %47 = arith.addi %0, %c1_i32_40 : i32
    %c0_41 = arith.constant 0 : index
    %48 = arith.index_cast %47 : i32 to index
    %c2_42 = arith.constant 2 : index
    %c0_43 = arith.constant 0 : index
    %49 = vector.load %arg2[%c0_41, %48, %c2_42, %c0_43] : memref<1x10x18x128xbf16, #tpu.memory_space<vmem>>, vector<1x4x16x128xbf16>
    %50 = vector.shape_cast %49 : vector<1x4x16x128xbf16> to vector<4x16x128xbf16>
    %51 = vector.shape_cast %50 : vector<4x16x128xbf16> to vector<2x2x16x128xbf16>
    %c1_44 = arith.constant 1 : index
    %c2_45 = arith.constant 2 : index
    %c0_46 = arith.constant 0 : index
    %c0_47 = arith.constant 0 : index
    %52 = vector.load %arg3[%c1_44, %c2_45, %c0_46, %c0_47] : memref<3x3x128x128xbf16, #tpu.memory_space<vmem>>, vector<1x1x128x128xbf16>
    %53 = vector.shape_cast %52 : vector<1x1x128x128xbf16> to vector<128x128xbf16>
    %cst_48 = arith.constant dense<0.000000e+00> : vector<2x2x16x128xf32>
    %54 = tpu.matmul %51, %53, %cst_48 {dimension_numbers = #tpu.dot_dimension_numbers<[3], [0], [0, 1, 2], [1], [0, 0, 0, 1, 0, 2, 1, 1], [], []>} : vector<2x2x16x128xbf16>, vector<128x128xbf16>, vector<2x2x16x128xf32> -> vector<2x2x16x128xf32>
    %55 = arith.addf %46, %54 : vector<2x2x16x128xf32>
    %c2_i32 = arith.constant 2 : i32
    %56 = arith.addi %0, %c2_i32 : i32
    %c0_49 = arith.constant 0 : index
    %57 = arith.index_cast %56 : i32 to index
    %c0_50 = arith.constant 0 : index
    %c0_51 = arith.constant 0 : index
    %58 = vector.load %arg2[%c0_49, %57, %c0_50, %c0_51] : memref<1x10x18x128xbf16, #tpu.memory_space<vmem>>, vector<1x4x16x128xbf16>
    %59 = vector.shape_cast %58 : vector<1x4x16x128xbf16> to vector<4x16x128xbf16>
    %60 = vector.shape_cast %59 : vector<4x16x128xbf16> to vector<2x2x16x128xbf16>
    %c2_52 = arith.constant 2 : index
    %c0_53 = arith.constant 0 : index
    %c0_54 = arith.constant 0 : index
    %c0_55 = arith.constant 0 : index
    %61 = vector.load %arg3[%c2_52, %c0_53, %c0_54, %c0_55] : memref<3x3x128x128xbf16, #tpu.memory_space<vmem>>, vector<1x1x128x128xbf16>
    %62 = vector.shape_cast %61 : vector<1x1x128x128xbf16> to vector<128x128xbf16>
    %cst_56 = arith.constant dense<0.000000e+00> : vector<2x2x16x128xf32>
    %63 = tpu.matmul %60, %62, %cst_56 {dimension_numbers = #tpu.dot_dimension_numbers<[3], [0], [0, 1, 2], [1], [0, 0, 0, 1, 0, 2, 1, 1], [], []>} : vector<2x2x16x128xbf16>, vector<128x128xbf16>, vector<2x2x16x128xf32> -> vector<2x2x16x128xf32>
    %64 = arith.addf %55, %63 : vector<2x2x16x128xf32>
    %c2_i32_57 = arith.constant 2 : i32
    %65 = arith.addi %0, %c2_i32_57 : i32
    %c0_58 = arith.constant 0 : index
    %66 = arith.index_cast %65 : i32 to index
    %c1_59 = arith.constant 1 : index
    %c0_60 = arith.constant 0 : index
    %67 = vector.load %arg2[%c0_58, %66, %c1_59, %c0_60] : memref<1x10x18x128xbf16, #tpu.memory_space<vmem>>, vector<1x4x16x128xbf16>
    %68 = vector.shape_cast %67 : vector<1x4x16x128xbf16> to vector<4x16x128xbf16>
    %69 = vector.shape_cast %68 : vector<4x16x128xbf16> to vector<2x2x16x128xbf16>
    %c2_61 = arith.constant 2 : index
    %c1_62 = arith.constant 1 : index
    %c0_63 = arith.constant 0 : index
    %c0_64 = arith.constant 0 : index
    %70 = vector.load %arg3[%c2_61, %c1_62, %c0_63, %c0_64] : memref<3x3x128x128xbf16, #tpu.memory_space<vmem>>, vector<1x1x128x128xbf16>
    %71 = vector.shape_cast %70 : vector<1x1x128x128xbf16> to vector<128x128xbf16>
    %cst_65 = arith.constant dense<0.000000e+00> : vector<2x2x16x128xf32>
    %72 = tpu.matmul %69, %71, %cst_65 {dimension_numbers = #tpu.dot_dimension_numbers<[3], [0], [0, 1, 2], [1], [0, 0, 0, 1, 0, 2, 1, 1], [], []>} : vector<2x2x16x128xbf16>, vector<128x128xbf16>, vector<2x2x16x128xf32> -> vector<2x2x16x128xf32>
    %73 = arith.addf %64, %72 : vector<2x2x16x128xf32>
    %c2_i32_66 = arith.constant 2 : i32
    %74 = arith.addi %0, %c2_i32_66 : i32
    %c0_67 = arith.constant 0 : index
    %75 = arith.index_cast %74 : i32 to index
    %c2_68 = arith.constant 2 : index
    %c0_69 = arith.constant 0 : index
    %76 = vector.load %arg2[%c0_67, %75, %c2_68, %c0_69] : memref<1x10x18x128xbf16, #tpu.memory_space<vmem>>, vector<1x4x16x128xbf16>
    %77 = vector.shape_cast %76 : vector<1x4x16x128xbf16> to vector<4x16x128xbf16>
    %78 = vector.shape_cast %77 : vector<4x16x128xbf16> to vector<2x2x16x128xbf16>
    %c2_70 = arith.constant 2 : index
    %c2_71 = arith.constant 2 : index
    %c0_72 = arith.constant 0 : index
    %c0_73 = arith.constant 0 : index
    %79 = vector.load %arg3[%c2_70, %c2_71, %c0_72, %c0_73] : memref<3x3x128x128xbf16, #tpu.memory_space<vmem>>, vector<1x1x128x128xbf16>
    %80 = vector.shape_cast %79 : vector<1x1x128x128xbf16> to vector<128x128xbf16>
    %cst_74 = arith.constant dense<0.000000e+00> : vector<2x2x16x128xf32>
    %81 = tpu.matmul %78, %80, %cst_74 {dimension_numbers = #tpu.dot_dimension_numbers<[3], [0], [0, 1, 2], [1], [0, 0, 0, 1, 0, 2, 1, 1], [], []>} : vector<2x2x16x128xbf16>, vector<128x128xbf16>, vector<2x2x16x128xf32> -> vector<2x2x16x128xf32>
    %82 = arith.addf %73, %81 : vector<2x2x16x128xf32>
    %c0_75 = arith.constant 0 : index
    %c0_76 = arith.constant 0 : index
    %83 = vector.load %arg4[%c0_75, %c0_76] : memref<1x128xf32, #tpu.memory_space<vmem>>, vector<1x128xf32>
    %84 = vector.shape_cast %83 : vector<1x128xf32> to vector<1x1x1x128xf32>
    %85 = vector.broadcast %84 : vector<1x1x1x128xf32> to vector<2x2x16x128xf32>
    %86 = arith.mulf %82, %85 : vector<2x2x16x128xf32>
    %c0_77 = arith.constant 0 : index
    %c0_78 = arith.constant 0 : index
    %87 = vector.load %arg5[%c0_77, %c0_78] : memref<1x128xf32, #tpu.memory_space<vmem>>, vector<1x128xf32>
    %88 = vector.shape_cast %87 : vector<1x128xf32> to vector<1x1x1x128xf32>
    %89 = vector.broadcast %88 : vector<1x1x1x128xf32> to vector<2x2x16x128xf32>
    %90 = arith.addf %86, %89 : vector<2x2x16x128xf32>
    %cst_79 = arith.constant 0.000000e+00 : f32
    %91 = vector.broadcast %cst_79 : f32 to vector<2x2x16x128xf32>
    %92 = arith.maximumf %90, %91 : vector<2x2x16x128xf32>
    %cst_80 = arith.constant dense<0xFF800000> : vector<2x16x128xf32>
    %93 = vector.multi_reduction <maximumf>, %92, %cst_80 [1] : vector<2x2x16x128xf32> to vector<2x16x128xf32>
    %c0_81 = arith.constant 0 : index
    %c0_82 = arith.constant 0 : index
    %c0_83 = arith.constant 0 : index
    %94 = vector.load %arg7[%c0_81, %c0_82, %c0_83] : memref<2x16x128xf32, #tpu.memory_space<vmem>>, vector<2x16x128xf32>
    tpu.vector_store %arg7[%c0_81, %c0_82, %c0_83], %93 {strides = array<i32>} : memref<2x16x128xf32, #tpu.memory_space<vmem>>, vector<2x16x128xf32>,
    %c0_84 = arith.constant 0 : index
    %c0_85 = arith.constant 0 : index
    %c0_86 = arith.constant 0 : index
    %95 = tpu.strided_load %arg7[%c0_84, %c0_85, %c0_86] {strides = array<i32: 1, 2, 1>} : memref<2x16x128xf32, #tpu.memory_space<vmem>>, vector<2x8x128xf32>
    %c0_87 = arith.constant 0 : index
    %c1_88 = arith.constant 1 : index
    %c0_89 = arith.constant 0 : index
    %96 = tpu.strided_load %arg7[%c0_87, %c1_88, %c0_89] {strides = array<i32: 1, 2, 1>} : memref<2x16x128xf32, #tpu.memory_space<vmem>>, vector<2x8x128xf32>
    %97 = arith.maximumf %95, %96 : vector<2x8x128xf32>
    %98 = arith.truncf %97 : vector<2x8x128xf32> to vector<2x8x128xbf16>
    %c0_90 = arith.constant 0 : index
    %c0_91 = arith.constant 0 : index
    %c0_92 = arith.constant 0 : index
    %c0_93 = arith.constant 0 : index
    %99 = vector.load %arg6[%c0_90, %c0_91, %c0_92, %c0_93] : memref<1x2x8x128xbf16, #tpu.memory_space<vmem>>, vector<1x2x8x128xbf16>
    %100 = vector.shape_cast %99 : vector<1x2x8x128xbf16> to vector<2x8x128xbf16>
    %101 = vector.shape_cast %98 : vector<2x8x128xbf16> to vector<1x2x8x128xbf16>
    tpu.vector_store %arg6[%c0_90, %c0_91, %c0_92, %c0_93], %101 {strides = array<i32>} : memref<1x2x8x128xbf16, #tpu.memory_space<vmem>>, vector<1x2x8x128xbf16>,
    return
  }
  func.func @transform_0(%arg0: i32, %arg1: i32) -> (i32, i32, i32, i32) {
    %c0_i32 = arith.constant 0 : i32
    %c0_i32_0 = arith.constant 0 : i32
    %c0_i32_1 = arith.constant 0 : i32
    %c0_i32_2 = arith.constant 0 : i32
    return %arg0, %c0_i32, %c0_i32_0, %c0_i32_1 : i32, i32, i32, i32
  }
  func.func @transform_1(%arg0: i32, %arg1: i32) -> (i32, i32, i32, i32) {
    %c0_i32 = arith.constant 0 : i32
    %c0_i32_0 = arith.constant 0 : i32
    %c0_i32_1 = arith.constant 0 : i32
    %c0_i32_2 = arith.constant 0 : i32
    %c0_i32_3 = arith.constant 0 : i32
    return %c0_i32, %c0_i32_0, %c0_i32_1, %c0_i32_2 : i32, i32, i32, i32
  }
  func.func @transform_2(%arg0: i32, %arg1: i32) -> (i32, i32) {
    %c0_i32 = arith.constant 0 : i32
    %c0_i32_0 = arith.constant 0 : i32
    %c0_i32_1 = arith.constant 0 : i32
    return %c0_i32, %c0_i32_0 : i32, i32
  }
  func.func @transform_3(%arg0: i32, %arg1: i32) -> (i32, i32) {
    %c0_i32 = arith.constant 0 : i32
    %c0_i32_0 = arith.constant 0 : i32
    %c0_i32_1 = arith.constant 0 : i32
    return %c0_i32, %c0_i32_0 : i32, i32
  }
  func.func @transform_4(%arg0: i32, %arg1: i32) -> (i32, i32, i32, i32) {
    %c0_i32 = arith.constant 0 : i32
    %c0_i32_0 = arith.constant 0 : i32
    %c0_i32_1 = arith.constant 0 : i32
    return %arg0, %arg1, %c0_i32, %c0_i32_0 : i32, i32, i32, i32
  }
}

module attributes {stable_mosaic.version = 11 : i64} {
  func.func @_conv_bn_relu_pool_kernel(%arg0: i32, %arg1: i32, %arg2: memref<1x6x10x128xbf16, #tpu.memory_space<vmem>>, %arg3: memref<3x3x128x128xbf16, #tpu.memory_space<vmem>>, %arg4: memref<1x128xf32, #tpu.memory_space<vmem>>, %arg5: memref<1x128xf32, #tpu.memory_space<vmem>>, %arg6: memref<1x2x4x128xbf16, #tpu.memory_space<vmem>>, %arg7: memref<2x8x128xf32, #tpu.memory_space<vmem>>) attributes {dimension_semantics = [#tpu.dimension_semantics<parallel>, #tpu.dimension_semantics<parallel>], iteration_bounds = array<i64: 2, 1>, scalar_prefetch = 0 : i64, scratch_operands = 1 : i64, tpu.core_type = #tpu.core_type<tc>, window_params = [{transform_indices = @transform_0, window_bounds = array<i64: 1, 6, 10, 128>}, {pipeline_mode = #tpu.pipeline_mode<synchronous>, transform_indices = @transform_1, window_bounds = array<i64: 3, 3, 128, 128>}, {pipeline_mode = #tpu.pipeline_mode<synchronous>, transform_indices = @transform_2, window_bounds = array<i64: 1, 128>}, {pipeline_mode = #tpu.pipeline_mode<synchronous>, transform_indices = @transform_3, window_bounds = array<i64: 1, 128>}, {transform_indices = @transform_4, window_bounds = array<i64: 1, 2, 4, 128>}]} {
    %c4_i32 = arith.constant 4 : i32
    %0 = arith.muli %arg1, %c4_i32 : i32
    %cst = arith.constant 0.000000e+00 : f32
    %1 = vector.broadcast %cst : f32 to vector<2x2x8x128xf32>
    %c0_i32 = arith.constant 0 : i32
    %2 = arith.addi %0, %c0_i32 : i32
    %c0 = arith.constant 0 : index
    %3 = arith.index_cast %2 : i32 to index
    %c0_0 = arith.constant 0 : index
    %c0_1 = arith.constant 0 : index
    %4 = vector.load %arg2[%c0, %3, %c0_0, %c0_1] : memref<1x6x10x128xbf16, #tpu.memory_space<vmem>>, vector<1x4x8x128xbf16>
    %5 = vector.shape_cast %4 : vector<1x4x8x128xbf16> to vector<4x8x128xbf16>
    %6 = vector.shape_cast %5 : vector<4x8x128xbf16> to vector<2x2x8x128xbf16>
    %c0_2 = arith.constant 0 : index
    %c0_3 = arith.constant 0 : index
    %c0_4 = arith.constant 0 : index
    %c0_5 = arith.constant 0 : index
    %7 = vector.load %arg3[%c0_2, %c0_3, %c0_4, %c0_5] : memref<3x3x128x128xbf16, #tpu.memory_space<vmem>>, vector<1x1x128x128xbf16>
    %8 = vector.shape_cast %7 : vector<1x1x128x128xbf16> to vector<128x128xbf16>
    %cst_6 = arith.constant dense<0.000000e+00> : vector<2x2x8x128xf32>
    %9 = tpu.matmul %6, %8, %cst_6 {dimension_numbers = #tpu.dot_dimension_numbers<[3], [0], [0, 1, 2], [1], [0, 0, 0, 1, 0, 2, 1, 1], [], []>} : vector<2x2x8x128xbf16>, vector<128x128xbf16>, vector<2x2x8x128xf32> -> vector<2x2x8x128xf32>
    %10 = arith.addf %1, %9 : vector<2x2x8x128xf32>
    %c0_i32_7 = arith.constant 0 : i32
    %11 = arith.addi %0, %c0_i32_7 : i32
    %c0_8 = arith.constant 0 : index
    %12 = arith.index_cast %11 : i32 to index
    %c1 = arith.constant 1 : index
    %c0_9 = arith.constant 0 : index
    %13 = vector.load %arg2[%c0_8, %12, %c1, %c0_9] : memref<1x6x10x128xbf16, #tpu.memory_space<vmem>>, vector<1x4x8x128xbf16>
    %14 = vector.shape_cast %13 : vector<1x4x8x128xbf16> to vector<4x8x128xbf16>
    %15 = vector.shape_cast %14 : vector<4x8x128xbf16> to vector<2x2x8x128xbf16>
    %c0_10 = arith.constant 0 : index
    %c1_11 = arith.constant 1 : index
    %c0_12 = arith.constant 0 : index
    %c0_13 = arith.constant 0 : index
    %16 = vector.load %arg3[%c0_10, %c1_11, %c0_12, %c0_13] : memref<3x3x128x128xbf16, #tpu.memory_space<vmem>>, vector<1x1x128x128xbf16>
    %17 = vector.shape_cast %16 : vector<1x1x128x128xbf16> to vector<128x128xbf16>
    %cst_14 = arith.constant dense<0.000000e+00> : vector<2x2x8x128xf32>
    %18 = tpu.matmul %15, %17, %cst_14 {dimension_numbers = #tpu.dot_dimension_numbers<[3], [0], [0, 1, 2], [1], [0, 0, 0, 1, 0, 2, 1, 1], [], []>} : vector<2x2x8x128xbf16>, vector<128x128xbf16>, vector<2x2x8x128xf32> -> vector<2x2x8x128xf32>
    %19 = arith.addf %10, %18 : vector<2x2x8x128xf32>
    %c0_i32_15 = arith.constant 0 : i32
    %20 = arith.addi %0, %c0_i32_15 : i32
    %c0_16 = arith.constant 0 : index
    %21 = arith.index_cast %20 : i32 to index
    %c2 = arith.constant 2 : index
    %c0_17 = arith.constant 0 : index
    %22 = vector.load %arg2[%c0_16, %21, %c2, %c0_17] : memref<1x6x10x128xbf16, #tpu.memory_space<vmem>>, vector<1x4x8x128xbf16>
    %23 = vector.shape_cast %22 : vector<1x4x8x128xbf16> to vector<4x8x128xbf16>
    %24 = vector.shape_cast %23 : vector<4x8x128xbf16> to vector<2x2x8x128xbf16>
    %c0_18 = arith.constant 0 : index
    %c2_19 = arith.constant 2 : index
    %c0_20 = arith.constant 0 : index
    %c0_21 = arith.constant 0 : index
    %25 = vector.load %arg3[%c0_18, %c2_19, %c0_20, %c0_21] : memref<3x3x128x128xbf16, #tpu.memory_space<vmem>>, vector<1x1x128x128xbf16>
    %26 = vector.shape_cast %25 : vector<1x1x128x128xbf16> to vector<128x128xbf16>
    %cst_22 = arith.constant dense<0.000000e+00> : vector<2x2x8x128xf32>
    %27 = tpu.matmul %24, %26, %cst_22 {dimension_numbers = #tpu.dot_dimension_numbers<[3], [0], [0, 1, 2], [1], [0, 0, 0, 1, 0, 2, 1, 1], [], []>} : vector<2x2x8x128xbf16>, vector<128x128xbf16>, vector<2x2x8x128xf32> -> vector<2x2x8x128xf32>
    %28 = arith.addf %19, %27 : vector<2x2x8x128xf32>
    %c1_i32 = arith.constant 1 : i32
    %29 = arith.addi %0, %c1_i32 : i32
    %c0_23 = arith.constant 0 : index
    %30 = arith.index_cast %29 : i32 to index
    %c0_24 = arith.constant 0 : index
    %c0_25 = arith.constant 0 : index
    %31 = vector.load %arg2[%c0_23, %30, %c0_24, %c0_25] : memref<1x6x10x128xbf16, #tpu.memory_space<vmem>>, vector<1x4x8x128xbf16>
    %32 = vector.shape_cast %31 : vector<1x4x8x128xbf16> to vector<4x8x128xbf16>
    %33 = vector.shape_cast %32 : vector<4x8x128xbf16> to vector<2x2x8x128xbf16>
    %c1_26 = arith.constant 1 : index
    %c0_27 = arith.constant 0 : index
    %c0_28 = arith.constant 0 : index
    %c0_29 = arith.constant 0 : index
    %34 = vector.load %arg3[%c1_26, %c0_27, %c0_28, %c0_29] : memref<3x3x128x128xbf16, #tpu.memory_space<vmem>>, vector<1x1x128x128xbf16>
    %35 = vector.shape_cast %34 : vector<1x1x128x128xbf16> to vector<128x128xbf16>
    %cst_30 = arith.constant dense<0.000000e+00> : vector<2x2x8x128xf32>
    %36 = tpu.matmul %33, %35, %cst_30 {dimension_numbers = #tpu.dot_dimension_numbers<[3], [0], [0, 1, 2], [1], [0, 0, 0, 1, 0, 2, 1, 1], [], []>} : vector<2x2x8x128xbf16>, vector<128x128xbf16>, vector<2x2x8x128xf32> -> vector<2x2x8x128xf32>
    %37 = arith.addf %28, %36 : vector<2x2x8x128xf32>
    %c1_i32_31 = arith.constant 1 : i32
    %38 = arith.addi %0, %c1_i32_31 : i32
    %c0_32 = arith.constant 0 : index
    %39 = arith.index_cast %38 : i32 to index
    %c1_33 = arith.constant 1 : index
    %c0_34 = arith.constant 0 : index
    %40 = vector.load %arg2[%c0_32, %39, %c1_33, %c0_34] : memref<1x6x10x128xbf16, #tpu.memory_space<vmem>>, vector<1x4x8x128xbf16>
    %41 = vector.shape_cast %40 : vector<1x4x8x128xbf16> to vector<4x8x128xbf16>
    %42 = vector.shape_cast %41 : vector<4x8x128xbf16> to vector<2x2x8x128xbf16>
    %c1_35 = arith.constant 1 : index
    %c1_36 = arith.constant 1 : index
    %c0_37 = arith.constant 0 : index
    %c0_38 = arith.constant 0 : index
    %43 = vector.load %arg3[%c1_35, %c1_36, %c0_37, %c0_38] : memref<3x3x128x128xbf16, #tpu.memory_space<vmem>>, vector<1x1x128x128xbf16>
    %44 = vector.shape_cast %43 : vector<1x1x128x128xbf16> to vector<128x128xbf16>
    %cst_39 = arith.constant dense<0.000000e+00> : vector<2x2x8x128xf32>
    %45 = tpu.matmul %42, %44, %cst_39 {dimension_numbers = #tpu.dot_dimension_numbers<[3], [0], [0, 1, 2], [1], [0, 0, 0, 1, 0, 2, 1, 1], [], []>} : vector<2x2x8x128xbf16>, vector<128x128xbf16>, vector<2x2x8x128xf32> -> vector<2x2x8x128xf32>
    %46 = arith.addf %37, %45 : vector<2x2x8x128xf32>
    %c1_i32_40 = arith.constant 1 : i32
    %47 = arith.addi %0, %c1_i32_40 : i32
    %c0_41 = arith.constant 0 : index
    %48 = arith.index_cast %47 : i32 to index
    %c2_42 = arith.constant 2 : index
    %c0_43 = arith.constant 0 : index
    %49 = vector.load %arg2[%c0_41, %48, %c2_42, %c0_43] : memref<1x6x10x128xbf16, #tpu.memory_space<vmem>>, vector<1x4x8x128xbf16>
    %50 = vector.shape_cast %49 : vector<1x4x8x128xbf16> to vector<4x8x128xbf16>
    %51 = vector.shape_cast %50 : vector<4x8x128xbf16> to vector<2x2x8x128xbf16>
    %c1_44 = arith.constant 1 : index
    %c2_45 = arith.constant 2 : index
    %c0_46 = arith.constant 0 : index
    %c0_47 = arith.constant 0 : index
    %52 = vector.load %arg3[%c1_44, %c2_45, %c0_46, %c0_47] : memref<3x3x128x128xbf16, #tpu.memory_space<vmem>>, vector<1x1x128x128xbf16>
    %53 = vector.shape_cast %52 : vector<1x1x128x128xbf16> to vector<128x128xbf16>
    %cst_48 = arith.constant dense<0.000000e+00> : vector<2x2x8x128xf32>
    %54 = tpu.matmul %51, %53, %cst_48 {dimension_numbers = #tpu.dot_dimension_numbers<[3], [0], [0, 1, 2], [1], [0, 0, 0, 1, 0, 2, 1, 1], [], []>} : vector<2x2x8x128xbf16>, vector<128x128xbf16>, vector<2x2x8x128xf32> -> vector<2x2x8x128xf32>
    %55 = arith.addf %46, %54 : vector<2x2x8x128xf32>
    %c2_i32 = arith.constant 2 : i32
    %56 = arith.addi %0, %c2_i32 : i32
    %c0_49 = arith.constant 0 : index
    %57 = arith.index_cast %56 : i32 to index
    %c0_50 = arith.constant 0 : index
    %c0_51 = arith.constant 0 : index
    %58 = vector.load %arg2[%c0_49, %57, %c0_50, %c0_51] : memref<1x6x10x128xbf16, #tpu.memory_space<vmem>>, vector<1x4x8x128xbf16>
    %59 = vector.shape_cast %58 : vector<1x4x8x128xbf16> to vector<4x8x128xbf16>
    %60 = vector.shape_cast %59 : vector<4x8x128xbf16> to vector<2x2x8x128xbf16>
    %c2_52 = arith.constant 2 : index
    %c0_53 = arith.constant 0 : index
    %c0_54 = arith.constant 0 : index
    %c0_55 = arith.constant 0 : index
    %61 = vector.load %arg3[%c2_52, %c0_53, %c0_54, %c0_55] : memref<3x3x128x128xbf16, #tpu.memory_space<vmem>>, vector<1x1x128x128xbf16>
    %62 = vector.shape_cast %61 : vector<1x1x128x128xbf16> to vector<128x128xbf16>
    %cst_56 = arith.constant dense<0.000000e+00> : vector<2x2x8x128xf32>
    %63 = tpu.matmul %60, %62, %cst_56 {dimension_numbers = #tpu.dot_dimension_numbers<[3], [0], [0, 1, 2], [1], [0, 0, 0, 1, 0, 2, 1, 1], [], []>} : vector<2x2x8x128xbf16>, vector<128x128xbf16>, vector<2x2x8x128xf32> -> vector<2x2x8x128xf32>
    %64 = arith.addf %55, %63 : vector<2x2x8x128xf32>
    %c2_i32_57 = arith.constant 2 : i32
    %65 = arith.addi %0, %c2_i32_57 : i32
    %c0_58 = arith.constant 0 : index
    %66 = arith.index_cast %65 : i32 to index
    %c1_59 = arith.constant 1 : index
    %c0_60 = arith.constant 0 : index
    %67 = vector.load %arg2[%c0_58, %66, %c1_59, %c0_60] : memref<1x6x10x128xbf16, #tpu.memory_space<vmem>>, vector<1x4x8x128xbf16>
    %68 = vector.shape_cast %67 : vector<1x4x8x128xbf16> to vector<4x8x128xbf16>
    %69 = vector.shape_cast %68 : vector<4x8x128xbf16> to vector<2x2x8x128xbf16>
    %c2_61 = arith.constant 2 : index
    %c1_62 = arith.constant 1 : index
    %c0_63 = arith.constant 0 : index
    %c0_64 = arith.constant 0 : index
    %70 = vector.load %arg3[%c2_61, %c1_62, %c0_63, %c0_64] : memref<3x3x128x128xbf16, #tpu.memory_space<vmem>>, vector<1x1x128x128xbf16>
    %71 = vector.shape_cast %70 : vector<1x1x128x128xbf16> to vector<128x128xbf16>
    %cst_65 = arith.constant dense<0.000000e+00> : vector<2x2x8x128xf32>
    %72 = tpu.matmul %69, %71, %cst_65 {dimension_numbers = #tpu.dot_dimension_numbers<[3], [0], [0, 1, 2], [1], [0, 0, 0, 1, 0, 2, 1, 1], [], []>} : vector<2x2x8x128xbf16>, vector<128x128xbf16>, vector<2x2x8x128xf32> -> vector<2x2x8x128xf32>
    %73 = arith.addf %64, %72 : vector<2x2x8x128xf32>
    %c2_i32_66 = arith.constant 2 : i32
    %74 = arith.addi %0, %c2_i32_66 : i32
    %c0_67 = arith.constant 0 : index
    %75 = arith.index_cast %74 : i32 to index
    %c2_68 = arith.constant 2 : index
    %c0_69 = arith.constant 0 : index
    %76 = vector.load %arg2[%c0_67, %75, %c2_68, %c0_69] : memref<1x6x10x128xbf16, #tpu.memory_space<vmem>>, vector<1x4x8x128xbf16>
    %77 = vector.shape_cast %76 : vector<1x4x8x128xbf16> to vector<4x8x128xbf16>
    %78 = vector.shape_cast %77 : vector<4x8x128xbf16> to vector<2x2x8x128xbf16>
    %c2_70 = arith.constant 2 : index
    %c2_71 = arith.constant 2 : index
    %c0_72 = arith.constant 0 : index
    %c0_73 = arith.constant 0 : index
    %79 = vector.load %arg3[%c2_70, %c2_71, %c0_72, %c0_73] : memref<3x3x128x128xbf16, #tpu.memory_space<vmem>>, vector<1x1x128x128xbf16>
    %80 = vector.shape_cast %79 : vector<1x1x128x128xbf16> to vector<128x128xbf16>
    %cst_74 = arith.constant dense<0.000000e+00> : vector<2x2x8x128xf32>
    %81 = tpu.matmul %78, %80, %cst_74 {dimension_numbers = #tpu.dot_dimension_numbers<[3], [0], [0, 1, 2], [1], [0, 0, 0, 1, 0, 2, 1, 1], [], []>} : vector<2x2x8x128xbf16>, vector<128x128xbf16>, vector<2x2x8x128xf32> -> vector<2x2x8x128xf32>
    %82 = arith.addf %73, %81 : vector<2x2x8x128xf32>
    %c0_75 = arith.constant 0 : index
    %c0_76 = arith.constant 0 : index
    %83 = vector.load %arg4[%c0_75, %c0_76] : memref<1x128xf32, #tpu.memory_space<vmem>>, vector<1x128xf32>
    %84 = vector.shape_cast %83 : vector<1x128xf32> to vector<1x1x1x128xf32>
    %85 = vector.broadcast %84 : vector<1x1x1x128xf32> to vector<2x2x8x128xf32>
    %86 = arith.mulf %82, %85 : vector<2x2x8x128xf32>
    %c0_77 = arith.constant 0 : index
    %c0_78 = arith.constant 0 : index
    %87 = vector.load %arg5[%c0_77, %c0_78] : memref<1x128xf32, #tpu.memory_space<vmem>>, vector<1x128xf32>
    %88 = vector.shape_cast %87 : vector<1x128xf32> to vector<1x1x1x128xf32>
    %89 = vector.broadcast %88 : vector<1x1x1x128xf32> to vector<2x2x8x128xf32>
    %90 = arith.addf %86, %89 : vector<2x2x8x128xf32>
    %cst_79 = arith.constant 0.000000e+00 : f32
    %91 = vector.broadcast %cst_79 : f32 to vector<2x2x8x128xf32>
    %92 = arith.maximumf %90, %91 : vector<2x2x8x128xf32>
    %cst_80 = arith.constant dense<0xFF800000> : vector<2x8x128xf32>
    %93 = vector.multi_reduction <maximumf>, %92, %cst_80 [1] : vector<2x2x8x128xf32> to vector<2x8x128xf32>
    %c0_81 = arith.constant 0 : index
    %c0_82 = arith.constant 0 : index
    %c0_83 = arith.constant 0 : index
    %94 = vector.load %arg7[%c0_81, %c0_82, %c0_83] : memref<2x8x128xf32, #tpu.memory_space<vmem>>, vector<2x8x128xf32>
    tpu.vector_store %arg7[%c0_81, %c0_82, %c0_83], %93 {strides = array<i32>} : memref<2x8x128xf32, #tpu.memory_space<vmem>>, vector<2x8x128xf32>,
    %c0_84 = arith.constant 0 : index
    %c0_85 = arith.constant 0 : index
    %c0_86 = arith.constant 0 : index
    %95 = tpu.strided_load %arg7[%c0_84, %c0_85, %c0_86] {strides = array<i32: 1, 2, 1>} : memref<2x8x128xf32, #tpu.memory_space<vmem>>, vector<2x4x128xf32>
    %c0_87 = arith.constant 0 : index
    %c1_88 = arith.constant 1 : index
    %c0_89 = arith.constant 0 : index
    %96 = tpu.strided_load %arg7[%c0_87, %c1_88, %c0_89] {strides = array<i32: 1, 2, 1>} : memref<2x8x128xf32, #tpu.memory_space<vmem>>, vector<2x4x128xf32>
    %97 = arith.maximumf %95, %96 : vector<2x4x128xf32>
    %98 = arith.truncf %97 : vector<2x4x128xf32> to vector<2x4x128xbf16>
    %c0_90 = arith.constant 0 : index
    %c0_91 = arith.constant 0 : index
    %c0_92 = arith.constant 0 : index
    %c0_93 = arith.constant 0 : index
    %99 = vector.load %arg6[%c0_90, %c0_91, %c0_92, %c0_93] : memref<1x2x4x128xbf16, #tpu.memory_space<vmem>>, vector<1x2x4x128xbf16>
    %100 = vector.shape_cast %99 : vector<1x2x4x128xbf16> to vector<2x4x128xbf16>
    %101 = vector.shape_cast %98 : vector<2x4x128xbf16> to vector<1x2x4x128xbf16>
    tpu.vector_store %arg6[%c0_90, %c0_91, %c0_92, %c0_93], %101 {strides = array<i32>} : memref<1x2x4x128xbf16, #tpu.memory_space<vmem>>, vector<1x2x4x128xbf16>,
    return
  }
  func.func @transform_0(%arg0: i32, %arg1: i32) -> (i32, i32, i32, i32) {
    %c0_i32 = arith.constant 0 : i32
    %c0_i32_0 = arith.constant 0 : i32
    %c0_i32_1 = arith.constant 0 : i32
    %c0_i32_2 = arith.constant 0 : i32
    return %arg0, %c0_i32, %c0_i32_0, %c0_i32_1 : i32, i32, i32, i32
  }
  func.func @transform_1(%arg0: i32, %arg1: i32) -> (i32, i32, i32, i32) {
    %c0_i32 = arith.constant 0 : i32
    %c0_i32_0 = arith.constant 0 : i32
    %c0_i32_1 = arith.constant 0 : i32
    %c0_i32_2 = arith.constant 0 : i32
    %c0_i32_3 = arith.constant 0 : i32
    return %c0_i32, %c0_i32_0, %c0_i32_1, %c0_i32_2 : i32, i32, i32, i32
  }
  func.func @transform_2(%arg0: i32, %arg1: i32) -> (i32, i32) {
    %c0_i32 = arith.constant 0 : i32
    %c0_i32_0 = arith.constant 0 : i32
    %c0_i32_1 = arith.constant 0 : i32
    return %c0_i32, %c0_i32_0 : i32, i32
  }
  func.func @transform_3(%arg0: i32, %arg1: i32) -> (i32, i32) {
    %c0_i32 = arith.constant 0 : i32
    %c0_i32_0 = arith.constant 0 : i32
    %c0_i32_1 = arith.constant 0 : i32
    return %c0_i32, %c0_i32_0 : i32, i32
  }
  func.func @transform_4(%arg0: i32, %arg1: i32) -> (i32, i32, i32, i32) {
    %c0_i32 = arith.constant 0 : i32
    %c0_i32_0 = arith.constant 0 : i32
    %c0_i32_1 = arith.constant 0 : i32
    return %arg0, %arg1, %c0_i32, %c0_i32_0 : i32, i32, i32, i32
  }
}

module attributes {stable_mosaic.version = 11 : i64} {
  func.func @_bilstm_dir_kernel(%arg0: i32, %arg1: memref<1x2x4x128xf32, #tpu.memory_space<vmem>>, %arg2: memref<1x32x128xbf16, #tpu.memory_space<vmem>>, %arg3: memref<1x2x4x32xbf16, #tpu.memory_space<vmem>>, %arg4: memref<1x2x32xf32, #tpu.memory_space<vmem>>, %arg5: memref<2x4x32xf32, #tpu.memory_space<vmem>>) attributes {dimension_semantics = [#tpu.dimension_semantics<parallel>], iteration_bounds = array<i64: 2>, scalar_prefetch = 0 : i64, scratch_operands = 1 : i64, tpu.core_type = #tpu.core_type<tc>, window_params = [{transform_indices = @transform_0, window_bounds = array<i64: 1, 2, 4, 128>}, {transform_indices = @transform_1, window_bounds = array<i64: 1, 32, 128>}, {transform_indices = @transform_2, window_bounds = array<i64: 1, 2, 4, 32>}, {transform_indices = @transform_3, window_bounds = array<i64: 1, 2, 32>}]} {
    %c0 = arith.constant 0 : index
    %c0_0 = arith.constant 0 : index
    %c0_1 = arith.constant 0 : index
    %0 = vector.load %arg2[%c0, %c0_0, %c0_1] : memref<1x32x128xbf16, #tpu.memory_space<vmem>>, vector<1x32x128xbf16>
    %1 = vector.shape_cast %0 : vector<1x32x128xbf16> to vector<32x128xbf16>
    %cst = arith.constant 0.000000e+00 : f32
    %2 = vector.broadcast %cst : f32 to vector<2x32xf32>
    %cst_2 = arith.constant 0.000000e+00 : f32
    %3 = vector.broadcast %cst_2 : f32 to vector<2x32xf32>
    %cst_3 = arith.constant 0.000000e+00 : f32
    %4 = vector.broadcast %cst_3 : f32 to vector<2x32xf32>
    %c3_i32 = arith.constant 3 : i32
    %5 = arith.muli %arg0, %c3_i32 : i32
    %c0_i32 = arith.constant 0 : i32
    %6 = arith.addi %c0_i32, %5 : i32
    %c0_4 = arith.constant 0 : index
    %c0_5 = arith.constant 0 : index
    %7 = arith.index_cast %6 : i32 to index
    %c0_6 = arith.constant 0 : index
    %8 = vector.load %arg1[%c0_4, %c0_5, %7, %c0_6] : memref<1x2x4x128xf32, #tpu.memory_space<vmem>>, vector<1x2x1x128xf32>
    %9 = vector.shape_cast %8 : vector<1x2x1x128xf32> to vector<2x128xf32>
    %10 = arith.truncf %2 : vector<2x32xf32> to vector<2x32xbf16>
    %cst_7 = arith.constant dense<0.000000e+00> : vector<2x128xf32>
    %11 = tpu.matmul %10, %1, %cst_7 {dimension_numbers = #tpu.dot_dimension_numbers<[1], [0], [0], [1], [0, 0, 1, 1], [], []>} : vector<2x32xbf16>, vector<32x128xbf16>, vector<2x128xf32> -> vector<2x128xf32>
    %12 = arith.addf %9, %11 : vector<2x128xf32>
    %13 = vector.extract_strided_slice %12 {offsets = [0, 0], sizes = [2, 32], strides = [1, 1]} : vector<2x128xf32> to vector<2x32xf32>
    %14 = arith.negf %13 : vector<2x32xf32>
    %15 = math.exp %14 : vector<2x32xf32>
    %cst_8 = arith.constant 1.000000e+00 : f32
    %16 = vector.broadcast %cst_8 : f32 to vector<2x32xf32>
    %17 = arith.addf %16, %15 : vector<2x32xf32>
    %18 = arith.divf %16, %17 : vector<2x32xf32>
    %19 = vector.extract_strided_slice %12 {offsets = [0, 32], sizes = [2, 32], strides = [1, 1]} : vector<2x128xf32> to vector<2x32xf32>
    %20 = arith.negf %19 : vector<2x32xf32>
    %21 = math.exp %20 : vector<2x32xf32>
    %cst_9 = arith.constant 1.000000e+00 : f32
    %22 = vector.broadcast %cst_9 : f32 to vector<2x32xf32>
    %23 = arith.addf %22, %21 : vector<2x32xf32>
    %24 = arith.divf %22, %23 : vector<2x32xf32>
    %25 = vector.extract_strided_slice %12 {offsets = [0, 64], sizes = [2, 32], strides = [1, 1]} : vector<2x128xf32> to vector<2x32xf32>
    %26 = math.tanh %25 : vector<2x32xf32>
    %27 = vector.extract_strided_slice %12 {offsets = [0, 96], sizes = [2, 32], strides = [1, 1]} : vector<2x128xf32> to vector<2x32xf32>
    %28 = arith.negf %27 : vector<2x32xf32>
    %29 = math.exp %28 : vector<2x32xf32>
    %cst_10 = arith.constant 1.000000e+00 : f32
    %30 = vector.broadcast %cst_10 : f32 to vector<2x32xf32>
    %31 = arith.addf %30, %29 : vector<2x32xf32>
    %32 = arith.divf %30, %31 : vector<2x32xf32>
    %33 = arith.mulf %24, %3 : vector<2x32xf32>
    %34 = arith.mulf %18, %26 : vector<2x32xf32>
    %35 = arith.addf %33, %34 : vector<2x32xf32>
    %36 = math.tanh %35 : vector<2x32xf32>
    %37 = arith.mulf %32, %36 : vector<2x32xf32>
    %38 = arith.addf %4, %37 : vector<2x32xf32>
    %c0_11 = arith.constant 0 : index
    %39 = arith.index_cast %6 : i32 to index
    %c0_12 = arith.constant 0 : index
    %40 = vector.load %arg5[%c0_11, %39, %c0_12] : memref<2x4x32xf32, #tpu.memory_space<vmem>>, vector<2x1x32xf32>
    %41 = vector.shape_cast %40 : vector<2x1x32xf32> to vector<2x32xf32>
    %42 = vector.shape_cast %37 : vector<2x32xf32> to vector<2x1x32xf32>
    tpu.vector_store %arg5[%c0_11, %39, %c0_12], %42 {strides = array<i32>} : memref<2x4x32xf32, #tpu.memory_space<vmem>>, vector<2x1x32xf32>,
    %c1_i32 = arith.constant 1 : i32
    %43 = arith.muli %arg0, %c1_i32 : i32
    %c1_i32_13 = arith.constant 1 : i32
    %44 = arith.addi %c1_i32_13, %43 : i32
    %c0_14 = arith.constant 0 : index
    %c0_15 = arith.constant 0 : index
    %45 = arith.index_cast %44 : i32 to index
    %c0_16 = arith.constant 0 : index
    %46 = vector.load %arg1[%c0_14, %c0_15, %45, %c0_16] : memref<1x2x4x128xf32, #tpu.memory_space<vmem>>, vector<1x2x1x128xf32>
    %47 = vector.shape_cast %46 : vector<1x2x1x128xf32> to vector<2x128xf32>
    %48 = arith.truncf %37 : vector<2x32xf32> to vector<2x32xbf16>
    %cst_17 = arith.constant dense<0.000000e+00> : vector<2x128xf32>
    %49 = tpu.matmul %48, %1, %cst_17 {dimension_numbers = #tpu.dot_dimension_numbers<[1], [0], [0], [1], [0, 0, 1, 1], [], []>} : vector<2x32xbf16>, vector<32x128xbf16>, vector<2x128xf32> -> vector<2x128xf32>
    %50 = arith.addf %47, %49 : vector<2x128xf32>
    %51 = vector.extract_strided_slice %50 {offsets = [0, 0], sizes = [2, 32], strides = [1, 1]} : vector<2x128xf32> to vector<2x32xf32>
    %52 = arith.negf %51 : vector<2x32xf32>
    %53 = math.exp %52 : vector<2x32xf32>
    %cst_18 = arith.constant 1.000000e+00 : f32
    %54 = vector.broadcast %cst_18 : f32 to vector<2x32xf32>
    %55 = arith.addf %54, %53 : vector<2x32xf32>
    %56 = arith.divf %54, %55 : vector<2x32xf32>
    %57 = vector.extract_strided_slice %50 {offsets = [0, 32], sizes = [2, 32], strides = [1, 1]} : vector<2x128xf32> to vector<2x32xf32>
    %58 = arith.negf %57 : vector<2x32xf32>
    %59 = math.exp %58 : vector<2x32xf32>
    %cst_19 = arith.constant 1.000000e+00 : f32
    %60 = vector.broadcast %cst_19 : f32 to vector<2x32xf32>
    %61 = arith.addf %60, %59 : vector<2x32xf32>
    %62 = arith.divf %60, %61 : vector<2x32xf32>
    %63 = vector.extract_strided_slice %50 {offsets = [0, 64], sizes = [2, 32], strides = [1, 1]} : vector<2x128xf32> to vector<2x32xf32>
    %64 = math.tanh %63 : vector<2x32xf32>
    %65 = vector.extract_strided_slice %50 {offsets = [0, 96], sizes = [2, 32], strides = [1, 1]} : vector<2x128xf32> to vector<2x32xf32>
    %66 = arith.negf %65 : vector<2x32xf32>
    %67 = math.exp %66 : vector<2x32xf32>
    %cst_20 = arith.constant 1.000000e+00 : f32
    %68 = vector.broadcast %cst_20 : f32 to vector<2x32xf32>
    %69 = arith.addf %68, %67 : vector<2x32xf32>
    %70 = arith.divf %68, %69 : vector<2x32xf32>
    %71 = arith.mulf %62, %35 : vector<2x32xf32>
    %72 = arith.mulf %56, %64 : vector<2x32xf32>
    %73 = arith.addf %71, %72 : vector<2x32xf32>
    %74 = math.tanh %73 : vector<2x32xf32>
    %75 = arith.mulf %70, %74 : vector<2x32xf32>
    %76 = arith.addf %38, %75 : vector<2x32xf32>
    %c0_21 = arith.constant 0 : index
    %77 = arith.index_cast %44 : i32 to index
    %c0_22 = arith.constant 0 : index
    %78 = vector.load %arg5[%c0_21, %77, %c0_22] : memref<2x4x32xf32, #tpu.memory_space<vmem>>, vector<2x1x32xf32>
    %79 = vector.shape_cast %78 : vector<2x1x32xf32> to vector<2x32xf32>
    %80 = vector.shape_cast %75 : vector<2x32xf32> to vector<2x1x32xf32>
    tpu.vector_store %arg5[%c0_21, %77, %c0_22], %80 {strides = array<i32>} : memref<2x4x32xf32, #tpu.memory_space<vmem>>, vector<2x1x32xf32>,
    %c-1_i32 = arith.constant -1 : i32
    %81 = arith.muli %arg0, %c-1_i32 : i32
    %c2_i32 = arith.constant 2 : i32
    %82 = arith.addi %c2_i32, %81 : i32
    %c0_23 = arith.constant 0 : index
    %c0_24 = arith.constant 0 : index
    %83 = arith.index_cast %82 : i32 to index
    %c0_25 = arith.constant 0 : index
    %84 = vector.load %arg1[%c0_23, %c0_24, %83, %c0_25] : memref<1x2x4x128xf32, #tpu.memory_space<vmem>>, vector<1x2x1x128xf32>
    %85 = vector.shape_cast %84 : vector<1x2x1x128xf32> to vector<2x128xf32>
    %86 = arith.truncf %75 : vector<2x32xf32> to vector<2x32xbf16>
    %cst_26 = arith.constant dense<0.000000e+00> : vector<2x128xf32>
    %87 = tpu.matmul %86, %1, %cst_26 {dimension_numbers = #tpu.dot_dimension_numbers<[1], [0], [0], [1], [0, 0, 1, 1], [], []>} : vector<2x32xbf16>, vector<32x128xbf16>, vector<2x128xf32> -> vector<2x128xf32>
    %88 = arith.addf %85, %87 : vector<2x128xf32>
    %89 = vector.extract_strided_slice %88 {offsets = [0, 0], sizes = [2, 32], strides = [1, 1]} : vector<2x128xf32> to vector<2x32xf32>
    %90 = arith.negf %89 : vector<2x32xf32>
    %91 = math.exp %90 : vector<2x32xf32>
    %cst_27 = arith.constant 1.000000e+00 : f32
    %92 = vector.broadcast %cst_27 : f32 to vector<2x32xf32>
    %93 = arith.addf %92, %91 : vector<2x32xf32>
    %94 = arith.divf %92, %93 : vector<2x32xf32>
    %95 = vector.extract_strided_slice %88 {offsets = [0, 32], sizes = [2, 32], strides = [1, 1]} : vector<2x128xf32> to vector<2x32xf32>
    %96 = arith.negf %95 : vector<2x32xf32>
    %97 = math.exp %96 : vector<2x32xf32>
    %cst_28 = arith.constant 1.000000e+00 : f32
    %98 = vector.broadcast %cst_28 : f32 to vector<2x32xf32>
    %99 = arith.addf %98, %97 : vector<2x32xf32>
    %100 = arith.divf %98, %99 : vector<2x32xf32>
    %101 = vector.extract_strided_slice %88 {offsets = [0, 64], sizes = [2, 32], strides = [1, 1]} : vector<2x128xf32> to vector<2x32xf32>
    %102 = math.tanh %101 : vector<2x32xf32>
    %103 = vector.extract_strided_slice %88 {offsets = [0, 96], sizes = [2, 32], strides = [1, 1]} : vector<2x128xf32> to vector<2x32xf32>
    %104 = arith.negf %103 : vector<2x32xf32>
    %105 = math.exp %104 : vector<2x32xf32>
    %cst_29 = arith.constant 1.000000e+00 : f32
    %106 = vector.broadcast %cst_29 : f32 to vector<2x32xf32>
    %107 = arith.addf %106, %105 : vector<2x32xf32>
    %108 = arith.divf %106, %107 : vector<2x32xf32>
    %109 = arith.mulf %100, %73 : vector<2x32xf32>
    %110 = arith.mulf %94, %102 : vector<2x32xf32>
    %111 = arith.addf %109, %110 : vector<2x32xf32>
    %112 = math.tanh %111 : vector<2x32xf32>
    %113 = arith.mulf %108, %112 : vector<2x32xf32>
    %114 = arith.addf %76, %113 : vector<2x32xf32>
    %c0_30 = arith.constant 0 : index
    %115 = arith.index_cast %82 : i32 to index
    %c0_31 = arith.constant 0 : index
    %116 = vector.load %arg5[%c0_30, %115, %c0_31] : memref<2x4x32xf32, #tpu.memory_space<vmem>>, vector<2x1x32xf32>
    %117 = vector.shape_cast %116 : vector<2x1x32xf32> to vector<2x32xf32>
    %118 = vector.shape_cast %113 : vector<2x32xf32> to vector<2x1x32xf32>
    tpu.vector_store %arg5[%c0_30, %115, %c0_31], %118 {strides = array<i32>} : memref<2x4x32xf32, #tpu.memory_space<vmem>>, vector<2x1x32xf32>,
    %c-3_i32 = arith.constant -3 : i32
    %119 = arith.muli %arg0, %c-3_i32 : i32
    %c3_i32_32 = arith.constant 3 : i32
    %120 = arith.addi %c3_i32_32, %119 : i32
    %c0_33 = arith.constant 0 : index
    %c0_34 = arith.constant 0 : index
    %121 = arith.index_cast %120 : i32 to index
    %c0_35 = arith.constant 0 : index
    %122 = vector.load %arg1[%c0_33, %c0_34, %121, %c0_35] : memref<1x2x4x128xf32, #tpu.memory_space<vmem>>, vector<1x2x1x128xf32>
    %123 = vector.shape_cast %122 : vector<1x2x1x128xf32> to vector<2x128xf32>
    %124 = arith.truncf %113 : vector<2x32xf32> to vector<2x32xbf16>
    %cst_36 = arith.constant dense<0.000000e+00> : vector<2x128xf32>
    %125 = tpu.matmul %124, %1, %cst_36 {dimension_numbers = #tpu.dot_dimension_numbers<[1], [0], [0], [1], [0, 0, 1, 1], [], []>} : vector<2x32xbf16>, vector<32x128xbf16>, vector<2x128xf32> -> vector<2x128xf32>
    %126 = arith.addf %123, %125 : vector<2x128xf32>
    %127 = vector.extract_strided_slice %126 {offsets = [0, 0], sizes = [2, 32], strides = [1, 1]} : vector<2x128xf32> to vector<2x32xf32>
    %128 = arith.negf %127 : vector<2x32xf32>
    %129 = math.exp %128 : vector<2x32xf32>
    %cst_37 = arith.constant 1.000000e+00 : f32
    %130 = vector.broadcast %cst_37 : f32 to vector<2x32xf32>
    %131 = arith.addf %130, %129 : vector<2x32xf32>
    %132 = arith.divf %130, %131 : vector<2x32xf32>
    %133 = vector.extract_strided_slice %126 {offsets = [0, 32], sizes = [2, 32], strides = [1, 1]} : vector<2x128xf32> to vector<2x32xf32>
    %134 = arith.negf %133 : vector<2x32xf32>
    %135 = math.exp %134 : vector<2x32xf32>
    %cst_38 = arith.constant 1.000000e+00 : f32
    %136 = vector.broadcast %cst_38 : f32 to vector<2x32xf32>
    %137 = arith.addf %136, %135 : vector<2x32xf32>
    %138 = arith.divf %136, %137 : vector<2x32xf32>
    %139 = vector.extract_strided_slice %126 {offsets = [0, 64], sizes = [2, 32], strides = [1, 1]} : vector<2x128xf32> to vector<2x32xf32>
    %140 = math.tanh %139 : vector<2x32xf32>
    %141 = vector.extract_strided_slice %126 {offsets = [0, 96], sizes = [2, 32], strides = [1, 1]} : vector<2x128xf32> to vector<2x32xf32>
    %142 = arith.negf %141 : vector<2x32xf32>
    %143 = math.exp %142 : vector<2x32xf32>
    %cst_39 = arith.constant 1.000000e+00 : f32
    %144 = vector.broadcast %cst_39 : f32 to vector<2x32xf32>
    %145 = arith.addf %144, %143 : vector<2x32xf32>
    %146 = arith.divf %144, %145 : vector<2x32xf32>
    %147 = arith.mulf %138, %111 : vector<2x32xf32>
    %148 = arith.mulf %132, %140 : vector<2x32xf32>
    %149 = arith.addf %147, %148 : vector<2x32xf32>
    %150 = math.tanh %149 : vector<2x32xf32>
    %151 = arith.mulf %146, %150 : vector<2x32xf32>
    %152 = arith.addf %114, %151 : vector<2x32xf32>
    %c0_40 = arith.constant 0 : index
    %153 = arith.index_cast %120 : i32 to index
    %c0_41 = arith.constant 0 : index
    %154 = vector.load %arg5[%c0_40, %153, %c0_41] : memref<2x4x32xf32, #tpu.memory_space<vmem>>, vector<2x1x32xf32>
    %155 = vector.shape_cast %154 : vector<2x1x32xf32> to vector<2x32xf32>
    %156 = vector.shape_cast %151 : vector<2x32xf32> to vector<2x1x32xf32>
    tpu.vector_store %arg5[%c0_40, %153, %c0_41], %156 {strides = array<i32>} : memref<2x4x32xf32, #tpu.memory_space<vmem>>, vector<2x1x32xf32>,
    %c0_42 = arith.constant 0 : index
    %c0_43 = arith.constant 0 : index
    %c0_44 = arith.constant 0 : index
    %157 = vector.load %arg5[%c0_42, %c0_43, %c0_44] : memref<2x4x32xf32, #tpu.memory_space<vmem>>, vector<2x4x32xf32>
    %158 = arith.truncf %157 : vector<2x4x32xf32> to vector<2x4x32xbf16>
    %c0_45 = arith.constant 0 : index
    %c0_46 = arith.constant 0 : index
    %c0_47 = arith.constant 0 : index
    %c0_48 = arith.constant 0 : index
    %159 = vector.load %arg3[%c0_45, %c0_46, %c0_47, %c0_48] : memref<1x2x4x32xbf16, #tpu.memory_space<vmem>>, vector<1x2x4x32xbf16>
    %160 = vector.shape_cast %159 : vector<1x2x4x32xbf16> to vector<2x4x32xbf16>
    %161 = vector.shape_cast %158 : vector<2x4x32xbf16> to vector<1x2x4x32xbf16>
    tpu.vector_store %arg3[%c0_45, %c0_46, %c0_47, %c0_48], %161 {strides = array<i32>} : memref<1x2x4x32xbf16, #tpu.memory_space<vmem>>, vector<1x2x4x32xbf16>,
    %cst_49 = arith.constant 2.500000e-01 : f32
    %162 = vector.broadcast %cst_49 : f32 to vector<2x32xf32>
    %163 = arith.mulf %152, %162 : vector<2x32xf32>
    %c0_50 = arith.constant 0 : index
    %c0_51 = arith.constant 0 : index
    %c0_52 = arith.constant 0 : index
    %164 = vector.load %arg4[%c0_50, %c0_51, %c0_52] : memref<1x2x32xf32, #tpu.memory_space<vmem>>, vector<1x2x32xf32>
    %165 = vector.shape_cast %164 : vector<1x2x32xf32> to vector<2x32xf32>
    %166 = vector.shape_cast %163 : vector<2x32xf32> to vector<1x2x32xf32>
    tpu.vector_store %arg4[%c0_50, %c0_51, %c0_52], %166 {strides = array<i32>} : memref<1x2x32xf32, #tpu.memory_space<vmem>>, vector<1x2x32xf32>,
    return
  }
  func.func @transform_0(%arg0: i32) -> (i32, i32, i32, i32) {
    %c0_i32 = arith.constant 0 : i32
    %c0_i32_0 = arith.constant 0 : i32
    %c0_i32_1 = arith.constant 0 : i32
    %c0_i32_2 = arith.constant 0 : i32
    return %arg0, %c0_i32, %c0_i32_0, %c0_i32_1 : i32, i32, i32, i32
  }
  func.func @transform_1(%arg0: i32) -> (i32, i32, i32) {
    %c0_i32 = arith.constant 0 : i32
    %c0_i32_0 = arith.constant 0 : i32
    %c0_i32_1 = arith.constant 0 : i32
    return %arg0, %c0_i32, %c0_i32_0 : i32, i32, i32
  }
  func.func @transform_2(%arg0: i32) -> (i32, i32, i32, i32) {
    %c0_i32 = arith.constant 0 : i32
    %c0_i32_0 = arith.constant 0 : i32
    %c0_i32_1 = arith.constant 0 : i32
    %c0_i32_2 = arith.constant 0 : i32
    return %arg0, %c0_i32, %c0_i32_0, %c0_i32_1 : i32, i32, i32, i32
  }
  func.func @transform_3(%arg0: i32) -> (i32, i32, i32) {
    %c0_i32 = arith.constant 0 : i32
    %c0_i32_0 = arith.constant 0 : i32
    %c0_i32_1 = arith.constant 0 : i32
    return %arg0, %c0_i32, %c0_i32_0 : i32, i32, i32
  }
}

module attributes {stable_mosaic.version = 11 : i64} {
  func.func @_proj_kernel(%arg0: i32, %arg1: memref<1x8x256xbf16, #tpu.memory_space<vmem>>, %arg2: memref<1x2x256x128xbf16, #tpu.memory_space<vmem>>, %arg3: memref<2x1x128xf32, #tpu.memory_space<vmem>>, %arg4: memref<2x8x128xf32, #tpu.memory_space<vmem>>) attributes {dimension_semantics = [#tpu.dimension_semantics<parallel>], iteration_bounds = array<i64: 1>, scalar_prefetch = 0 : i64, scratch_operands = 0 : i64, tpu.core_type = #tpu.core_type<tc>, window_params = [{transform_indices = @transform_0, window_bounds = array<i64: 1, 8, 256>}, {pipeline_mode = #tpu.pipeline_mode<synchronous>, transform_indices = @transform_1, window_bounds = array<i64: 1, 2, 256, 128>}, {pipeline_mode = #tpu.pipeline_mode<synchronous>, transform_indices = @transform_2, window_bounds = array<i64: 2, 1, 128>}, {transform_indices = @transform_3, window_bounds = array<i64: 2, 8, 128>}]} {
    %cst = arith.constant 0.000000e+00 : f32
    %0 = vector.broadcast %cst : f32 to vector<8x128xf32>
    %c0 = arith.constant 0 : index
    %c0_0 = arith.constant 0 : index
    %c0_1 = arith.constant 0 : index
    %1 = vector.load %arg1[%c0, %c0_0, %c0_1] : memref<1x8x256xbf16, #tpu.memory_space<vmem>>, vector<1x8x256xbf16>
    %2 = vector.shape_cast %1 : vector<1x8x256xbf16> to vector<8x256xbf16>
    %c0_2 = arith.constant 0 : index
    %c0_3 = arith.constant 0 : index
    %c0_4 = arith.constant 0 : index
    %c0_5 = arith.constant 0 : index
    %3 = vector.load %arg2[%c0_2, %c0_3, %c0_4, %c0_5] : memref<1x2x256x128xbf16, #tpu.memory_space<vmem>>, vector<1x1x256x128xbf16>
    %4 = vector.shape_cast %3 : vector<1x1x256x128xbf16> to vector<256x128xbf16>
    %cst_6 = arith.constant dense<0.000000e+00> : vector<8x128xf32>
    %5 = tpu.matmul %2, %4, %cst_6 {dimension_numbers = #tpu.dot_dimension_numbers<[1], [0], [0], [1], [0, 0, 1, 1], [], []>} : vector<8x256xbf16>, vector<256x128xbf16>, vector<8x128xf32> -> vector<8x128xf32>
    %6 = arith.addf %0, %5 : vector<8x128xf32>
    %c0_7 = arith.constant 0 : index
    %c0_8 = arith.constant 0 : index
    %c0_9 = arith.constant 0 : index
    %7 = vector.load %arg3[%c0_7, %c0_8, %c0_9] : memref<2x1x128xf32, #tpu.memory_space<vmem>>, vector<1x1x128xf32>
    %8 = vector.shape_cast %7 : vector<1x1x128xf32> to vector<1x128xf32>
    %9 = vector.broadcast %8 : vector<1x128xf32> to vector<8x128xf32>
    %10 = arith.addf %6, %9 : vector<8x128xf32>
    %c0_10 = arith.constant 0 : index
    %c0_11 = arith.constant 0 : index
    %c0_12 = arith.constant 0 : index
    %11 = vector.load %arg4[%c0_10, %c0_11, %c0_12] : memref<2x8x128xf32, #tpu.memory_space<vmem>>, vector<1x8x128xf32>
    %12 = vector.shape_cast %11 : vector<1x8x128xf32> to vector<8x128xf32>
    %13 = vector.shape_cast %10 : vector<8x128xf32> to vector<1x8x128xf32>
    tpu.vector_store %arg4[%c0_10, %c0_11, %c0_12], %13 {strides = array<i32>} : memref<2x8x128xf32, #tpu.memory_space<vmem>>, vector<1x8x128xf32>,
    %cst_13 = arith.constant 0.000000e+00 : f32
    %14 = vector.broadcast %cst_13 : f32 to vector<8x128xf32>
    %c0_14 = arith.constant 0 : index
    %c0_15 = arith.constant 0 : index
    %c0_16 = arith.constant 0 : index
    %15 = vector.load %arg1[%c0_14, %c0_15, %c0_16] : memref<1x8x256xbf16, #tpu.memory_space<vmem>>, vector<1x8x256xbf16>
    %16 = vector.shape_cast %15 : vector<1x8x256xbf16> to vector<8x256xbf16>
    %c0_17 = arith.constant 0 : index
    %c1 = arith.constant 1 : index
    %c0_18 = arith.constant 0 : index
    %c0_19 = arith.constant 0 : index
    %17 = vector.load %arg2[%c0_17, %c1, %c0_18, %c0_19] : memref<1x2x256x128xbf16, #tpu.memory_space<vmem>>, vector<1x1x256x128xbf16>
    %18 = vector.shape_cast %17 : vector<1x1x256x128xbf16> to vector<256x128xbf16>
    %cst_20 = arith.constant dense<0.000000e+00> : vector<8x128xf32>
    %19 = tpu.matmul %16, %18, %cst_20 {dimension_numbers = #tpu.dot_dimension_numbers<[1], [0], [0], [1], [0, 0, 1, 1], [], []>} : vector<8x256xbf16>, vector<256x128xbf16>, vector<8x128xf32> -> vector<8x128xf32>
    %20 = arith.addf %14, %19 : vector<8x128xf32>
    %c1_21 = arith.constant 1 : index
    %c0_22 = arith.constant 0 : index
    %c0_23 = arith.constant 0 : index
    %21 = vector.load %arg3[%c1_21, %c0_22, %c0_23] : memref<2x1x128xf32, #tpu.memory_space<vmem>>, vector<1x1x128xf32>
    %22 = vector.shape_cast %21 : vector<1x1x128xf32> to vector<1x128xf32>
    %23 = vector.broadcast %22 : vector<1x128xf32> to vector<8x128xf32>
    %24 = arith.addf %20, %23 : vector<8x128xf32>
    %c1_24 = arith.constant 1 : index
    %c0_25 = arith.constant 0 : index
    %c0_26 = arith.constant 0 : index
    %25 = vector.load %arg4[%c1_24, %c0_25, %c0_26] : memref<2x8x128xf32, #tpu.memory_space<vmem>>, vector<1x8x128xf32>
    %26 = vector.shape_cast %25 : vector<1x8x128xf32> to vector<8x128xf32>
    %27 = vector.shape_cast %24 : vector<8x128xf32> to vector<1x8x128xf32>
    tpu.vector_store %arg4[%c1_24, %c0_25, %c0_26], %27 {strides = array<i32>} : memref<2x8x128xf32, #tpu.memory_space<vmem>>, vector<1x8x128xf32>,
    return
  }
  func.func @transform_0(%arg0: i32) -> (i32, i32, i32) {
    %c0_i32 = arith.constant 0 : i32
    %c0_i32_0 = arith.constant 0 : i32
    %c0_i32_1 = arith.constant 0 : i32
    return %c0_i32, %arg0, %c0_i32_0 : i32, i32, i32
  }
  func.func @transform_1(%arg0: i32) -> (i32, i32, i32, i32) {
    %c0_i32 = arith.constant 0 : i32
    %c0_i32_0 = arith.constant 0 : i32
    %c0_i32_1 = arith.constant 0 : i32
    %c0_i32_2 = arith.constant 0 : i32
    %c0_i32_3 = arith.constant 0 : i32
    return %c0_i32, %c0_i32_0, %c0_i32_1, %c0_i32_2 : i32, i32, i32, i32
  }
  func.func @transform_2(%arg0: i32) -> (i32, i32, i32) {
    %c0_i32 = arith.constant 0 : i32
    %c0_i32_0 = arith.constant 0 : i32
    %c0_i32_1 = arith.constant 0 : i32
    %c0_i32_2 = arith.constant 0 : i32
    return %c0_i32, %c0_i32_0, %c0_i32_1 : i32, i32, i32
  }
  func.func @transform_3(%arg0: i32) -> (i32, i32, i32) {
    %c0_i32 = arith.constant 0 : i32
    %c0_i32_0 = arith.constant 0 : i32
    %c0_i32_1 = arith.constant 0 : i32
    return %c0_i32, %arg0, %c0_i32_0 : i32, i32, i32
  }
}

module attributes {stable_mosaic.version = 11 : i64} {
  func.func @_proj_kernel(%arg0: i32, %arg1: memref<2x8x32xbf16, #tpu.memory_space<vmem>>, %arg2: memref<2x2x32x128xbf16, #tpu.memory_space<vmem>>, %arg3: memref<2x1x128xf32, #tpu.memory_space<vmem>>, %arg4: memref<2x8x128xf32, #tpu.memory_space<vmem>>) attributes {dimension_semantics = [#tpu.dimension_semantics<parallel>], iteration_bounds = array<i64: 1>, scalar_prefetch = 0 : i64, scratch_operands = 0 : i64, tpu.core_type = #tpu.core_type<tc>, window_params = [{transform_indices = @transform_0, window_bounds = array<i64: 2, 8, 32>}, {pipeline_mode = #tpu.pipeline_mode<synchronous>, transform_indices = @transform_1, window_bounds = array<i64: 2, 2, 32, 128>}, {pipeline_mode = #tpu.pipeline_mode<synchronous>, transform_indices = @transform_2, window_bounds = array<i64: 2, 1, 128>}, {transform_indices = @transform_3, window_bounds = array<i64: 2, 8, 128>}]} {
    %cst = arith.constant 0.000000e+00 : f32
    %0 = vector.broadcast %cst : f32 to vector<8x128xf32>
    %c0 = arith.constant 0 : index
    %c0_0 = arith.constant 0 : index
    %c0_1 = arith.constant 0 : index
    %1 = vector.load %arg1[%c0, %c0_0, %c0_1] : memref<2x8x32xbf16, #tpu.memory_space<vmem>>, vector<1x8x32xbf16>
    %2 = vector.shape_cast %1 : vector<1x8x32xbf16> to vector<8x32xbf16>
    %c0_2 = arith.constant 0 : index
    %c0_3 = arith.constant 0 : index
    %c0_4 = arith.constant 0 : index
    %c0_5 = arith.constant 0 : index
    %3 = vector.load %arg2[%c0_2, %c0_3, %c0_4, %c0_5] : memref<2x2x32x128xbf16, #tpu.memory_space<vmem>>, vector<1x1x32x128xbf16>
    %4 = vector.shape_cast %3 : vector<1x1x32x128xbf16> to vector<32x128xbf16>
    %cst_6 = arith.constant dense<0.000000e+00> : vector<8x128xf32>
    %5 = tpu.matmul %2, %4, %cst_6 {dimension_numbers = #tpu.dot_dimension_numbers<[1], [0], [0], [1], [0, 0, 1, 1], [], []>} : vector<8x32xbf16>, vector<32x128xbf16>, vector<8x128xf32> -> vector<8x128xf32>
    %6 = arith.addf %0, %5 : vector<8x128xf32>
    %c1 = arith.constant 1 : index
    %c0_7 = arith.constant 0 : index
    %c0_8 = arith.constant 0 : index
    %7 = vector.load %arg1[%c1, %c0_7, %c0_8] : memref<2x8x32xbf16, #tpu.memory_space<vmem>>, vector<1x8x32xbf16>
    %8 = vector.shape_cast %7 : vector<1x8x32xbf16> to vector<8x32xbf16>
    %c1_9 = arith.constant 1 : index
    %c0_10 = arith.constant 0 : index
    %c0_11 = arith.constant 0 : index
    %c0_12 = arith.constant 0 : index
    %9 = vector.load %arg2[%c1_9, %c0_10, %c0_11, %c0_12] : memref<2x2x32x128xbf16, #tpu.memory_space<vmem>>, vector<1x1x32x128xbf16>
    %10 = vector.shape_cast %9 : vector<1x1x32x128xbf16> to vector<32x128xbf16>
    %cst_13 = arith.constant dense<0.000000e+00> : vector<8x128xf32>
    %11 = tpu.matmul %8, %10, %cst_13 {dimension_numbers = #tpu.dot_dimension_numbers<[1], [0], [0], [1], [0, 0, 1, 1], [], []>} : vector<8x32xbf16>, vector<32x128xbf16>, vector<8x128xf32> -> vector<8x128xf32>
    %12 = arith.addf %6, %11 : vector<8x128xf32>
    %c0_14 = arith.constant 0 : index
    %c0_15 = arith.constant 0 : index
    %c0_16 = arith.constant 0 : index
    %13 = vector.load %arg3[%c0_14, %c0_15, %c0_16] : memref<2x1x128xf32, #tpu.memory_space<vmem>>, vector<1x1x128xf32>
    %14 = vector.shape_cast %13 : vector<1x1x128xf32> to vector<1x128xf32>
    %15 = vector.broadcast %14 : vector<1x128xf32> to vector<8x128xf32>
    %16 = arith.addf %12, %15 : vector<8x128xf32>
    %c0_17 = arith.constant 0 : index
    %c0_18 = arith.constant 0 : index
    %c0_19 = arith.constant 0 : index
    %17 = vector.load %arg4[%c0_17, %c0_18, %c0_19] : memref<2x8x128xf32, #tpu.memory_space<vmem>>, vector<1x8x128xf32>
    %18 = vector.shape_cast %17 : vector<1x8x128xf32> to vector<8x128xf32>
    %19 = vector.shape_cast %16 : vector<8x128xf32> to vector<1x8x128xf32>
    tpu.vector_store %arg4[%c0_17, %c0_18, %c0_19], %19 {strides = array<i32>} : memref<2x8x128xf32, #tpu.memory_space<vmem>>, vector<1x8x128xf32>,
    %cst_20 = arith.constant 0.000000e+00 : f32
    %20 = vector.broadcast %cst_20 : f32 to vector<8x128xf32>
    %c0_21 = arith.constant 0 : index
    %c0_22 = arith.constant 0 : index
    %c0_23 = arith.constant 0 : index
    %21 = vector.load %arg1[%c0_21, %c0_22, %c0_23] : memref<2x8x32xbf16, #tpu.memory_space<vmem>>, vector<1x8x32xbf16>
    %22 = vector.shape_cast %21 : vector<1x8x32xbf16> to vector<8x32xbf16>
    %c0_24 = arith.constant 0 : index
    %c1_25 = arith.constant 1 : index
    %c0_26 = arith.constant 0 : index
    %c0_27 = arith.constant 0 : index
    %23 = vector.load %arg2[%c0_24, %c1_25, %c0_26, %c0_27] : memref<2x2x32x128xbf16, #tpu.memory_space<vmem>>, vector<1x1x32x128xbf16>
    %24 = vector.shape_cast %23 : vector<1x1x32x128xbf16> to vector<32x128xbf16>
    %cst_28 = arith.constant dense<0.000000e+00> : vector<8x128xf32>
    %25 = tpu.matmul %22, %24, %cst_28 {dimension_numbers = #tpu.dot_dimension_numbers<[1], [0], [0], [1], [0, 0, 1, 1], [], []>} : vector<8x32xbf16>, vector<32x128xbf16>, vector<8x128xf32> -> vector<8x128xf32>
    %26 = arith.addf %20, %25 : vector<8x128xf32>
    %c1_29 = arith.constant 1 : index
    %c0_30 = arith.constant 0 : index
    %c0_31 = arith.constant 0 : index
    %27 = vector.load %arg1[%c1_29, %c0_30, %c0_31] : memref<2x8x32xbf16, #tpu.memory_space<vmem>>, vector<1x8x32xbf16>
    %28 = vector.shape_cast %27 : vector<1x8x32xbf16> to vector<8x32xbf16>
    %c1_32 = arith.constant 1 : index
    %c1_33 = arith.constant 1 : index
    %c0_34 = arith.constant 0 : index
    %c0_35 = arith.constant 0 : index
    %29 = vector.load %arg2[%c1_32, %c1_33, %c0_34, %c0_35] : memref<2x2x32x128xbf16, #tpu.memory_space<vmem>>, vector<1x1x32x128xbf16>
    %30 = vector.shape_cast %29 : vector<1x1x32x128xbf16> to vector<32x128xbf16>
    %cst_36 = arith.constant dense<0.000000e+00> : vector<8x128xf32>
    %31 = tpu.matmul %28, %30, %cst_36 {dimension_numbers = #tpu.dot_dimension_numbers<[1], [0], [0], [1], [0, 0, 1, 1], [], []>} : vector<8x32xbf16>, vector<32x128xbf16>, vector<8x128xf32> -> vector<8x128xf32>
    %32 = arith.addf %26, %31 : vector<8x128xf32>
    %c1_37 = arith.constant 1 : index
    %c0_38 = arith.constant 0 : index
    %c0_39 = arith.constant 0 : index
    %33 = vector.load %arg3[%c1_37, %c0_38, %c0_39] : memref<2x1x128xf32, #tpu.memory_space<vmem>>, vector<1x1x128xf32>
    %34 = vector.shape_cast %33 : vector<1x1x128xf32> to vector<1x128xf32>
    %35 = vector.broadcast %34 : vector<1x128xf32> to vector<8x128xf32>
    %36 = arith.addf %32, %35 : vector<8x128xf32>
    %c1_40 = arith.constant 1 : index
    %c0_41 = arith.constant 0 : index
    %c0_42 = arith.constant 0 : index
    %37 = vector.load %arg4[%c1_40, %c0_41, %c0_42] : memref<2x8x128xf32, #tpu.memory_space<vmem>>, vector<1x8x128xf32>
    %38 = vector.shape_cast %37 : vector<1x8x128xf32> to vector<8x128xf32>
    %39 = vector.shape_cast %36 : vector<8x128xf32> to vector<1x8x128xf32>
    tpu.vector_store %arg4[%c1_40, %c0_41, %c0_42], %39 {strides = array<i32>} : memref<2x8x128xf32, #tpu.memory_space<vmem>>, vector<1x8x128xf32>,
    return
  }
  func.func @transform_0(%arg0: i32) -> (i32, i32, i32) {
    %c0_i32 = arith.constant 0 : i32
    %c0_i32_0 = arith.constant 0 : i32
    %c0_i32_1 = arith.constant 0 : i32
    return %c0_i32, %arg0, %c0_i32_0 : i32, i32, i32
  }
  func.func @transform_1(%arg0: i32) -> (i32, i32, i32, i32) {
    %c0_i32 = arith.constant 0 : i32
    %c0_i32_0 = arith.constant 0 : i32
    %c0_i32_1 = arith.constant 0 : i32
    %c0_i32_2 = arith.constant 0 : i32
    %c0_i32_3 = arith.constant 0 : i32
    return %c0_i32, %c0_i32_0, %c0_i32_1, %c0_i32_2 : i32, i32, i32, i32
  }
  func.func @transform_2(%arg0: i32) -> (i32, i32, i32) {
    %c0_i32 = arith.constant 0 : i32
    %c0_i32_0 = arith.constant 0 : i32
    %c0_i32_1 = arith.constant 0 : i32
    %c0_i32_2 = arith.constant 0 : i32
    return %c0_i32, %c0_i32_0, %c0_i32_1 : i32, i32, i32
  }
  func.func @transform_3(%arg0: i32) -> (i32, i32, i32) {
    %c0_i32 = arith.constant 0 : i32
    %c0_i32_0 = arith.constant 0 : i32
    %c0_i32_1 = arith.constant 0 : i32
    return %c0_i32, %arg0, %c0_i32_0 : i32, i32, i32
  }
}

module attributes {stable_mosaic.version = 11 : i64} {
  func.func @_bilstm_dir_kernel(%arg0: i32, %arg1: memref<1x2x4x128xf32, #tpu.memory_space<vmem>>, %arg2: memref<1x32x128xbf16, #tpu.memory_space<vmem>>, %arg3: memref<1x2x32xf32, #tpu.memory_space<vmem>>) attributes {dimension_semantics = [#tpu.dimension_semantics<parallel>], iteration_bounds = array<i64: 2>, scalar_prefetch = 0 : i64, scratch_operands = 0 : i64, tpu.core_type = #tpu.core_type<tc>, window_params = [{transform_indices = @transform_0, window_bounds = array<i64: 1, 2, 4, 128>}, {transform_indices = @transform_1, window_bounds = array<i64: 1, 32, 128>}, {transform_indices = @transform_2, window_bounds = array<i64: 1, 2, 32>}]} {
    %c0 = arith.constant 0 : index
    %c0_0 = arith.constant 0 : index
    %c0_1 = arith.constant 0 : index
    %0 = vector.load %arg2[%c0, %c0_0, %c0_1] : memref<1x32x128xbf16, #tpu.memory_space<vmem>>, vector<1x32x128xbf16>
    %1 = vector.shape_cast %0 : vector<1x32x128xbf16> to vector<32x128xbf16>
    %cst = arith.constant 0.000000e+00 : f32
    %2 = vector.broadcast %cst : f32 to vector<2x32xf32>
    %cst_2 = arith.constant 0.000000e+00 : f32
    %3 = vector.broadcast %cst_2 : f32 to vector<2x32xf32>
    %cst_3 = arith.constant 0.000000e+00 : f32
    %4 = vector.broadcast %cst_3 : f32 to vector<2x32xf32>
    %c3_i32 = arith.constant 3 : i32
    %5 = arith.muli %arg0, %c3_i32 : i32
    %c0_i32 = arith.constant 0 : i32
    %6 = arith.addi %c0_i32, %5 : i32
    %c0_4 = arith.constant 0 : index
    %c0_5 = arith.constant 0 : index
    %7 = arith.index_cast %6 : i32 to index
    %c0_6 = arith.constant 0 : index
    %8 = vector.load %arg1[%c0_4, %c0_5, %7, %c0_6] : memref<1x2x4x128xf32, #tpu.memory_space<vmem>>, vector<1x2x1x128xf32>
    %9 = vector.shape_cast %8 : vector<1x2x1x128xf32> to vector<2x128xf32>
    %10 = arith.truncf %2 : vector<2x32xf32> to vector<2x32xbf16>
    %cst_7 = arith.constant dense<0.000000e+00> : vector<2x128xf32>
    %11 = tpu.matmul %10, %1, %cst_7 {dimension_numbers = #tpu.dot_dimension_numbers<[1], [0], [0], [1], [0, 0, 1, 1], [], []>} : vector<2x32xbf16>, vector<32x128xbf16>, vector<2x128xf32> -> vector<2x128xf32>
    %12 = arith.addf %9, %11 : vector<2x128xf32>
    %13 = vector.extract_strided_slice %12 {offsets = [0, 0], sizes = [2, 32], strides = [1, 1]} : vector<2x128xf32> to vector<2x32xf32>
    %14 = arith.negf %13 : vector<2x32xf32>
    %15 = math.exp %14 : vector<2x32xf32>
    %cst_8 = arith.constant 1.000000e+00 : f32
    %16 = vector.broadcast %cst_8 : f32 to vector<2x32xf32>
    %17 = arith.addf %16, %15 : vector<2x32xf32>
    %18 = arith.divf %16, %17 : vector<2x32xf32>
    %19 = vector.extract_strided_slice %12 {offsets = [0, 32], sizes = [2, 32], strides = [1, 1]} : vector<2x128xf32> to vector<2x32xf32>
    %20 = arith.negf %19 : vector<2x32xf32>
    %21 = math.exp %20 : vector<2x32xf32>
    %cst_9 = arith.constant 1.000000e+00 : f32
    %22 = vector.broadcast %cst_9 : f32 to vector<2x32xf32>
    %23 = arith.addf %22, %21 : vector<2x32xf32>
    %24 = arith.divf %22, %23 : vector<2x32xf32>
    %25 = vector.extract_strided_slice %12 {offsets = [0, 64], sizes = [2, 32], strides = [1, 1]} : vector<2x128xf32> to vector<2x32xf32>
    %26 = math.tanh %25 : vector<2x32xf32>
    %27 = vector.extract_strided_slice %12 {offsets = [0, 96], sizes = [2, 32], strides = [1, 1]} : vector<2x128xf32> to vector<2x32xf32>
    %28 = arith.negf %27 : vector<2x32xf32>
    %29 = math.exp %28 : vector<2x32xf32>
    %cst_10 = arith.constant 1.000000e+00 : f32
    %30 = vector.broadcast %cst_10 : f32 to vector<2x32xf32>
    %31 = arith.addf %30, %29 : vector<2x32xf32>
    %32 = arith.divf %30, %31 : vector<2x32xf32>
    %33 = arith.mulf %24, %3 : vector<2x32xf32>
    %34 = arith.mulf %18, %26 : vector<2x32xf32>
    %35 = arith.addf %33, %34 : vector<2x32xf32>
    %36 = math.tanh %35 : vector<2x32xf32>
    %37 = arith.mulf %32, %36 : vector<2x32xf32>
    %38 = arith.addf %4, %37 : vector<2x32xf32>
    %c1_i32 = arith.constant 1 : i32
    %39 = arith.muli %arg0, %c1_i32 : i32
    %c1_i32_11 = arith.constant 1 : i32
    %40 = arith.addi %c1_i32_11, %39 : i32
    %c0_12 = arith.constant 0 : index
    %c0_13 = arith.constant 0 : index
    %41 = arith.index_cast %40 : i32 to index
    %c0_14 = arith.constant 0 : index
    %42 = vector.load %arg1[%c0_12, %c0_13, %41, %c0_14] : memref<1x2x4x128xf32, #tpu.memory_space<vmem>>, vector<1x2x1x128xf32>
    %43 = vector.shape_cast %42 : vector<1x2x1x128xf32> to vector<2x128xf32>
    %44 = arith.truncf %37 : vector<2x32xf32> to vector<2x32xbf16>
    %cst_15 = arith.constant dense<0.000000e+00> : vector<2x128xf32>
    %45 = tpu.matmul %44, %1, %cst_15 {dimension_numbers = #tpu.dot_dimension_numbers<[1], [0], [0], [1], [0, 0, 1, 1], [], []>} : vector<2x32xbf16>, vector<32x128xbf16>, vector<2x128xf32> -> vector<2x128xf32>
    %46 = arith.addf %43, %45 : vector<2x128xf32>
    %47 = vector.extract_strided_slice %46 {offsets = [0, 0], sizes = [2, 32], strides = [1, 1]} : vector<2x128xf32> to vector<2x32xf32>
    %48 = arith.negf %47 : vector<2x32xf32>
    %49 = math.exp %48 : vector<2x32xf32>
    %cst_16 = arith.constant 1.000000e+00 : f32
    %50 = vector.broadcast %cst_16 : f32 to vector<2x32xf32>
    %51 = arith.addf %50, %49 : vector<2x32xf32>
    %52 = arith.divf %50, %51 : vector<2x32xf32>
    %53 = vector.extract_strided_slice %46 {offsets = [0, 32], sizes = [2, 32], strides = [1, 1]} : vector<2x128xf32> to vector<2x32xf32>
    %54 = arith.negf %53 : vector<2x32xf32>
    %55 = math.exp %54 : vector<2x32xf32>
    %cst_17 = arith.constant 1.000000e+00 : f32
    %56 = vector.broadcast %cst_17 : f32 to vector<2x32xf32>
    %57 = arith.addf %56, %55 : vector<2x32xf32>
    %58 = arith.divf %56, %57 : vector<2x32xf32>
    %59 = vector.extract_strided_slice %46 {offsets = [0, 64], sizes = [2, 32], strides = [1, 1]} : vector<2x128xf32> to vector<2x32xf32>
    %60 = math.tanh %59 : vector<2x32xf32>
    %61 = vector.extract_strided_slice %46 {offsets = [0, 96], sizes = [2, 32], strides = [1, 1]} : vector<2x128xf32> to vector<2x32xf32>
    %62 = arith.negf %61 : vector<2x32xf32>
    %63 = math.exp %62 : vector<2x32xf32>
    %cst_18 = arith.constant 1.000000e+00 : f32
    %64 = vector.broadcast %cst_18 : f32 to vector<2x32xf32>
    %65 = arith.addf %64, %63 : vector<2x32xf32>
    %66 = arith.divf %64, %65 : vector<2x32xf32>
    %67 = arith.mulf %58, %35 : vector<2x32xf32>
    %68 = arith.mulf %52, %60 : vector<2x32xf32>
    %69 = arith.addf %67, %68 : vector<2x32xf32>
    %70 = math.tanh %69 : vector<2x32xf32>
    %71 = arith.mulf %66, %70 : vector<2x32xf32>
    %72 = arith.addf %38, %71 : vector<2x32xf32>
    %c-1_i32 = arith.constant -1 : i32
    %73 = arith.muli %arg0, %c-1_i32 : i32
    %c2_i32 = arith.constant 2 : i32
    %74 = arith.addi %c2_i32, %73 : i32
    %c0_19 = arith.constant 0 : index
    %c0_20 = arith.constant 0 : index
    %75 = arith.index_cast %74 : i32 to index
    %c0_21 = arith.constant 0 : index
    %76 = vector.load %arg1[%c0_19, %c0_20, %75, %c0_21] : memref<1x2x4x128xf32, #tpu.memory_space<vmem>>, vector<1x2x1x128xf32>
    %77 = vector.shape_cast %76 : vector<1x2x1x128xf32> to vector<2x128xf32>
    %78 = arith.truncf %71 : vector<2x32xf32> to vector<2x32xbf16>
    %cst_22 = arith.constant dense<0.000000e+00> : vector<2x128xf32>
    %79 = tpu.matmul %78, %1, %cst_22 {dimension_numbers = #tpu.dot_dimension_numbers<[1], [0], [0], [1], [0, 0, 1, 1], [], []>} : vector<2x32xbf16>, vector<32x128xbf16>, vector<2x128xf32> -> vector<2x128xf32>
    %80 = arith.addf %77, %79 : vector<2x128xf32>
    %81 = vector.extract_strided_slice %80 {offsets = [0, 0], sizes = [2, 32], strides = [1, 1]} : vector<2x128xf32> to vector<2x32xf32>
    %82 = arith.negf %81 : vector<2x32xf32>
    %83 = math.exp %82 : vector<2x32xf32>
    %cst_23 = arith.constant 1.000000e+00 : f32
    %84 = vector.broadcast %cst_23 : f32 to vector<2x32xf32>
    %85 = arith.addf %84, %83 : vector<2x32xf32>
    %86 = arith.divf %84, %85 : vector<2x32xf32>
    %87 = vector.extract_strided_slice %80 {offsets = [0, 32], sizes = [2, 32], strides = [1, 1]} : vector<2x128xf32> to vector<2x32xf32>
    %88 = arith.negf %87 : vector<2x32xf32>
    %89 = math.exp %88 : vector<2x32xf32>
    %cst_24 = arith.constant 1.000000e+00 : f32
    %90 = vector.broadcast %cst_24 : f32 to vector<2x32xf32>
    %91 = arith.addf %90, %89 : vector<2x32xf32>
    %92 = arith.divf %90, %91 : vector<2x32xf32>
    %93 = vector.extract_strided_slice %80 {offsets = [0, 64], sizes = [2, 32], strides = [1, 1]} : vector<2x128xf32> to vector<2x32xf32>
    %94 = math.tanh %93 : vector<2x32xf32>
    %95 = vector.extract_strided_slice %80 {offsets = [0, 96], sizes = [2, 32], strides = [1, 1]} : vector<2x128xf32> to vector<2x32xf32>
    %96 = arith.negf %95 : vector<2x32xf32>
    %97 = math.exp %96 : vector<2x32xf32>
    %cst_25 = arith.constant 1.000000e+00 : f32
    %98 = vector.broadcast %cst_25 : f32 to vector<2x32xf32>
    %99 = arith.addf %98, %97 : vector<2x32xf32>
    %100 = arith.divf %98, %99 : vector<2x32xf32>
    %101 = arith.mulf %92, %69 : vector<2x32xf32>
    %102 = arith.mulf %86, %94 : vector<2x32xf32>
    %103 = arith.addf %101, %102 : vector<2x32xf32>
    %104 = math.tanh %103 : vector<2x32xf32>
    %105 = arith.mulf %100, %104 : vector<2x32xf32>
    %106 = arith.addf %72, %105 : vector<2x32xf32>
    %c-3_i32 = arith.constant -3 : i32
    %107 = arith.muli %arg0, %c-3_i32 : i32
    %c3_i32_26 = arith.constant 3 : i32
    %108 = arith.addi %c3_i32_26, %107 : i32
    %c0_27 = arith.constant 0 : index
    %c0_28 = arith.constant 0 : index
    %109 = arith.index_cast %108 : i32 to index
    %c0_29 = arith.constant 0 : index
    %110 = vector.load %arg1[%c0_27, %c0_28, %109, %c0_29] : memref<1x2x4x128xf32, #tpu.memory_space<vmem>>, vector<1x2x1x128xf32>
    %111 = vector.shape_cast %110 : vector<1x2x1x128xf32> to vector<2x128xf32>
    %112 = arith.truncf %105 : vector<2x32xf32> to vector<2x32xbf16>
    %cst_30 = arith.constant dense<0.000000e+00> : vector<2x128xf32>
    %113 = tpu.matmul %112, %1, %cst_30 {dimension_numbers = #tpu.dot_dimension_numbers<[1], [0], [0], [1], [0, 0, 1, 1], [], []>} : vector<2x32xbf16>, vector<32x128xbf16>, vector<2x128xf32> -> vector<2x128xf32>
    %114 = arith.addf %111, %113 : vector<2x128xf32>
    %115 = vector.extract_strided_slice %114 {offsets = [0, 0], sizes = [2, 32], strides = [1, 1]} : vector<2x128xf32> to vector<2x32xf32>
    %116 = arith.negf %115 : vector<2x32xf32>
    %117 = math.exp %116 : vector<2x32xf32>
    %cst_31 = arith.constant 1.000000e+00 : f32
    %118 = vector.broadcast %cst_31 : f32 to vector<2x32xf32>
    %119 = arith.addf %118, %117 : vector<2x32xf32>
    %120 = arith.divf %118, %119 : vector<2x32xf32>
    %121 = vector.extract_strided_slice %114 {offsets = [0, 32], sizes = [2, 32], strides = [1, 1]} : vector<2x128xf32> to vector<2x32xf32>
    %122 = arith.negf %121 : vector<2x32xf32>
    %123 = math.exp %122 : vector<2x32xf32>
    %cst_32 = arith.constant 1.000000e+00 : f32
    %124 = vector.broadcast %cst_32 : f32 to vector<2x32xf32>
    %125 = arith.addf %124, %123 : vector<2x32xf32>
    %126 = arith.divf %124, %125 : vector<2x32xf32>
    %127 = vector.extract_strided_slice %114 {offsets = [0, 64], sizes = [2, 32], strides = [1, 1]} : vector<2x128xf32> to vector<2x32xf32>
    %128 = math.tanh %127 : vector<2x32xf32>
    %129 = vector.extract_strided_slice %114 {offsets = [0, 96], sizes = [2, 32], strides = [1, 1]} : vector<2x128xf32> to vector<2x32xf32>
    %130 = arith.negf %129 : vector<2x32xf32>
    %131 = math.exp %130 : vector<2x32xf32>
    %cst_33 = arith.constant 1.000000e+00 : f32
    %132 = vector.broadcast %cst_33 : f32 to vector<2x32xf32>
    %133 = arith.addf %132, %131 : vector<2x32xf32>
    %134 = arith.divf %132, %133 : vector<2x32xf32>
    %135 = arith.mulf %126, %103 : vector<2x32xf32>
    %136 = arith.mulf %120, %128 : vector<2x32xf32>
    %137 = arith.addf %135, %136 : vector<2x32xf32>
    %138 = math.tanh %137 : vector<2x32xf32>
    %139 = arith.mulf %134, %138 : vector<2x32xf32>
    %140 = arith.addf %106, %139 : vector<2x32xf32>
    %cst_34 = arith.constant 2.500000e-01 : f32
    %141 = vector.broadcast %cst_34 : f32 to vector<2x32xf32>
    %142 = arith.mulf %140, %141 : vector<2x32xf32>
    %c0_35 = arith.constant 0 : index
    %c0_36 = arith.constant 0 : index
    %c0_37 = arith.constant 0 : index
    %143 = vector.load %arg3[%c0_35, %c0_36, %c0_37] : memref<1x2x32xf32, #tpu.memory_space<vmem>>, vector<1x2x32xf32>
    %144 = vector.shape_cast %143 : vector<1x2x32xf32> to vector<2x32xf32>
    %145 = vector.shape_cast %142 : vector<2x32xf32> to vector<1x2x32xf32>
    tpu.vector_store %arg3[%c0_35, %c0_36, %c0_37], %145 {strides = array<i32>} : memref<1x2x32xf32, #tpu.memory_space<vmem>>, vector<1x2x32xf32>,
    return
  }
  func.func @transform_0(%arg0: i32) -> (i32, i32, i32, i32) {
    %c0_i32 = arith.constant 0 : i32
    %c0_i32_0 = arith.constant 0 : i32
    %c0_i32_1 = arith.constant 0 : i32
    %c0_i32_2 = arith.constant 0 : i32
    return %arg0, %c0_i32, %c0_i32_0, %c0_i32_1 : i32, i32, i32, i32
  }
  func.func @transform_1(%arg0: i32) -> (i32, i32, i32) {
    %c0_i32 = arith.constant 0 : i32
    %c0_i32_0 = arith.constant 0 : i32
    %c0_i32_1 = arith.constant 0 : i32
    return %arg0, %c0_i32, %c0_i32_0 : i32, i32, i32
  }
  func.func @transform_2(%arg0: i32) -> (i32, i32, i32) {
    %c0_i32 = arith.constant 0 : i32
    %c0_i32_0 = arith.constant 0 : i32
    %c0_i32_1 = arith.constant 0 : i32
    return %arg0, %c0_i32, %c0_i32_0 : i32, i32, i32
  }
}

</mosaic_0001>

<bundles_post_ra>
// kernel: cnn_lstm_forward.7
= control target key start
LH: loop header
LB: loop body
LE: loop exit
PB: predicated region body
PF: predicated region fallthrough
CT: control target
= control target key end

     0   :  { %s1675_s15 = smov 0   ;;  %s1677_s16 = smov 0   ;;  %s2185_s0 = inlined_call_operand.vmem [shape: bf16[2,18,34,1], index: 0, kind: input, shape index: {}]   ;;  %s2186_s1 = inlined_call_operand.vmem [shape: bf16[3,3,1,128], index: 1, kind: input, shape index: {}]   ;;  %s2187_s2 = inlined_call_operand.vmem [shape: f32[1,128], index: 2, kind: input, shape index: {}]   ;;  %s2188_s3 = inlined_call_operand.vmem [shape: f32[1,128], index: 3, kind: input, shape index: {}]   ;;  %s2189_s4 = inlined_call_operand.vmem [shape: bf16[2,8,16,128], index: 4, kind: output, shape index: {}]  }
   0x1   :  { %s1679_s17 = smov 0   ;;  %s1681_s18 = smov 0  }
   0x2   :  { %s1683_s19 = smov 0  }
   0x3 LB: > { %s23_s20 = sadd.s32 1, %s1639_s17  ;;  %s26_s21 = sadd.s32 1, %s1643_s18  ;;  %s1647_s19 = sphi %s1683_s19, %s14_s19   ;;  %s1643_s18 = sphi %s1681_s18, %s2210_s18   ;;  %s1639_s17 = sphi %s1679_s17, %s2209_s17   ;;  %s1635_s16 = sphi %s1677_s16, %s2208_s16   ;;  %s1631_s15 = sphi %s1675_s15, %s2207_s15  }
   0x4   : > { %p24_p0 = scmp.ge.s32.totalorder %s23_s20, 8  ;;  %p1253_p1 = scmp.ge.s32.totalorder %s1647_s19, 1 }
   0x5   : > { %p176_p2 = scmp.lt.s32.totalorder %s1647_s19, 17 }
   0x6   : > { %s2212_s20 = smov (%p24_p0, %s23_s20), 0  ;;  %s2214_s21 = smov (!%p24_p0, %s26_s21), %s1643_s18 }
   0x7   : > { %p177_p3 = pnand %p1253_p1, %p176_p2  ;;  %p28_p4 = scmp.ge.s32.totalorder %s2214_s21, 2 }
   0x8   : > { %p206_p5 = scmp.lt.s32.totalorder (!%p177_p3), %s1635_s16, 1  ;;  %v1649_v0 = vmov (!%p177_p3), 0   ;;  %s1319_s22 = smul.u32 (!%p177_p3), 40, %s1631_s15  ;;  %vm399_vm0 = vcmask (!%p177_p3), 1046528   ;;  %vm475_vm1 = vcmask (!%p177_p3), 1045504  }
   0x9   : > { %s2216_s21 = smov (%p28_p4, %s2214_s21), 0  ;;  %180 = sbr.rel (%p177_p3) target bundleno = 267 (0x10b), region = 36 }
   0xa   : > { %1468 = vset.pattern.permute.xlu1 (!%p177_p3), %v1649_v0  ;;  %1457 = vset.pattern.permute.xlu0 (!%p177_p3), %v1649_v0  ;;  %p213_p6 = scmp.lt.s32.totalorder (!%p177_p3), %s1631_s15, 7 }
  0x10   : > { %s2218_s16 = smov (!%p206_p5, %s1635_s16), 1  ;;  %s2220_s15 = smov (!%p213_p6, %s1631_s15), 7 }
  0x11   : > { %s1415_s23 = smul.u32 360, %s2218_s16  ;;  %s1255_s5 = sshll.u32 %s2220_s15, 1 }
  0x12   : > { %s1256_s6 = sshll.u32 %s2218_s16, 4 }
  0x13   : > { %s210_s26 = scalar_lea.vmem %s2185_s0, %s1415_s23  ;;  %s217_s7 = sadd.s32 %s1256_s6, %s1255_s5 }
  0x14   : > { %s1714_s27 = scalar_lea.vmem %s210_s26, %s1319_s22  ;;  %s1257_s8 = sshll.u32 %s217_s7, 2 }
  0x15   : > { %v228_v1 = vld [vmem:[%s1714_s27 + $0x14] ss:$12 sps:$4 sm:$0xff]   ;;  %v1400_v2 = vld [vmem:[%s1714_s27 + $0x18] sm:$0xff]   ;;  %v1399_v8 = vld [vmem:[%s1714_s27 + $0x8] sm:$0xff]   ;;  %s219_s11 = scalar_lea.vmem %s2189_s4, %s1257_s8 }
  0x16   : > { %v1323_v3 = vld [vmem:[%s1714_s27] sm:$0xff]   ;;  %v1332_v4 = vunpack.c.l.bf16 %v1400_v2  ;;  %v1333_v5 = vunpack.c.h.bf16 %v1400_v2  ;;  %v237_v6 = vunpack.c.l.bf16 %v228_v1  ;;  %v240_v10 = vunpack.c.h.bf16 %v228_v1  ;;  %v306_v17 = vld [vmem:[%s1714_s27 + $0x10] sm:$0x1]  ;;  %v435_v22 = vld [vmem:[%s1714_s27 + $0x14] sm:$0xe] }
  0x17   : > { %v1324_v7 = vunpack.c.l.bf16 %v1323_v3  ;;  %v1325_v9 = vunpack.c.h.bf16 %v1323_v3  ;;  %v1328_v11 = vunpack.c.l.bf16 %v1399_v8  ;;  %v1329_v12 = vunpack.c.h.bf16 %v1399_v8  ;;  %v307_v18 = vld [vmem:[%s1714_s27 + $0x14] ss:$12 sps:$4 sm:$0xff]   ;;  %v311_v23 = vld [vmem:[%s1714_s27 + $0x24] sm:$0x1]  ;;  %v1404_v36 = vld [vmem:[%s1714_s27 + $0x28] sm:$0xff]  }
  0x18   : > { %v1469_v13 = vpack.i.bf16 %v1332_v4, %v237_v6  ;;  %v1474_v15 = vpack.i.bf16 %v240_v10, %v1333_v5  ;;  %v318_v19 = vunpack.c.l.bf16 %v306_v17  ;;  %v319_v20 = vunpack.c.l.bf16 %v307_v18  ;;  %v434_v21 = vld [vmem:[%s1714_s27] sm:$0xe]  ;;  %v1405_v35 = vld [vmem:[%s1714_s27 + $0x30] sm:$0xff]   ;;  %v1278_v48 = vld [vmem:[%s1714_s27 + $0x24] sm:$0x1] }
  0x19   : > { %v1458_v14 = vpack.i.bf16 %v1325_v9, %v1324_v7  ;;  %v1463_v16 = vpack.i.bf16 %v1329_v12, %v1328_v11  ;;  %v1494_v24 = vpack.i.bf16 %v1333_v5, %v1332_v4  ;;  %v438_v25 = vunpack.c.l.bf16 %v434_v21  ;;  %v1268_v30 = vld [vmem:[%s1714_s27 + $0x14] ss:$12 sps:$4 sm:$0xff]   ;;  %v1286_v53 = vld [vmem:[%s1714_s27 + $0x28] sm:$0xe]  ;;  %v1283_v54 = vld [vmem:[%s1714_s27 + $0x38] sm:$0x1] }
  0x1a   : > { %1470 = vperm.xlu1 %1468, %v1469_v13   ;;  %v439_v26 = vunpack.c.l.bf16 %v435_v22  ;;  %v1489_v27 = vpack.i.bf16 %v319_v20, %v318_v19  ;;  %v322_v28 = vunpack.c.h.bf16 %v307_v18  ;;  %v323_v29 = vunpack.c.l.bf16 %v311_v23  ;;  %v1277_v43 = vld [vmem:[%s1714_s27 + $0x14] ss:$12 sps:$4 sm:$0xff]   ;;  %v1303_v63 = vld [vmem:[%s1714_s27 + $0x38] sm:$0x1]  ;;  %v1304_v0 = vld [vmem:[%s1714_s27 + $0x3c] ss:$12 sps:$4 sm:$0xff]  }
  0x1b   : > { %1459 = vperm.xlu0 %1457, %v1458_v14   ;;  %v527_v32 = vunpack.c.h.bf16 %v1268_v30  ;;  %v524_v34 = vunpack.c.l.bf16 %v1268_v30  ;;  %v1356_v38 = vunpack.c.l.bf16 %v1405_v35  ;;  %v1357_v39 = vunpack.c.h.bf16 %v1405_v35  ;;  %v1285_v52 = vld [vmem:[%s1714_s27 + $0x14] sm:$0xe]  ;;  %v1414_v62 = vld [vmem:[%s1714_s27 + $0x40] sm:$0xff]   ;;  %v1294_v10 = vld [vmem:[%s1714_s27 + $0x3c] ss:$12 sps:$4 sm:$0xff]  }
  0x1c   : > { %v1504_v31 = vpack.i.bf16 %v439_v26, %v438_v25  ;;  %v1499_v33 = vpack.i.bf16 %v323_v29, %v322_v28  ;;  %v1352_v41 = vunpack.c.l.bf16 %v1404_v36  ;;  %v1353_v42 = vunpack.c.h.bf16 %v1404_v36  ;;  %v1310_v13 = vld [vmem:[%s1714_s27 + $0x28] sm:$0xe]  ;;  %v232_v23 = vld [vmem:[%s2186_s1] sm:$0x1]  ;;  %v1261_v25 = vld [vmem:[%s2186_s1 + $0x1] sm:$0x1] }
  0x1d   : > { %v1514_v37 = vpack.i.bf16 %v527_v32, %v1333_v5  ;;  %v1509_v40 = vpack.i.bf16 %v1332_v4, %v524_v34  ;;  %v1524_v44 = vpack.i.bf16 %v1357_v39, %v1356_v38  ;;  %v608_v45 = vunpack.c.h.bf16 %v1277_v43  ;;  %v1262_v26 = vld [vmem:[%s2186_s1 + $0x2] sm:$0x1]  ;;  %v1273_v28 = vld [vmem:[%s2186_s1 + $0x3] sm:$0x1]  ;;  %v1284_v29 = vld [vmem:[%s2186_s1 + $0x4] sm:$0x1] }
  0x1e   : > { %1475 = vperm.xlu1 %1468, %v1474_v15   ;;  %v1519_v46 = vpack.i.bf16 %v1353_v42, %v1352_v41  ;;  %v605_v47 = vunpack.c.l.bf16 %v1277_v43  ;;  %v609_v51 = vunpack.c.l.bf16 %v1278_v48  ;;  %v1544_v55 = vpack.i.bf16 %v1356_v38, %v1353_v42  ;;  %v1287_v30 = vld [vmem:[%s2186_s1 + $0x5] sm:$0x1]  ;;  %v1312_v34 = vld [vmem:[%s2186_s1 + $0x8] sm:$0x1]  ;;  %v1298_v35 = vld [vmem:[%s2186_s1 + $0x6] sm:$0x1] }
  0x1f   : > { %1464 = vperm.xlu0 %1457, %v1463_v16   ;;  %v1534_v49 = vpack.i.bf16 %v608_v45, %v1333_v5  ;;  %v728_v56 = vunpack.c.l.bf16 %v1285_v52  ;;  %v729_v57 = vunpack.c.l.bf16 %v1286_v53  ;;  %v614_v59 = vunpack.c.l.bf16 %v1283_v54  ;;  %v1308_v5 = vld [vmem:[%s1714_s27 + $0x4c] sm:$0x1] }
  0x20   : > { %v1529_v50 = vpack.i.bf16 %v1332_v4, %v605_v47  ;;  %v1539_v58 = vpack.i.bf16 %v1352_v41, %v609_v51  ;;  %v1392_v1 = vunpack.c.l.bf16 %v1414_v62  ;;  %v1393_v2 = vunpack.c.h.bf16 %v1414_v62 }
  0x21   : > { %v1554_v60 = vpack.i.bf16 %v729_v57, %v728_v56  ;;  %v1549_v61 = vpack.i.bf16 %v614_v59, %v1357_v39  ;;  %v898_v3 = vunpack.c.l.bf16 %v1303_v63  ;;  %v899_v4 = vunpack.c.l.bf16 %v1304_v0 }
  0x22   : > { %1485 = vperm.xlu1 %1468, %v1463_v16   ;;  %v1574_v6 = vpack.i.bf16 %v1393_v2, %v1392_v1  ;;  %v902_v8 = vunpack.c.h.bf16 %v1304_v0  ;;  %v903_v9 = vunpack.c.l.bf16 %v1308_v5  ;;  %v817_v11 = vunpack.c.l.bf16 %v1294_v10 }
  0x23   : > { %1480 = vperm.xlu0 %1457, %v1458_v14   ;;  %v1569_v7 = vpack.i.bf16 %v899_v4, %v898_v3  ;;  %v1311_v14 = vld [vmem:[%s1714_s27 + $0x3c] sm:$0xe]  ;;  %v1017_v16 = vunpack.c.l.bf16 %v1310_v13  ;;  %v820_v18 = vunpack.c.h.bf16 %v1294_v10  ;;  %v282_v21 = vlaneseq }
  0x24   : > { %v1579_v12 = vpack.i.bf16 %v903_v9, %v902_v8  ;;  %v1594_v15 = vpack.i.bf16 %v1392_v1, %v817_v11  ;;  %v1018_v17 = vunpack.c.l.bf16 %v1311_v14  ;;  %v324_v36 = vunpack.c.l.bf16 %v1261_v25 }
  0x25   : > { %v1599_v20 = vpack.i.bf16 %v820_v18, %v1393_v2  ;;  %v283_v22 = vshrl.u32 %v282_v21, 7  ;;  %v532_v38 = vunpack.c.l.bf16 %v1273_v28  ;;  %v615_v39 = vunpack.c.l.bf16 %v1284_v29 }
  0x26   : > { %1495 = vperm.xlu1 %1468, %v1494_v24   ;;  %v1604_v19 = vpack.i.bf16 %v1018_v17, %v1017_v16  ;;  %v730_v41 = vunpack.c.l.bf16 %v1287_v30  ;;  %v1019_v43 = vunpack.c.l.bf16 %v1312_v34 }
  0x27   : > { %1490 = vperm.xlu0 %1457, %v1489_v27   ;;  %v284_v24 = vsub.s32 0, %v283_v22 }
  0x29   : > { %v1771_v53 = vrot.slane %v532_v38, %v284_v24  ;;  %v1773_v54 = vrot.slane %v615_v39, %v284_v24  ;;  %v1775_v56 = vrot.slane %v730_v41, %v284_v24 }
  0x2a   : > { %1505 = vperm.xlu1 %1468, %v1504_v31   ;;  %v241_v31 = vunpack.c.l.bf16 %v232_v23 }
  0x2b   : > { %1500 = vperm.xlu0 %1457, %v1499_v33   ;;  %v1309_v33 = vld [vmem:[%s2186_s1 + $0x7] sm:$0x1] }
  0x2c   : > { %v904_v42 = vunpack.c.l.bf16 %v1309_v33  ;;  %v285_v45 = vrot.slane %v241_v31, %v284_v24 }
  0x2e   : > { %1515 = vperm.xlu1 %1468, %v1514_v37   ;;  %v440_v37 = vunpack.c.l.bf16 %v1262_v26  ;;  %v1777_v57 = vrot.slane %v904_v42, %v284_v24 }
  0x2f   : > { %1510 = vperm.xlu0 %1457, %v1509_v40  }
  0x30   : > { %v1769_v52 = vrot.slane %v440_v37, %v284_v24 }
  0x32   : > { %1525 = vperm.xlu1 %1468, %v1524_v44  }
  0x33   : > { %1520 = vperm.xlu0 %1457, %v1519_v46  }
  0x36   : > { %1535 = vperm.xlu1 %1468, %v1534_v49  }
  0x37   : > { %1530 = vperm.xlu0 %1457, %v1529_v50   ;;  %v1767_v50 = vrot.slane %v324_v36, %v284_v24 }
  0x3a   : > { %1545 = vperm.xlu1 %1468, %v1544_v55  }
  0x3b   : > { %1540 = vperm.xlu0 %1457, %v1539_v58   ;;  %v1779_v58 = vrot.slane %v1019_v43, %v284_v24 }
  0x3e   : > { %1555 = vperm.xlu1 %1468, %v1554_v60  }
  0x3f   : > { %1550 = vperm.xlu0 %1457, %v1549_v61  }
  0x42   : > { %1565 = vperm.xlu1 %1468, %v1524_v44  }
  0x43   : > { %1560 = vperm.xlu0 %1457, %v1519_v46  }
  0x46   : > { %1575 = vperm.xlu1 %1468, %v1574_v6  }
  0x47   : > { %1570 = vperm.xlu0 %1457, %v1569_v7  }
  0x4a   : > { %1585 = vperm.xlu1 %1468, %v1519_v46  }
  0x4b   : > { %1580 = vperm.xlu0 %1457, %v1579_v12  }
  0x4e   : > { %1595 = vperm.xlu1 %1468, %v1594_v15  }
  0x4f   : > { %1590 = vperm.xlu0 %1457, %v1524_v44   ;;  %v821_v44 = vunpack.c.l.bf16 %v1298_v35 }
  0x51   : > { %v1781_v59 = vrot.slane %v821_v44, %v284_v24 }
  0x52   : > { %1605 = vperm.xlu1 %1468, %v1604_v19  }
  0x53   : > { %1600 = vperm.xlu0 %1457, %v1599_v20  }
  0x99   : > { %v1471_v27 = vpop.permute.xlu1 %1470 }
  0x9a   : > { %v1460_v32 = vpop.permute.xlu0 %1459  ;;  %v1473_v46 = vunpack.i.h.bf16 %v1471_v27  ;;  %v1472_v48 = vunpack.i.l.bf16 %v1471_v27 }
  0x9b   : > { %v1462_v49 = vunpack.i.h.bf16 %v1460_v32  ;;  %v1461_v51 = vunpack.i.l.bf16 %v1460_v32 }
  0x9c   : > { %v1783_v60 = vmul.f32 %v1473_v46, %v285_v45  ;;  %v1785_v1 = vmul.f32 %v1472_v48, %v285_v45 }
  0x9d   : > { %v1476_v40 = vpop.permute.xlu1 %1475  ;;  %v1787_v2 = vmul.f32 %v1462_v49, %v285_v45  ;;  %v1789_v5 = vmul.f32 %v1461_v51, %v285_v45 }
  0x9e   : > { %v1465_v47 = vpop.permute.xlu0 %1464  ;;  %v1478_v61 = vunpack.i.h.bf16 %v1476_v40  ;;  %v1477_v6 = vunpack.i.l.bf16 %v1476_v40 }
  0x9f   : > { %v1467_v9 = vunpack.i.h.bf16 %v1465_v47  ;;  %v1466_v10 = vunpack.i.l.bf16 %v1465_v47 }
  0xa0   : > { %v1795_v14 = vmul.f32 %v1478_v61, %v285_v45  ;;  %v1806_v23 = vmul.f32 %v1477_v6, %v285_v45 }
  0xa1   : > { %v1486_v55 = vpop.permute.xlu1 %1485  ;;  %v289_v27 = vmul.f32 %v1467_v9, %v285_v45  ;;  %v288_v28 = vmul.f32 %v1466_v10, %v285_v45 }
  0xa2   : > { %v1488_v62 = vunpack.i.h.bf16 %v1486_v55  ;;  %v1487_v63 = vunpack.i.l.bf16 %v1486_v55  ;;  %v1481_v0 = vpop.permute.xlu0 %1480 }
  0xa3   : > { %v1483_v3 = vunpack.i.h.bf16 %v1481_v0  ;;  %v1482_v4 = vunpack.i.l.bf16 %v1481_v0 }
  0xa4   : > { %v382_v7 = vmul.f32 %v1488_v62, %v1767_v50  ;;  %v381_v8 = vmul.f32 %v1487_v63, %v1767_v50  ;;  %v1798_v15 = vmul.f32 %v1488_v62, %v1769_v52  ;;  %v1801_v16 = vmul.f32 %v1487_v63, %v1769_v52 }
  0xa5   : > { %v380_v11 = vmul.f32 %v1483_v3, %v1767_v50  ;;  %v379_v12 = vmul.f32 %v1482_v4, %v1767_v50  ;;  %v1496_v13 = vpop.permute.xlu1 %1495  ;;  %v1804_v17 = vmul.f32 %v1483_v3, %v1769_v52 }
  0xa6   : > { %v1491_v18 = vpop.permute.xlu0 %1490  ;;  %v405_v19 = vrot.slane %v382_v7, 1  ;;  %v403_v20 = vrot.slane %v381_v8, 1  ;;  %v1498_v22 = vunpack.i.h.bf16 %v1496_v13  ;;  %v1497_v25 = vunpack.i.l.bf16 %v1496_v13 }
  0xa7   : > { %v401_v21 = vrot.slane %v380_v11, 1  ;;  %v400_v24 = vrot.slane %v379_v12, 1  ;;  %v1492_v26 = vunpack.i.l.bf16 %v1491_v18  ;;  %v1493_v30 = vunpack.i.h.bf16 %v1491_v18 }
  0xa8   : > { %v386_v29 = vmul.f32 %v1498_v22, %v1767_v50  ;;  %v481_v32 = vrot.slane %v1798_v15, 2  ;;  %v479_v33 = vrot.slane %v1801_v16, 2  ;;  %v1812_v34 = vmul.f32 %v1497_v25, %v1767_v50 }
  0xa9   : > { %v1506_v31 = vpop.permute.xlu1 %1505  ;;  %v383_v35 = vmul.f32 %v1492_v26, %v1767_v50  ;;  %v406_v37 = vsel %vm399_vm0, %v403_v20, %v405_v19  ;;  %v404_v38 = vsel %vm399_vm0, %v401_v21, %v403_v20  ;;  %v477_v39 = vrot.slane %v1804_v17, 2 }
  0xaa   : > { %v1501_v36 = vpop.permute.xlu0 %1500  ;;  %v459_v40 = vmul.f32 %v1492_v26, %v1769_v52  ;;  %v402_v41 = vsel %vm399_vm0, %v400_v24, %v401_v21  ;;  %v1821_v42 = vmul.f32 %v1498_v22, %v1769_v52  ;;  %v1824_v43 = vmul.f32 %v1497_v25, %v1769_v52 }
  0xab   : > { %v407_v44 = vrot.slane %v383_v35, 1  ;;  %v412_v45 = vrot.slane %v386_v29, 1  ;;  %v384_v46 = vmul.f32 %v1493_v30, %v1767_v50  ;;  %v1507_v47 = vunpack.i.l.bf16 %v1506_v31 }
  0xac   : > { %v1503_v48 = vunpack.i.h.bf16 %v1501_v36  ;;  %v410_v51 = vrot.slane %v1812_v34, 1  ;;  %v483_v55 = vrot.slane %v459_v40, 2  ;;  %v1508_v61 = vunpack.i.h.bf16 %v1506_v31 }
  0xad   : > { %v1516_v49 = vpop.permute.xlu1 %1515  ;;  %v1502_v62 = vunpack.i.l.bf16 %v1501_v36  ;;  %v408_v0 = vsel %vm399_vm0, %v405_v19, %v407_v44  ;;  %v455_v3 = vmul.f32 %v1507_v47, %v1769_v52  ;;  %v488_v11 = vrot.slane %v1821_v42, 2 }
  0xae   : > { %v1511_v63 = vpop.permute.xlu0 %1510  ;;  %v388_v4 = vmul.f32 %v1503_v48, %v1767_v50  ;;  %v464_v6 = vmul.f32 %v1503_v48, %v1769_v52  ;;  %v1518_v9 = vunpack.i.h.bf16 %v1516_v49  ;;  %v1517_v10 = vunpack.i.l.bf16 %v1516_v49 }
  0xaf   : > { %v387_v7 = vmul.f32 %v1502_v62, %v1767_v50  ;;  %v463_v8 = vmul.f32 %v1502_v62, %v1769_v52  ;;  %v486_v12 = vrot.slane %v1824_v43, 2  ;;  %v409_v13 = vrot.slane %v384_v46, 1 }
  0xb0   : > { %v416_v15 = vrot.slane %v388_v4, 1  ;;  %v460_v19 = vmul.f32 %v1508_v61, %v1769_v52  ;;  %v476_v20 = vrot.slane %v455_v3, 2  ;;  %v429_v22 = vadd.f32 %v408_v0, %v289_v27 }
  0xb1   : > { %v1526_v18 = vpop.permute.xlu1 %1525  ;;  %v414_v21 = vrot.slane %v387_v7, 1  ;;  %v413_v25 = vsel %vm399_vm0, %v410_v51, %v412_v45  ;;  %v492_v50 = vrot.slane %v464_v6, 2  ;;  %v490_v26 = vrot.slane %v463_v8, 2 }
  0xb2   : > { %v1521_v24 = vpop.permute.xlu0 %1520  ;;  %v428_v29 = vadd.f32 %v406_v37, %v288_v28  ;;  %v580_v30 = vmul.f32 %v1518_v9, %v1771_v53  ;;  %v484_v31 = vsel %vm475_vm1, %v481_v32, %v483_v55  ;;  %v579_v34 = vmul.f32 %v1517_v10, %v1771_v53 }
  0xb3   : > { %v1513_v35 = vunpack.i.h.bf16 %v1511_v63  ;;  %v415_v36 = vsel %vm399_vm0, %v412_v45, %v414_v21  ;;  %v417_v52 = vsel %vm399_vm0, %v414_v21, %v416_v15  ;;  %v1512_v40 = vunpack.i.l.bf16 %v1511_v63 }
  0xb4   : > { %v426_v27 = vadd.f32 %v402_v41, %v1789_v5  ;;  %v482_v44 = vsel %vm475_vm1, %v479_v33, %v481_v32  ;;  %v505_v28 = vadd.f32 %v484_v31, %v429_v22  ;;  %v427_v37 = vadd.f32 %v404_v38, %v1787_v2 }
  0xb5   : > { %v1536_v43 = vpop.permute.xlu1 %1535  ;;  %v478_v46 = vsel %vm475_vm1, %v476_v20, %v477_v39  ;;  %v504_v47 = vadd.f32 %v482_v44, %v428_v29  ;;  %v577_v45 = vmul.f32 %v1512_v40, %v1771_v53  ;;  %v1528_v49 = vunpack.i.h.bf16 %v1526_v18 }
  0xb6   : > { %v502_v48 = vadd.f32 %v478_v46, %v426_v27  ;;  %v1531_v55 = vpop.permute.xlu0 %1530  ;;  %v411_v5 = vsel %vm399_vm0, %v409_v13, %v410_v51  ;;  %v1527_v41 = vunpack.i.l.bf16 %v1526_v18  ;;  %v432_v61 = vadd.f32 %v415_v36, %v1806_v23 }
  0xb7   : > { %v433_v32 = vadd.f32 %v417_v52, %v1795_v14  ;;  %v485_v62 = vrot.slane %v460_v19, 2  ;;  %v1855_v63 = vadd.f32 %v579_v34, %v504_v47  ;;  %v578_v2 = vmul.f32 %v1513_v35, %v1771_v53 }
  0xb8   : > { %v480_v38 = vsel %vm475_vm1, %v477_v39, %v479_v33  ;;  %v1863_v3 = vadd.f32 %v580_v30, %v505_v28  ;;  %v1865_v4 = vadd.f32 %v577_v45, %v502_v48  ;;  %v491_v14 = vsel %vm475_vm1, %v488_v11, %v490_v26 }
  0xb9   : > { %v1546_v0 = vpop.permute.xlu1 %1545  ;;  %v503_v51 = vadd.f32 %v480_v38, %v427_v37  ;;  %v584_v23 = vmul.f32 %v1528_v49, %v1771_v53  ;;  %v493_v6 = vsel %vm475_vm1, %v490_v26, %v492_v50  ;;  %v1523_v7 = vunpack.i.h.bf16 %v1521_v24 }
  0xba   : > { %v1522_v16 = vunpack.i.l.bf16 %v1521_v24  ;;  %v508_v8 = vadd.f32 %v491_v14, %v432_v61  ;;  %v509_v17 = vadd.f32 %v493_v6, %v433_v32  ;;  %v583_v33 = vmul.f32 %v1527_v41, %v1771_v53  ;;  %v1541_v18 = vpop.permute.xlu0 %1540 }
  0xbb   : > { %v431_v39 = vadd.f32 %v413_v25, %v1783_v60  ;;  %v487_v9 = vsel %vm475_vm1, %v485_v62, %v486_v12  ;;  %v430_v10 = vadd.f32 %v411_v5, %v1785_v1  ;;  %v1538_v13 = vunpack.i.h.bf16 %v1536_v43 }
  0xbc   : > { %v1537_v15 = vunpack.i.l.bf16 %v1536_v43  ;;  %v582_v19 = vmul.f32 %v1523_v7, %v1771_v53  ;;  %v581_v20 = vmul.f32 %v1522_v16, %v1771_v53  ;;  %v1533_v21 = vunpack.i.h.bf16 %v1531_v55 }
  0xbd   : > { %v1532_v22 = vunpack.i.l.bf16 %v1531_v55  ;;  %v489_v24 = vsel %vm475_vm1, %v486_v12, %v488_v11  ;;  %v1882_v50 = vmul.f32 %v1538_v13, %v1773_v54  ;;  %v1885_v60 = vmul.f32 %v1538_v13, %v1775_v56  ;;  %v1556_v25 = vpop.permute.xlu1 %1555 }
  0xbe   : > { %v1548_v1 = vunpack.i.h.bf16 %v1546_v0  ;;  %v507_v26 = vadd.f32 %v489_v24, %v431_v39  ;;  %v506_v29 = vadd.f32 %v487_v9, %v430_v10  ;;  %v672_v30 = vmul.f32 %v1537_v15, %v1773_v54  ;;  %v1551_v28 = vpop.permute.xlu0 %1550 }
  0xbf   : > { %v671_v53 = vmul.f32 %v1533_v21, %v1773_v54  ;;  %v1889_v31 = vadd.f32 %v578_v2, %v503_v51  ;;  %v1891_v34 = vadd.f32 %v583_v33, %v508_v8  ;;  %v1893_v42 = vadd.f32 %v584_v23, %v509_v17 }
  0xc0   : > { %v670_v11 = vmul.f32 %v1532_v22, %v1773_v54  ;;  %v1896_v12 = vadd.f32 %v582_v19, %v507_v26  ;;  %v1898_v35 = vadd.f32 %v581_v20, %v506_v29  ;;  %v1901_v36 = vmul.f32 %v1537_v15, %v1775_v56 }
  0xc1   : > { %v1904_v52 = vmul.f32 %v1533_v21, %v1775_v56  ;;  %v695_v40 = vrot.slane %v1882_v50, 1  ;;  %v1909_v43 = vmul.f32 %v1548_v1, %v1773_v54  ;;  %v1547_v44 = vunpack.i.l.bf16 %v1546_v0  ;;  %v1566_v41 = vpop.permute.xlu1 %1565 }
  0xc2   : > { %v693_v37 = vrot.slane %v672_v30, 1  ;;  %v691_v46 = vrot.slane %v671_v53, 1  ;;  %v1543_v47 = vunpack.i.h.bf16 %v1541_v18  ;;  %v1542_v48 = vunpack.i.l.bf16 %v1541_v18  ;;  %v1561_v9 = vpop.permute.xlu0 %1560 }
  0xc3   : > { %v690_v45 = vrot.slane %v670_v11, 1  ;;  %v1912_v49 = vmul.f32 %v1548_v1, %v1775_v56  ;;  %v676_v55 = vmul.f32 %v1547_v44, %v1773_v54  ;;  %v1916_v5 = vmul.f32 %v1547_v44, %v1775_v56 }
  0xc4   : > { %v675_v61 = vmul.f32 %v1543_v47, %v1773_v54  ;;  %v674_v32 = vmul.f32 %v1542_v48, %v1773_v54  ;;  %v1921_v62 = vmul.f32 %v1542_v48, %v1775_v56  ;;  %v1558_v2 = vunpack.i.h.bf16 %v1556_v25 }
  0xc5   : > { %v702_v38 = vrot.slane %v1909_v43, 1  ;;  %v700_v0 = vrot.slane %v676_v55, 1  ;;  %v1557_v51 = vunpack.i.l.bf16 %v1556_v25  ;;  %v1553_v14 = vunpack.i.h.bf16 %v1551_v28  ;;  %v1576_v24 = vpop.permute.xlu1 %1575 }
  0xc6   : > { %v1925_v23 = vsel %vm399_vm0, %v693_v37, %v695_v40  ;;  %v768_v6 = vrot.slane %v1901_v36, 2  ;;  %v1929_v7 = vsel %vm399_vm0, %v691_v46, %v693_v37  ;;  %v766_v16 = vrot.slane %v1904_v52, 2  ;;  %v1571_v48 = vpop.permute.xlu0 %1570 }
  0xc7   : > { %v1933_v8 = vsel %vm399_vm0, %v690_v45, %v691_v46  ;;  %v699_v39 = vrot.slane %v675_v61, 1  ;;  %v697_v10 = vrot.slane %v674_v32, 1  ;;  %v1939_v15 = vmul.f32 %v1558_v2, %v1775_v56 }
  0xc8   : > { %v1552_v18 = vunpack.i.l.bf16 %v1551_v28  ;;  %v1942_v19 = vsel %vm399_vm0, %v700_v0, %v702_v38  ;;  %v745_v20 = vmul.f32 %v1557_v51, %v1775_v56  ;;  %v679_v21 = vmul.f32 %v1553_v14, %v1773_v54 }
  0xc9   : > { %v1568_v22 = vunpack.i.h.bf16 %v1566_v41  ;;  %v1947_v50 = vmul.f32 %v1553_v14, %v1775_v56  ;;  %v1567_v25 = vunpack.i.l.bf16 %v1566_v41  ;;  %v1563_v26 = vunpack.i.h.bf16 %v1561_v9  ;;  %v1586_v51 = vpop.permute.xlu1 %1585 }
  0xca   : > { %v678_v1 = vmul.f32 %v1552_v18, %v1773_v54  ;;  %v1951_v29 = vsel %vm399_vm0, %v699_v39, %v700_v0  ;;  %v1954_v30 = vmul.f32 %v1552_v18, %v1775_v56  ;;  %v1963_v43 = vsel %vm399_vm0, %v695_v40, %v697_v10  ;;  %v1581_v32 = vpop.permute.xlu0 %1580 }
  0xcb   : > { %v1957_v53 = vmul.f32 %v1568_v22, %v1777_v57  ;;  %v1960_v11 = vmul.f32 %v1568_v22, %v1779_v58  ;;  %v1036_v54 = vmul.f32 %v1567_v25, %v1779_v58  ;;  %v1578_v28 = vunpack.i.h.bf16 %v1576_v24 }
  0xcc   : > { %v706_v37 = vrot.slane %v679_v21, 1  ;;  %v704_v46 = vrot.slane %v678_v1, 1  ;;  %v1968_v47 = vmul.f32 %v1567_v25, %v1777_v57  ;;  %v1971_v56 = vmul.f32 %v1563_v26, %v1779_v58 }
  0xcd   : > { %v765_v45 = vrot.slane %v745_v20, 2  ;;  %v960_v40 = vmul.f32 %v1563_v26, %v1777_v57  ;;  %v1562_v41 = vunpack.i.l.bf16 %v1561_v9  ;;  %v1059_v2 = vrot.slane %v1960_v11, 2  ;;  %v1596_v13 = vpop.permute.xlu1 %1595 }
  0xce   : > { %v1057_v0 = vrot.slane %v1036_v54, 2  ;;  %v2190_v14 = vrot.slane %v1971_v56, 2  ;;  %v1980_v39 = vmul.f32 %v1578_v28, %v1779_v58  ;;  %v1577_v10 = vunpack.i.l.bf16 %v1576_v24 }
  0xcf   : > { %v1573_v18 = vunpack.i.h.bf16 %v1571_v48  ;;  %v1983_v20 = vsel %vm399_vm0, %v702_v38, %v704_v46  ;;  %v1986_v9 = vsel %vm399_vm0, %v704_v46, %v706_v37  ;;  %v1572_v22 = vunpack.i.l.bf16 %v1571_v48 }
  0xd0   : > { %v980_v1 = vrot.slane %v960_v40, 1  ;;  %v959_v25 = vmul.f32 %v1562_v41, %v1777_v57  ;;  %v1991_v26 = vmul.f32 %v1578_v28, %v1777_v57  ;;  %v1994_v11 = vmul.f32 %v1577_v10, %v1779_v58 }
  0xd1   : > { %v1997_v24 = vsel %vm475_vm1, %v1057_v0, %v1059_v2  ;;  %v1038_v38 = vmul.f32 %v1572_v22, %v1779_v58  ;;  %v1588_v54 = vunpack.i.h.bf16 %v1586_v51  ;;  %v1587_v37 = vunpack.i.l.bf16 %v1586_v51 }
  0xd2   : > { %v1058_v46 = vsel %vm475_vm1, %v2190_v14, %v1057_v0  ;;  %v1066_v48 = vrot.slane %v1980_v39, 2  ;;  %v965_v40 = vmul.f32 %v1577_v10, %v1777_v57  ;;  %v964_v28 = vmul.f32 %v1573_v18, %v1777_v57 }
  0xd3   : > { %v1064_v41 = vrot.slane %v1994_v11, 2  ;;  %v2008_v55 = vmul.f32 %v1572_v22, %v1777_v57  ;;  %v867_v61 = vmul.f32 %v1588_v54, %v1781_v59  ;;  %v717_v51 = vadd.f32 %v1929_v7, %v1889_v31 }
  0xd4   : > { %v716_v0 = vadd.f32 %v1933_v8, %v1865_v4  ;;  %v767_v10 = vsel %vm475_vm1, %v765_v45, %v766_v16  ;;  %v769_v18 = vsel %vm475_vm1, %v766_v16, %v768_v6  ;;  %v866_v22 = vmul.f32 %v1587_v37, %v1781_v59 }
  0xd5   : > { %v979_v54 = vrot.slane %v959_v25, 1  ;;  %v991_v31 = vrot.slane %v1991_v26, 1  ;;  %v1061_v7 = vrot.slane %v1038_v38, 2  ;;  %v792_v14 = vadd.f32 %v769_v18, %v717_v51 }
  0xd6   : > { %v791_v27 = vadd.f32 %v767_v10, %v716_v0  ;;  %v1583_v17 = vunpack.i.h.bf16 %v1581_v32  ;;  %v1582_v4 = vunpack.i.l.bf16 %v1581_v32  ;;  %v1598_v8 = vunpack.i.h.bf16 %v1596_v13 }
  0xd7   : > { %v989_v44 = vrot.slane %v965_v40, 1  ;;  %v988_v33 = vrot.slane %v964_v28, 1  ;;  %v986_v45 = vrot.slane %v2008_v55, 1  ;;  %v875_v21 = vadd.f32 %v867_v61, %v792_v14 }
  0xd8   : > { %v1067_v52 = vsel %vm475_vm1, %v1064_v41, %v1066_v48  ;;  %v874_v16 = vadd.f32 %v866_v22, %v791_v27  ;;  %v2191_v25 = vrot.slane %v1968_v47, 1  ;;  %v1597_v37 = vunpack.i.l.bf16 %v1596_v13  ;;  %v2048_v27 = vld [vmem:[%s2187_s2] ss:$0 sm:$0xff] }
  0xd9   : > { %v2035_v32 = vmul.f32 %v1583_v17, %v1777_v57  ;;  %v2038_v40 = vmul.f32 %v1582_v4, %v1777_v57  ;;  %v721_v55 = vadd.f32 %v1942_v19, %v1896_v12  ;;  %v2043_v61 = vsel %vm475_vm1, %v1059_v2, %v1061_v7  ;;  %v1591_v57 = vpop.permute.xlu0 %1590 }
  0xda   : > { %v983_v38 = vsel %vm399_vm0, %v980_v1, %v2191_v25  ;;  %v981_v13 = vsel %vm399_vm0, %v979_v54, %v980_v1  ;;  %v871_v14 = vmul.f32 %v1598_v8, %v1781_v59  ;;  %v2055_v0 = vmul.f32 %v1583_v17, %v1779_v58 }
  0xdb   : > { %v1006_v51 = vadd.f32 %v983_v38, %v875_v21  ;;  %v720_v21 = vadd.f32 %v1951_v29, %v1898_v35  ;;  %v2192_v12 = vrot.slane %v1916_v5, 2  ;;  %v2193_v19 = vrot.slane %v1939_v15, 2 }
  0xdc   : > { %v2194_v10 = vrot.slane %v1912_v49, 2  ;;  %v1005_v22 = vadd.f32 %v981_v13, %v874_v16  ;;  %v2068_v35 = vmul.f32 %v1582_v4, %v1779_v58  ;;  %v870_v17 = vmul.f32 %v1597_v37, %v1781_v59  ;;  %v2081_v4 = vld [vmem:[%s2188_s3] ss:$0 sm:$0xff] }
  0xdd   : > { %v1081_v28 = vadd.f32 %v1058_v46, %v1006_v51  ;;  %v776_v2 = vsel %vm475_vm1, %v2193_v19, %v2192_v12  ;;  %v2195_v1 = vmov %v2192_v12  ;;  %v995_v54 = vrot.slane %v2035_v32, 1  ;;  %v1601_v19 = vpop.permute.xlu0 %1600 }
  0xde   : > { %v778_v18 = vsel %vm475_vm1, %v2195_v1, %v2194_v10  ;;  %v993_v15 = vrot.slane %v2038_v40, 1  ;;  %v795_v7 = vadd.f32 %v776_v2, %v720_v21  ;;  %v990_v25 = vsel %vm399_vm0, %v988_v33, %v989_v44 }
  0xdf   : > { %v796_v29 = vadd.f32 %v778_v18, %v721_v55  ;;  %v1096_v46 = vmul.f32 %v2048_v27, %v1081_v28  ;;  %v992_v5 = vsel %vm399_vm0, %v989_v44, %v991_v31  ;;  %v1593_v16 = vunpack.i.h.bf16 %v1591_v57  ;;  %v1606_v44 = vpop.permute.xlu1 %1605 }
  0xe0   : > { %v2196_v38 = vrot.slane %v1885_v60, 2  ;;  %v1592_v51 = vunpack.i.l.bf16 %v1591_v57  ;;  %v718_v33 = vadd.f32 %v1925_v23, %v1855_v63  ;;  %v719_v55 = vadd.f32 %v1963_v43, %v1863_v3 }
  0xe1   : > { %v879_v8 = vadd.f32 %v871_v14, %v796_v29  ;;  %v878_v13 = vadd.f32 %v870_v17, %v795_v7  ;;  %v869_v21 = vmul.f32 %v1593_v16, %v1781_v59  ;;  %v2197_v28 = vrot.slane %v1921_v62, 2 }
  0xe2   : > { %v771_v37 = vsel %vm475_vm1, %v768_v6, %v2196_v38  ;;  %v2198_v12 = vmov %v2196_v38  ;;  %v2199_v6 = vrot.slane %v1957_v53, 1  ;;  %v2200_v57 = vrot.slane %v1968_v47, 1 }
  0xe3   : > { %v1010_v14 = vadd.f32 %v992_v5, %v879_v8  ;;  %v773_v36 = vsel %vm475_vm1, %v2198_v12, %v2197_v28  ;;  %v793_v23 = vadd.f32 %v771_v37, %v718_v33  ;;  %v868_v43 = vmul.f32 %v1592_v51, %v1781_v59 }
  0xe4   : > { %v985_v63 = vsel %vm399_vm0, %v2200_v57, %v2199_v6  ;;  %v794_v3 = vadd.f32 %v773_v36, %v719_v55  ;;  %v1111_v2 = vadd.f32 %v2081_v4, %v1096_v46  ;;  %v1608_v1 = vunpack.i.h.bf16 %v1606_v44 }
  0xe5   : > { %v1085_v10 = vadd.f32 %v1067_v52, %v1010_v14  ;;  %v1607_v62 = vunpack.i.l.bf16 %v1606_v44  ;;  %v876_v18 = vadd.f32 %v868_v43, %v793_v23  ;;  %v2201_v29 = vmov %v2199_v6 }
  0xe6   : > { %v877_v60 = vadd.f32 %v869_v21, %v794_v3  ;;  %v987_v17 = vsel %vm399_vm0, %v2201_v29, %v986_v45  ;;  %v1603_v7 = vunpack.i.h.bf16 %v1601_v19  ;;  %v1039_v8 = vmul.f32 %v1608_v1, %v1779_v58 }
  0xe7   : > { %v1100_v47 = vmul.f32 %v2048_v27, %v1085_v10  ;;  %v1034_v5 = vmul.f32 %v1607_v62, %v1779_v58  ;;  %v1602_v16 = vunpack.i.l.bf16 %v1601_v19  ;;  %v1007_v38 = vadd.f32 %v985_v63, %v876_v18 }
  0xe8   : > { %v1008_v37 = vadd.f32 %v987_v17, %v877_v60  ;;  %v722_v52 = vadd.f32 %v1983_v20, %v1891_v34  ;;  %v723_v46 = vadd.f32 %v1986_v9, %v1893_v42  ;;  %v1063_v51 = vrot.slane %v1039_v8, 2 }
  0xe9   : > { %v1115_v53 = vadd.f32 %v2081_v4, %v1100_v47  ;;  %v1054_v45 = vrot.slane %v1034_v5, 2  ;;  %v873_v33 = vmul.f32 %v1603_v7, %v1781_v59  ;;  %v1119_v55 = vmax.f32 %v1111_v2, 0.0 }
  0xea   : > { %v1009_v44 = vadd.f32 %v990_v25, %v878_v13  ;;  %v2202_v14 = vrot.slane %v1954_v30, 2  ;;  %v2203_v58 = vrot.slane %v1912_v49, 2  ;;  %v2204_v28 = vrot.slane %v1947_v50, 2 }
  0xeb   : > { %v1123_v20 = vmax.f32 %v1115_v53, 0.0  ;;  %v2206_v9 = vrot.slane %v1971_v56, 2  ;;  %v1065_v25 = vsel %vm475_vm1, %v1063_v51, %v1064_v41  ;;  %v1082_v49 = vadd.f32 %v1997_v24, %v1007_v38 }
  0xec   : > { %v780_v21 = vsel %vm475_vm1, %v2203_v58, %v2202_v14  ;;  %v2205_v34 = vmov %v2202_v14  ;;  %v1083_v36 = vadd.f32 %v2043_v61, %v1008_v37  ;;  %v1084_v50 = vadd.f32 %v1065_v25, %v1009_v44 }
  0xed   : > { %v782_v42 = vsel %vm475_vm1, %v2205_v34, %v2204_v28  ;;  %v1056_v12 = vsel %vm475_vm1, %v1054_v45, %v2206_v9  ;;  %v1127_v6 = vmax.f32 %v1119_v55, %v1123_v20  ;;  %v797_v30 = vadd.f32 %v780_v21, %v722_v52 }
  0xee   : > { %v798_v13 = vadd.f32 %v782_v42, %v723_v46  ;;  %v1080_v19 = vadd.f32 %v1056_v12, %v1005_v22  ;;  %v872_v57 = vmul.f32 %v1602_v16, %v1781_v59  ;;  %v1070_v56 = vrot.slane %v2055_v0, 2 }
  0xef   : > { %v1068_v23 = vrot.slane %v2068_v35, 2  ;;  %v1099_v41 = vmul.f32 %v2048_v27, %v1084_v50  ;;  %1131 = vst [vmem:[#allocation2 + $0x8] sm:$0xff] %v1127_v6  ;;  %v994_v59 = vsel %vm399_vm0, %v991_v31, %v993_v15  ;;  %v996_v0 = vsel %vm399_vm0, %v993_v15, %v995_v54 }
  0xf0   : > { %v881_v63 = vadd.f32 %v873_v33, %v798_v13  ;;  %v1095_v11 = vmul.f32 %v2048_v27, %v1080_v19  ;;  %v880_v3 = vadd.f32 %v872_v57, %v797_v30  ;;  %v1097_v22 = vmul.f32 %v2048_v27, %v1082_v49 }
  0xf1   : > { %v1114_v61 = vadd.f32 %v2081_v4, %v1099_v41  ;;  %v1098_v35 = vmul.f32 %v2048_v27, %v1083_v36  ;;  %v1069_v10 = vsel %vm475_vm1, %v1066_v48, %v1068_v23  ;;  %v1071_v26 = vsel %vm475_vm1, %v1068_v23, %v1070_v56 }
  0xf2   : > { %v1110_v24 = vadd.f32 %v2081_v4, %v1095_v11  ;;  %v1011_v43 = vadd.f32 %v994_v59, %v880_v3  ;;  %v1012_v2 = vadd.f32 %v996_v0, %v881_v63  ;;  %v1112_v54 = vadd.f32 %v2081_v4, %v1097_v22 }
  0xf3   : > { %v1122_v1 = vmax.f32 %v1114_v61, 0.0  ;;  %v1113_v15 = vadd.f32 %v2081_v4, %v1098_v35 }
  0xf4   : > { %v1118_v31 = vmax.f32 %v1110_v24, 0.0  ;;  %v1086_v32 = vadd.f32 %v1069_v10, %v1011_v43  ;;  %v1087_v62 = vadd.f32 %v1071_v26, %v1012_v2  ;;  %v1120_v29 = vmax.f32 %v1112_v54, 0.0 }
  0xf5   : > { %v1121_v17 = vmax.f32 %v1113_v15, 0.0 }
  0xf6   : > { %v1126_v40 = vmax.f32 %v1118_v31, %v1122_v1  ;;  %v1101_v18 = vmul.f32 %v2048_v27, %v1086_v32  ;;  %v1102_v39 = vmul.f32 %v2048_v27, %v1087_v62 }
  0xf8   : > { %1130 = vst [vmem:[#allocation2] sm:$0xff] %v1126_v40  ;;  %v1116_v48 = vadd.f32 %v2081_v4, %v1101_v18  ;;  %v1117_v60 = vadd.f32 %v2081_v4, %v1102_v39 }
  0xfa   : > { %v1124_v7 = vmax.f32 %v1116_v48, 0.0  ;;  %v1125_v47 = vmax.f32 %v1117_v60, 0.0 }
  0xfc   : > { %v1128_v8 = vmax.f32 %v1120_v29, %v1124_v7  ;;  %v1129_v5 = vmax.f32 %v1121_v17, %v1125_v47 }
  0xfe   : > { %1132 = vst [vmem:[#allocation2 + $0x10] sm:$0xff] %v1128_v8  ;;  %1133 = vst [vmem:[#allocation2 + $0x18] sm:$0xff] %v1129_v5 }
  0xff   : > { %v1134_v16 = vld [vmem:[#allocation2] ss:$2 sm:$0xff]  ;;  %v1138_v38 = vld [vmem:[#allocation2 + $0x1] ss:$2 sm:$0xff] }
 0x100   : > { %v1141_v27 = vmax.f32 %v1134_v16, %v1138_v38 }
 0x105   : > { %v1136_v37 = vld [vmem:[#allocation2 + $0x10] ss:$2 sm:$0xff]  ;;  %v1140_v52 = vld [vmem:[#allocation2 + $0x11] ss:$2 sm:$0xff] }
 0x106   : > { %v1142_v46 = vmax.f32 %v1136_v37, %v1140_v52 }
 0x108   : > { %v1397_v4 = vpack.c.bf16 %v1142_v46, %v1141_v27 }
 0x10a   : > { %1398 = vst [vmem:[%s219_s11] sm:$0xff] %v1397_v4  }
 0x10b PF: > { %s14_s19 = sadd.s32 1, %s1647_s19   ;;  %s2207_s15 = smov %s1639_s17 }
 0x10c   : > { %p11_p7 = scmp.ge.s32.totalorder %s14_s19, 18   ;;  %s2208_s16 = smov %s1643_s18 }
 0x10d   : > { %s2209_s17 = smov %s2212_s20  ;;  %s2210_s18 = smov %s2216_s21 }
 0x10e   :  { %13 = sbr.rel (!%p11_p7) target bundleno = 3 (0x3), region = 80 }

// kernel: cnn_lstm_forward.8
= control target key start
LH: loop header
LB: loop body
LE: loop exit
PB: predicated region body
PF: predicated region fallthrough
CT: control target
= control target key end

     0   :  { %s3170_s15 = smov 0   ;;  %s3172_s16 = smov 0   ;;  %s3769_s0 = inlined_call_operand.vmem [shape: bf16[2,10,18,128], index: 0, kind: input, shape index: {}]   ;;  %s3770_s1 = inlined_call_operand.vmem [shape: bf16[3,3,128,128], index: 1, kind: input, shape index: {}]   ;;  %s3771_s2 = inlined_call_operand.vmem [shape: f32[1,128], index: 2, kind: input, shape index: {}]   ;;  %s3772_s3 = inlined_call_operand.vmem [shape: f32[1,128], index: 3, kind: input, shape index: {}]   ;;  %s3773_s4 = inlined_call_operand.vmem [shape: bf16[2,4,8,128], index: 4, kind: output, shape index: {}]  }
   0x1   :  { %s3174_s17 = smov 0   ;;  %s3176_s18 = smov 0  }
   0x2   :  { %s3178_s19 = smov 0  }
   0x3 LB: > { %s23_s20 = sadd.s32 1, %s3135_s17  ;;  %s26_s21 = sadd.s32 1, %s3139_s18  ;;  %s3143_s19 = sphi %s3178_s19, %s14_s19   ;;  %s3139_s18 = sphi %s3176_s18, %s3781_s18   ;;  %s3135_s17 = sphi %s3174_s17, %s3780_s17   ;;  %s3131_s16 = sphi %s3172_s16, %s3779_s16   ;;  %s3127_s15 = sphi %s3170_s15, %s3778_s15  }
   0x4   : > { %p24_p0 = scmp.ge.s32.totalorder %s23_s20, 2  ;;  %p2258_p1 = scmp.ge.s32.totalorder %s3143_s19, 1 }
   0x5   : > { %p176_p2 = scmp.lt.s32.totalorder %s3143_s19, 5 }
   0x6   : > { %s3783_s20 = smov (%p24_p0, %s23_s20), 0  ;;  %s3785_s21 = smov (!%p24_p0, %s26_s21), %s3139_s18 }
   0x7   : > { %p177_p3 = pnand %p2258_p1, %p176_p2  ;;  %p28_p4 = scmp.ge.s32.totalorder %s3785_s21, 2 }
   0x8   : > { %v3021_v0 = vld [vmem:[%s3770_s1 + $0x40] sm:$0xff] (!%p177_p3)   ;;  %p206_p5 = scmp.lt.s32.totalorder (!%p177_p3), %s3131_s16, 1  ;;  %v3023_v2 = vld [vmem:[%s3770_s1 + $0x48] sm:$0xff] (!%p177_p3)   ;;  %v3025_v4 = vld [vmem:[%s3770_s1 + $0x50] sm:$0xff] (!%p177_p3)   ;;  %s2570_s13 = smul.u32 (!%p177_p3), 48, %s3127_s15  ;;  %vm665_vm3 = vcmask (!%p177_p3), 1042432  }
   0x9   : > { %s3787_s21 = smov (%p28_p4, %s3785_s21), 0  ;;  %180 = sbr.rel (%p177_p3) target bundleno = 413 (0x19d), region = 36 }
   0xa   : > { %v3022_v1 = vld [vmem:[%s3770_s1 + $0x100] sm:$0xff] (!%p177_p3)   ;;  %2684 = vmatprep.subr.bf16.mxu1 (!%p177_p3), %v3021_v0  ;;  %v3024_v3 = vld [vmem:[%s3770_s1 + $0x108] sm:$0xff] (!%p177_p3)   ;;  %v3026_v5 = vld [vmem:[%s3770_s1 + $0x110] sm:$0xff] (!%p177_p3)   ;;  %vm271_vm0 = vsmask.f32 (!%p177_p3), 3328  ;;  %vm666_vm4 = vcmask (!%p177_p3), 1046532  }
   0xb   : > { %2780 = vmatprep.subr.bf16.mxu0 (!%p177_p3), %v3022_v1  ;;  %2685 = vmatpush3.bf16.msra.mxu1 (!%p177_p3), %v3021_v0  ;;  %v3027_v6 = vld [vmem:[%s3770_s1 + $0x58] sm:$0xff] (!%p177_p3)   ;;  %v3029_v8 = vld [vmem:[%s3770_s1 + $0x60] sm:$0xff] (!%p177_p3)   ;;  %v3031_v10 = vld [vmem:[%s3770_s1 + $0x68] sm:$0xff] (!%p177_p3)   ;;  %vm272_vm1 = vsmask.f32 (!%p177_p3), 7440  ;;  %s2260_s30 = sshll.u32 (!%p177_p3), %s3127_s15, 1 }
   0xc   : > { %2781 = vmatpush3.bf16.msra.mxu0 (!%p177_p3), %v3022_v1  ;;  %2686 = vmatprep.subr.bf16.mxu1 (!%p177_p3), %v3023_v2  ;;  %v3028_v7 = vld [vmem:[%s3770_s1 + $0x118] sm:$0xff] (!%p177_p3)   ;;  %v3030_v9 = vld [vmem:[%s3770_s1 + $0x120] sm:$0xff] (!%p177_p3)   ;;  %v3032_v14 = vld [vmem:[%s3770_s1 + $0x128] sm:$0xff] (!%p177_p3)   ;;  %p214_p6 = scmp.lt.s32.totalorder (!%p177_p3), %s2260_s30, 3 }
   0xd   : > { %2782 = vmatprep.subr.bf16.mxu0 (!%p177_p3), %v3024_v3  ;;  %v3033_v17 = vld [vmem:[%s3770_s1 + $0x70] sm:$0xff] (!%p177_p3)   ;;  %v3035_v33 = vld [vmem:[%s3770_s1 + $0x78] sm:$0xff] (!%p177_p3)   ;;  %vm3279_vm2 = vmor (!%p177_p3), %vm271_vm0, %vm272_vm1 }
   0xe   : > { %v3034_v23 = vld [vmem:[%s3770_s1 + $0x130] sm:$0xff] (!%p177_p3)   ;;  %v3036_v39 = vld [vmem:[%s3770_s1 + $0x138] sm:$0xff] (!%p177_p3)   ;;  %v3037_v61 = vld [vmem:[%s3770_s1] sm:$0xff] (!%p177_p3)  }
   0xf   : > { %2687 = vmatpush3.bf16.msra.mxu1 (!%p177_p3), %v3023_v2  ;;  %vm3437_vm5 = vmor (!%p177_p3), %vm665_vm3, %vm666_vm4 }
  0x10   : > { %s3789_s16 = smov (!%p206_p5, %s3131_s16), 1  ;;  %2783 = vmatpush3.bf16.msra.mxu0 %v3024_v3  ;;  %2688 = vmatprep.subr.bf16.mxu1 %v3025_v4  ;;  %s3791_s30 = smov (!%p214_p6, %s2260_s30), 3 }
  0x11   : > { %s2980_s8 = smul.u32 120, %s3789_s16  ;;  %2784 = vmatprep.subr.bf16.mxu0 %v3026_v5  ;;  %s2261_s5 = sshll.u32 %s3789_s16, 2 }
  0x12   : > { %s217_s6 = sadd.s32 %s2261_s5, %s3791_s30 }
  0x13   : > { %s210_s23 = scalar_lea.vmem %s3769_s0, %s2980_s8  ;;  %2689 = vmatpush3.bf16.msra.mxu1 %v3025_v4  ;;  %s2262_s7 = sshll.u32 %s217_s6, 2 }
  0x14   : > { %2785 = vmatpush3.bf16.msra.mxu0 %v3026_v5  ;;  %2690 = vmatprep.subr.bf16.mxu1 %v3027_v6  ;;  %s3239_s28 = scalar_lea.vmem %s210_s23, %s2570_s13  ;;  %s219_s9 = scalar_lea.vmem %s3773_s4, %s2262_s7 }
  0x15   : > { %2786 = vmatprep.subr.bf16.mxu0 %v3028_v7  ;;  %v3245_v11 = vld [vmem:[%s3239_s28] sm:$0xf]  ;;  %v3248_v12 = vld [vmem:[%s3239_s28 + $0x4] sm:$0xf]  ;;  %v3251_v13 = vld [vmem:[%s3239_s28 + $0x8] sm:$0x1] }
  0x16   : > { %v275_v15 = vshrl.u32 %v3245_v11, 16  ;;  %v278_v16 = vshll.u32 %v3245_v11, 16  ;;  %v284_v18 = vshll.u32 %v3248_v12, 16  ;;  %v288_v19 = vshrl.u32 %v3248_v12, 16  ;;  %v2376_v27 = vld [vmem:[%s3239_s28 + $0xc] sm:$0xf] }
  0x17   : > { %2691 = vmatpush3.bf16.msra.mxu1 %v3027_v6  ;;  %v294_v20 = vshll.u32 %v3251_v13, 16  ;;  %v3269_v29 = vld [vmem:[%s3239_s28 + $0x10] sm:$0xf]  ;;  %v3272_v30 = vld [vmem:[%s3239_s28 + $0x14] sm:$0x1]  ;;  %v1037_v31 = vshrl.u32 %v2376_v27, 16 }
  0x18   : > { %2787 = vmatpush3.bf16.msra.mxu0 %v3028_v7  ;;  %2692 = vmatprep.subr.bf16.mxu1 %v3029_v8  ;;  %v277_v21 = vrot.slane %v275_v15, 4  ;;  %v280_v22 = vrot.slane %v278_v16, 5  ;;  %v286_v24 = vrot.slane %v284_v18, 5  ;;  %v290_v25 = vrot.slane %v288_v19, 4  ;;  %v3290_v47 = vld [vmem:[%s3239_s28 + $0xc] sm:$0xf] }
  0x19   : > { %2788 = vmatprep.subr.bf16.mxu0 %v3030_v9  ;;  %v296_v26 = vrot.slane %v294_v20, 5  ;;  %v1040_v32 = vshll.u32 %v2376_v27, 16  ;;  %v1046_v36 = vshll.u32 %v3269_v29, 16  ;;  %v1050_v37 = vshrl.u32 %v3269_v29, 16  ;;  %v3295_v50 = vld [vmem:[%s3239_s28 + $0x10] sm:$0xf] }
  0x1a   : > { %v281_v28 = vor.u32 %v280_v22, %v277_v21  ;;  %v291_v35 = vor.u32 %v290_v25, %v286_v24  ;;  %v1056_v38 = vshll.u32 %v3272_v30, 16  ;;  %v1039_v41 = vrot.slane %v1037_v31, 4  ;;  %v3298_v51 = vld [vmem:[%s3239_s28 + $0x14] sm:$0x1]  ;;  %v2379_v58 = vld [vmem:[%s3239_s28 + $0x18] sm:$0xf] }
  0x1b   : > { %2693 = vmatpush3.bf16.msra.mxu1 %v3029_v8  ;;  %v1042_v42 = vrot.slane %v1040_v32, 5  ;;  %v1048_v44 = vrot.slane %v1046_v36, 5  ;;  %v1052_v45 = vrot.slane %v1050_v37, 4  ;;  %v299_v52 = vshrl.u32 %v3290_v47, 16  ;;  %v3308_v59 = vld [vmem:[%s3239_s28 + $0x1c] sm:$0xf] }
  0x1c   : > { %2789 = vmatpush3.bf16.msra.mxu0 %v3030_v9  ;;  %2694 = vmatprep.subr.bf16.mxu1 %v3031_v10  ;;  %v282_v40 = vrot.slane %v281_v28, 4  ;;  %v292_v43 = vrot.slane %v291_v35, 4  ;;  %v1058_v46 = vrot.slane %v1056_v38, 5  ;;  %v302_v53 = vshll.u32 %v3290_v47, 16  ;;  %v3314_v1 = vld [vmem:[%s3239_s28 + $0x20] sm:$0x1] }
  0x1d   : > { %2790 = vmatprep.subr.bf16.mxu0 %v3032_v14  ;;  %v1043_v49 = vor.u32 %v1042_v42, %v1039_v41  ;;  %v1053_v55 = vor.u32 %v1052_v45, %v1048_v44  ;;  %v308_v56 = vshll.u32 %v3295_v50, 16  ;;  %v312_v57 = vshrl.u32 %v3295_v50, 16  ;;  %v3038_v7 = vld [vmem:[%s3770_s1 + $0x140] sm:$0xff]   ;;  %v3040_v41 = vld [vmem:[%s3770_s1 + $0x148] sm:$0xff]   ;;  %v3041_v42 = vld [vmem:[%s3770_s1 + $0x10] sm:$0xff]  }
  0x1e   : > { %v287_v48 = vsel %vm3279_vm2, %v282_v40, %v286_v24  ;;  %v297_v54 = vsel %vm3279_vm2, %v292_v43, %v296_v26  ;;  %v301_v63 = vrot.slane %v299_v52, 4  ;;  %v304_v0 = vrot.slane %v302_v53, 5  ;;  %v3347_v45 = vld [vmem:[%s3239_s28 + $0x18] sm:$0xf] }
  0x1f   : > { %2695 = vmatpush3.bf16.msra.mxu1 %v3031_v10  ;;  %v2282_v60 = vcombine.low %v287_v48, %v297_v54  ;;  %v1044_v62 = vrot.slane %v1043_v49, 4  ;;  %v1054_v2 = vrot.slane %v1053_v55, 4  ;;  %v310_v3 = vrot.slane %v308_v56, 5  ;;  %v3353_v48 = vld [vmem:[%s3239_s28 + $0x20] sm:$0x1]  ;;  %v3043_v52 = vld [vmem:[%s3770_s1 + $0x18] sm:$0xff]  }
  0x20   : > { %2791 = vmatpush3.bf16.msra.mxu0 %v3032_v14  ;;  %2696 = vmatprep.subr.bf16.mxu1 %v3033_v17  ;;  %v314_v4 = vrot.slane %v312_v57, 4  ;;  %v318_v5 = vshll.u32 %v3298_v51, 16  ;;  %v305_v8 = vor.u32 %v304_v0, %v301_v63  ;;  %v1061_v9 = vshrl.u32 %v2379_v58, 16  ;;  %v3368_v0 = vld [vmem:[%s3239_s28 + $0x28] sm:$0xf] }
  0x21   : > { %2792 = vmatprep.subr.bf16.mxu0 %v3034_v23  ;;  %2700 = vmatprep.mubr.bf16.mxu1 %v2282_v60  ;;  %v1049_v6 = vsel %vm3279_vm2, %v1044_v62, %v1048_v44  ;;  %v1059_v10 = vsel %vm3279_vm2, %v1054_v2, %v1058_v46  ;;  %v1064_v16 = vshll.u32 %v2379_v58, 16  ;;  %v1070_v20 = vshll.u32 %v3308_v59, 16  ;;  %v3350_v46 = vld [vmem:[%s3239_s28 + $0x1c] sm:$0xf]  ;;  %v2382_v58 = vld [vmem:[%s3239_s28 + $0x24] sm:$0xf] }
  0x22   : > { %v315_v14 = vor.u32 %v314_v4, %v310_v3  ;;  %v320_v15 = vrot.slane %v318_v5, 5  ;;  %v306_v18 = vrot.slane %v305_v8, 4  ;;  %v1063_v19 = vrot.slane %v1061_v9, 4  ;;  %v3042_v60 = vld [vmem:[%s3770_s1 + $0x150] sm:$0xff]   ;;  %v3371_v5 = vld [vmem:[%s3239_s28 + $0x2c] sm:$0x1] }
  0x23   : > { %2697 = vmatpush3.bf16.msra.mxu1 %v3033_v17  ;;  %v2404_v17 = vcombine.low %v1049_v6, %v1059_v10  ;;  %v1066_v22 = vrot.slane %v1064_v16, 5  ;;  %v1080_v24 = vshll.u32 %v3314_v1, 16  ;;  %v1072_v26 = vrot.slane %v1070_v20, 5  ;;  %v3045_v9 = vld [vmem:[%s3770_s1 + $0x20] sm:$0xff]  }
  0x24   : > { %2793 = vmatpush3.bf16.msra.mxu0 %v3034_v23  ;;  %2698 = vmatprep.subr.bf16.mxu1 %v3035_v33  ;;  %v316_v21 = vrot.slane %v315_v14, 4  ;;  %v1074_v23 = vshrl.u32 %v3308_v59, 16  ;;  %v311_v25 = vsel %vm3279_vm2, %v306_v18, %v310_v3  ;;  %v1307_v38 = vrot.slane %v3272_v30, 5 }
  0x25   : > { %2794 = vmatprep.subr.bf16.mxu0 %v3036_v39  ;;  %2796 = vmatprep.mubr.bf16.mxu0 %v2404_v17  ;;  %v1067_v28 = vor.u32 %v1066_v22, %v1063_v19  ;;  %v1082_v37 = vrot.slane %v1080_v24, 5  ;;  %v1304_v43 = vrot.slane %v3269_v29, 5  ;;  %v323_v53 = vshrl.u32 %v3347_v45, 16  ;;  %v3380_v19 = vld [vmem:[%s3239_s28 + $0x24] sm:$0xf] }
  0x26   : > { %v321_v27 = vsel %vm3279_vm2, %v316_v21, %v320_v15  ;;  %v1076_v31 = vrot.slane %v1074_v23, 4  ;;  %v326_v54 = vshll.u32 %v3347_v45, 16  ;;  %v332_v55 = vshll.u32 %v3350_v46, 16  ;;  %v3383_v23 = vld [vmem:[%s3239_s28 + $0x28] sm:$0xf] }
  0x27   : > { %2699 = vmatpush3.bf16.msra.mxu1 %v3035_v33  ;;  %v2283_v32 = vcombine.low %v311_v25, %v321_v27  ;;  %v3039_v33 = vld [vmem:[%s3770_s1 + $0x8] sm:$0xff]   ;;  %v1068_v35 = vrot.slane %v1067_v28, 4  ;;  %v336_v56 = vshrl.u32 %v3350_v46, 16  ;;  %v342_v57 = vshll.u32 %v3353_v48, 16  ;;  %v3044_v25 = vld [vmem:[%s3770_s1 + $0x158] sm:$0xff]  }
  0x28   : > { %2795 = vmatpush3.bf16.msra.mxu0 %v3036_v39  ;;  %2708 = vmatprep.subr.bf16.mxu1 %v3037_v61  ;;  %v1077_v36 = vor.u32 %v1076_v31, %v1072_v26  ;;  %v328_v62 = vrot.slane %v326_v54, 5  ;;  %v334_v63 = vrot.slane %v332_v55, 5  ;;  %v1085_v2 = vshrl.u32 %v2382_v58, 16  ;;  %v3390_v28 = vld [vmem:[%s3239_s28 + $0x2c] sm:$0x1]  ;;  %v3046_v54 = vld [vmem:[%s3770_s1 + $0x160] sm:$0xff]  }
  0x29   : > { %2804 = vmatprep.subr.bf16.mxu0 %v3038_v7  ;;  %v1073_v39 = vsel %vm3279_vm2, %v1068_v35, %v1072_v26  ;;  %v338_v3 = vrot.slane %v336_v56, 4  ;;  %v344_v4 = vrot.slane %v342_v57, 5  ;;  %v1088_v6 = vshll.u32 %v2382_v58, 16  ;;  %v3047_v55 = vld [vmem:[%s3770_s1 + $0x28] sm:$0xff]  }
  0x2a   : > { %2701 = vmatmul.mubr.bf16.vlgmr.msra.gmra.mrb[0].mxu1 %v2283_v32  ;;  %v1078_v40 = vrot.slane %v1077_v36, 4  ;;  %v1094_v8 = vshll.u32 %v3368_v0, 16  ;;  %v1087_v14 = vrot.slane %v1085_v2, 4  ;;  %v1098_v15 = vshrl.u32 %v3368_v0, 16 }
  0x2b   : > { %2709 = vmatpush3.bf16.msra.mxu1 %v3037_v61  ;;  %v325_v61 = vrot.slane %v323_v53, 4  ;;  %v339_v16 = vor.u32 %v338_v3, %v334_v63  ;;  %v1090_v17 = vrot.slane %v1088_v6, 5  ;;  %v347_v24 = vshrl.u32 %v3380_v19, 16  ;;  %v3404_v53 = vld [vmem:[%s3239_s28 + $0x38] sm:$0x1] }
  0x2c   : > { %2710 = vmatprep.subr.bf16.mxu1 %v3039_v33  ;;  %v1083_v44 = vsel %vm3279_vm2, %v1078_v40, %v1082_v37  ;;  %v1096_v18 = vrot.slane %v1094_v8, 5  ;;  %v1100_v21 = vrot.slane %v1098_v15, 4  ;;  %v350_v31 = vshll.u32 %v3380_v19, 16  ;;  %v3399_v40 = vld [vmem:[%s3239_s28 + $0x34] sm:$0xf] }
  0x2d   : > { %v2405_v49 = vcombine.low %v1073_v39, %v1083_v44  ;;  %v329_v10 = vor.u32 %v328_v62, %v325_v61  ;;  %v340_v26 = vrot.slane %v339_v16, 4  ;;  %v1091_v27 = vor.u32 %v1090_v17, %v1087_v14  ;;  %v2385_v39 = vld [vmem:[%s3239_s28 + $0x30] sm:$0xf] }
  0x2e   : > { %v356_v32 = vshll.u32 %v3383_v23, 16  ;;  %v1101_v35 = vor.u32 %v1100_v21, %v1096_v18  ;;  %v349_v36 = vrot.slane %v347_v24, 4  ;;  %v360_v37 = vshrl.u32 %v3383_v23, 16  ;;  %v2416_v21 = vld [vmem:[%s3239_s28 + $0xc] sm:$0xe] }
  0x2f   : > { %2711 = vmatpush3.bf16.msra.mxu1 %v3039_v33  ;;  %2797 = vmatmul.mubr.bf16.vlgmr.msra.gmra.mrb[0].mxu0 %v2405_v49  ;;  %v330_v20 = vrot.slane %v329_v10, 4  ;;  %v352_v44 = vrot.slane %v350_v31, 5  ;;  %v366_v58 = vshll.u32 %v3390_v28, 16  ;;  %v1112_v2 = vshll.u32 %v2385_v39, 16 }
  0x30   : > { %2712 = vmatprep.subr.bf16.mxu1 %v3041_v42  ;;  %2805 = vmatpush3.bf16.msra.mxu0 %v3038_v7  ;;  %v1104_v7 = vshll.u32 %v3371_v5, 16  ;;  %v358_v49 = vrot.slane %v356_v32, 5  ;;  %v1102_v57 = vrot.slane %v1101_v35, 4  ;;  %v1118_v8 = vshll.u32 %v3399_v40, 16 }
  0x31   : > { %2806 = vmatprep.subr.bf16.mxu0 %v3040_v41  ;;  %v335_v33 = vsel %vm3279_vm2, %v330_v20, %v334_v63  ;;  %v353_v62 = vor.u32 %v352_v44, %v349_v36  ;;  %v1109_v63 = vshrl.u32 %v2385_v39, 16  ;;  %v368_v6 = vrot.slane %v366_v58, 5  ;;  %v3050_v39 = vld [vmem:[%s3770_s1 + $0x170] sm:$0xff]  }
  0x32   : > { %v1106_v22 = vrot.slane %v1104_v7, 5  ;;  %v1114_v7 = vrot.slane %v1112_v2, 5  ;;  %v1120_v17 = vrot.slane %v1118_v8, 5  ;;  %v1128_v20 = vshll.u32 %v3404_v53, 16 }
  0x33   : > { %2713 = vmatpush3.bf16.msra.mxu1 %v3041_v42  ;;  %v1092_v42 = vrot.slane %v1091_v27, 4  ;;  %v354_v14 = vrot.slane %v353_v62, 4  ;;  %v1111_v15 = vrot.slane %v1109_v63, 4  ;;  %v2436_v24 = vrot.slane %v2416_v21, 9  ;;  %v3048_v27 = vld [vmem:[%s3770_s1 + $0x168] sm:$0xff]  }
  0x34   : > { %2714 = vmatprep.subr.bf16.mxu1 %v3043_v52  ;;  %2807 = vmatpush3.bf16.msra.mxu0 %v3040_v41  ;;  %v345_v41 = vsel %vm3279_vm2, %v340_v26, %v344_v4  ;;  %v1107_v3 = vsel %vm3279_vm2, %v1102_v57, %v1106_v22  ;;  %v1306_v26 = vrot.slane %v1304_v43, 4  ;;  %v1311_v35 = vrot.slane %v3308_v59, 5 }
  0x35   : > { %2808 = vmatprep.subr.bf16.mxu0 %v3042_v60  ;;  %v2284_v56 = vcombine.low %v335_v33, %v345_v41  ;;  %v1097_v61 = vsel %vm3279_vm2, %v1092_v42, %v1096_v18  ;;  %v1122_v18 = vshrl.u32 %v3399_v40, 16  ;;  %v1115_v22 = vor.u32 %v1114_v7, %v1111_v15 }
  0x36   : > { %v2406_v10 = vcombine.low %v1097_v61, %v1107_v3  ;;  %v1130_v42 = vrot.slane %v1128_v20, 5  ;;  %v1305_v59 = vsel %vm3437_vm5, %v2436_v24, %v1304_v43  ;;  %v1308_v44 = vsel %vm3437_vm5, %v1306_v26, %v1307_v38  ;;  %v3054_v38 = vld [vmem:[%s3770_s1 + $0x80] sm:$0xff]  }
  0x37   : > { %2715 = vmatpush3.bf16.msra.mxu1 %v3043_v52  ;;  %v362_v52 = vrot.slane %v360_v37, 4  ;;  %2704 = vmatprep.mubr.bf16.mxu1 %v2284_v56  ;;  %v1124_v32 = vrot.slane %v1122_v18, 4  ;;  %v1116_v37 = vrot.slane %v1115_v22, 4  ;;  %v673_v57 = vrot.slane %v3251_v13, 5  ;;  %v636_v20 = vld [vmem:[%s3239_s28] sm:$0xe] }
  0x38   : > { %2716 = vmatprep.subr.bf16.mxu1 %v3045_v9  ;;  %2809 = vmatpush3.bf16.msra.mxu0 %v3042_v60  ;;  %v3049_v60 = vld [vmem:[%s3770_s1 + $0x30] sm:$0xff]   ;;  %v1314_v29 = vrot.slane %v3314_v1, 5  ;;  %v1313_v43 = vrot.slane %v1311_v35, 4  ;;  %v2295_v1 = vcombine.low %v3290_v47, %v3295_v50  ;;  %v1321_v62 = vrot.slane %v3371_v5, 5 }
  0x39   : > { %2810 = vmatprep.subr.bf16.mxu0 %v3044_v25  ;;  %v363_v4 = vor.u32 %v362_v52, %v358_v49  ;;  %2800 = vmatprep.mubr.bf16.mxu0 %v2406_v10  ;;  %v1125_v41 = vor.u32 %v1124_v32, %v1120_v17  ;;  %v2440_v52 = vcombine.low %v1305_v59, %v1308_v44  ;;  %v680_v63 = vrot.slane %v3298_v51, 5  ;;  %v3055_v51 = vld [vmem:[%s3770_s1 + $0x180] sm:$0xff]   ;;  %v637_v32 = vld [vmem:[%s3239_s28 + $0xc] sm:$0xe]  ;;  %v3074_v59 = vld [vmem:[%s3239_s28 + $0x18] sm:$0xff]  }
  0x3a   : > { %v2296_v2 = vcombine.low %v3347_v45, %v3350_v46  ;;  %v670_v3 = vrot.slane %v3248_v12, 5  ;;  %v1325_v47 = vrot.slane %v3399_v40, 5  ;;  %v2418_v45 = vld [vmem:[%s3239_s28 + $0x24] sm:$0xe]  ;;  %v3059_v40 = vld [vmem:[%s3770_s1 + $0x90] sm:$0xff]   ;;  %v2297_v22 = vcombine.low %v3380_v19, %v3383_v23  ;;  %v3062_v44 = vld [vmem:[%s3770_s1 + $0x198] sm:$0xff]  }
  0x3b   : > { %2717 = vmatpush3.bf16.msra.mxu1 %v3045_v9  ;;  %v364_v16 = vrot.slane %v363_v4, 4  ;;  %v359_v9 = vsel %vm3279_vm2, %v354_v14, %v358_v49  ;;  %v2417_v49 = vld [vmem:[%s3239_s28 + $0x18] sm:$0xe]  ;;  %v1126_v56 = vrot.slane %v1125_v41, 4  ;;  %v3057_v4 = vld [vmem:[%s3770_s1 + $0x88] sm:$0xff]   ;;  %v2438_v8 = vrot.slane %v2418_v45, 9 }
  0x3c   : > { %2718 = vmatprep.subr.bf16.mxu1 %v3047_v55  ;;  %2811 = vmatpush3.bf16.msra.mxu0 %v3044_v25  ;;  %v2294_v25 = vcombine.low %v3245_v11, %v3248_v12  ;;  %v3051_v11 = vld [vmem:[%s3770_s1 + $0x38] sm:$0xff]   ;;  %v2437_v13 = vrot.slane %v2417_v49, 9  ;;  %v1315_v12 = vsel %vm3437_vm5, %v1313_v43, %v1314_v29  ;;  %v672_v10 = vrot.slane %v670_v3, 4  ;;  %v2419_v14 = vld [vmem:[%s3239_s28 + $0x30] sm:$0xe]  ;;  %v3063_v41 = vld [vmem:[%s3770_s1 + $0xa0] sm:$0xff]  }
  0x3d   : > { %2812 = vmatprep.subr.bf16.mxu0 %v3046_v54  ;;  %v369_v31 = vsel %vm3279_vm2, %v364_v16, %v368_v6  ;;  %v1131_v30 = vsel %vm3279_vm2, %v1126_v56, %v1130_v42  ;;  %v677_v6 = vrot.slane %v3295_v50, 5  ;;  %v1327_v7 = vrot.slane %v1325_v47, 4  ;;  %v3065_v49 = vld [vmem:[%s3770_s1 + $0xa8] sm:$0xff]   ;;  %v3068_v56 = vld [vmem:[%s3770_s1 + $0xb0] sm:$0xff]   ;;  %v3071_v43 = vld [vmem:[%s3770_s1 + $0xb8] sm:$0xff]  }
  0x3e   : > { %v2285_v36 = vcombine.low %v359_v9, %v369_v31  ;;  %v1312_v5 = vsel %vm3437_vm5, %v2437_v13, %v1311_v35  ;;  %v1328_v16 = vrot.slane %v3404_v53, 5  ;;  %v2439_v18 = vrot.slane %v2419_v14, 9  ;;  %v3058_v9 = vld [vmem:[%s3770_s1 + $0x188] sm:$0xff]   ;;  %v2490_v13 = vld [vmem:[%s3239_s28 + $0x18] sm:$0xf] }
  0x3f   : > { %2719 = vmatpush3.bf16.msra.mxu1 %v3047_v55  ;;  %v1121_v55 = vsel %vm3279_vm2, %v1116_v37, %v1120_v17  ;;  %v2441_v15 = vcombine.low %v1312_v5, %v1315_v12  ;;  %v679_v21 = vrot.slane %v677_v6, 4  ;;  %v2322_v24 = vrot.slane %v636_v20, 9  ;;  %v3060_v37 = vld [vmem:[%s3770_s1 + $0x190] sm:$0xff]   ;;  %v3066_v29 = vld [vmem:[%s3770_s1 + $0x1a8] sm:$0xff]  }
  0x40   : > { %2720 = vmatprep.subr.bf16.mxu1 %v3049_v60  ;;  %2813 = vmatpush3.bf16.msra.mxu0 %v3046_v54  ;;  %v1318_v54 = vrot.slane %v3368_v0, 5  ;;  %v2407_v58 = vcombine.low %v1121_v55, %v1131_v30  ;;  %v3052_v0 = vld [vmem:[%s3770_s1 + $0x178] sm:$0xff]   ;;  %v674_v26 = vsel %vm3437_vm5, %v672_v10, %v673_v57  ;;  %v1326_v19 = vsel %vm3437_vm5, %v2439_v18, %v1325_v47  ;;  %v3064_v55 = vld [vmem:[%s3770_s1 + $0x1a0] sm:$0xff]   ;;  %v3077_v10 = vld [vmem:[%s3770_s1 + $0xc8] sm:$0xff]  }
  0x41   : > { %2705 = vmatmul.mubr.bf16.gmra.mrb[4].mxu1 %v2285_v36  ;;  %2814 = vmatprep.subr.bf16.mxu0 %v3048_v27  ;;  %v3509_v53 = vsel %vm3437_vm5, %v679_v21, %v680_v63  ;;  %v671_v31 = vsel %vm3437_vm5, %v2322_v24, %v670_v3  ;;  %v2323_v36 = vrot.slane %v637_v32, 9  ;;  %v638_v57 = vld [vmem:[%s3239_s28 + $0x18] sm:$0xe]  ;;  %v687_v30 = vrot.slane %v3353_v48, 5  ;;  %v3079_v18 = vld [vmem:[%s3770_s1 + $0xd0] sm:$0xff]   ;;  %v3078_v21 = vld [vmem:[%s3770_s1 + $0x1c8] sm:$0xff]  }
  0x42   : > { %2724 = vmatprep.mubr.bf16.mxu1 %v2294_v25  ;;  %v1320_v61 = vrot.slane %v1318_v54, 4  ;;  %2801 = vmatmul.mubr.bf16.gmra.mrb[4].mxu0 %v2407_v58  ;;  %v1319_v50 = vsel %vm3437_vm5, %v2438_v8, %v1318_v54  ;;  %v1329_v25 = vsel %vm3437_vm5, %v1327_v7, %v1328_v16  ;;  %v2326_v35 = vcombine.low %v671_v31, %v674_v26  ;;  %v3076_v7 = vld [vmem:[%s3239_s28 + $0x24] sm:$0xff]   ;;  %v3087_v20 = vld [vmem:[%s3239_s28 + $0x30] sm:$0xff]  }
  0x43   : > { %2721 = vmatpush3.bf16.msra.mxu1 %v3049_v60  ;;  %2820 = vmatprep.mubr.bf16.mxu0 %v2440_v52  ;;  %v2443_v42 = vcombine.low %v1326_v19, %v1329_v25  ;;  %v684_v54 = vrot.slane %v3350_v46, 5  ;;  %v3069_v52 = vld [vmem:[%s3770_s1 + $0x1b0] sm:$0xff]   ;;  %v691_v58 = vrot.slane %v3383_v23, 5  ;;  %v1671_v63 = vshrl.u32 %v2490_v13, 16  ;;  %v3072_v23 = vld [vmem:[%s3770_s1 + $0x1b8] sm:$0xff]   ;;  %v3083_v25 = vld [vmem:[%s3770_s1 + $0xe0] sm:$0xff]  }
  0x44   : > { %2722 = vmatprep.subr.bf16.mxu1 %v3051_v11  ;;  %2815 = vmatpush3.bf16.msra.mxu0 %v3048_v27  ;;  %v1322_v60 = vsel %vm3437_vm5, %v1320_v61, %v1321_v62  ;;  %v3061_v27 = vld [vmem:[%s3770_s1 + $0x98] sm:$0xff]   ;;  %v639_v61 = vld [vmem:[%s3239_s28 + $0x24] sm:$0xe]  ;;  %v3080_v31 = vld [vmem:[%s3770_s1 + $0x1d0] sm:$0xff]  }
  0x45   : > { %2816 = vmatprep.subr.bf16.mxu0 %v3050_v39  ;;  %v2442_v17 = vcombine.low %v1319_v50, %v1322_v60  ;;  %v686_v46 = vrot.slane %v684_v54, 4  ;;  %v3569_v62 = vld [vmem:[%s3239_s28 + $0x1c] sm:$0xf]  ;;  %v693_v47 = vrot.slane %v691_v58, 4  ;;  %v1673_v5 = vrot.slane %v1671_v63, 4 }
  0x46   : > { %v1680_v3 = vshll.u32 %v3569_v62, 16 }
  0x47   : > { %2723 = vmatpush3.bf16.msra.mxu1 %v3051_v11 }
  0x48   : > { %2732 = vmatprep.subr.bf16.mxu1 %v3054_v38  ;;  %2817 = vmatpush3.bf16.msra.mxu0 %v3050_v39  ;;  %v3526_v39 = vsel %vm3437_vm5, %v2323_v36, %v677_v6  ;;  %v2325_v6 = vrot.slane %v639_v61, 9  ;;  %v1682_v8 = vrot.slane %v1680_v3, 5  ;;  %v3089_v36 = vld [vmem:[%s3239_s28 + $0x3c] sm:$0xff]  }
  0x49   : > { %2818 = vmatprep.subr.bf16.mxu0 %v3052_v0  ;;  %v2327_v11 = vcombine.low %v3526_v39, %v3509_v53  ;;  %v3093_v53 = vld [vmem:[%s3239_s28 + $0xc] sm:$0xff]   ;;  %v3650_v3 = vld [vmem:[%s3239_s28 + $0x40] sm:$0xf] }
  0x4a   : > { %2725 = vmatmul.mubr.bf16.vlgmr.msra.gmra.mrb[0].mxu1 %v2295_v1  ;;  %v688_v1 = vsel %vm3437_vm5, %v686_v46, %v687_v30  ;;  %v692_v16 = vsel %vm3437_vm5, %v2325_v6, %v691_v58 }
  0x4b   : > { %2733 = vmatpush3.bf16.msra.mxu1 %v3054_v38  ;;  %2728 = vmatprep.mubr.bf16.mxu1 %v2296_v2  ;;  %v2324_v38 = vrot.slane %v638_v57, 9  ;;  %v1674_v2 = vshll.u32 %v2490_v13, 16  ;;  %v3086_v13 = vld [vmem:[%s3770_s1 + $0x1e8] sm:$0xff]  }
  0x4c   : > { %2734 = vmatprep.subr.bf16.mxu1 %v3057_v4  ;;  %2819 = vmatpush3.bf16.msra.mxu0 %v3052_v0  ;;  %v3073_v0 = vld [vmem:[%s3770_s1 + $0xc0] sm:$0xff]  }
  0x4d   : > { %2828 = vmatprep.subr.bf16.mxu0 %v3055_v51  ;;  %v685_v48 = vsel %vm3437_vm5, %v2324_v38, %v684_v54  ;;  %v1676_v12 = vrot.slane %v1674_v2, 5  ;;  %v3088_v38 = vld [vmem:[%s3770_s1 + $0xf0] sm:$0xff]  }
  0x4e   : > { %v2328_v45 = vcombine.low %v685_v48, %v688_v1  ;;  %v3644_v48 = vld [vmem:[%s3239_s28 + $0x2c] sm:$0x1] }
  0x4f   : > { %2735 = vmatpush3.bf16.msra.mxu1 %v3057_v4  ;;  %2821 = vmatmul.mubr.bf16.vlgmr.msra.gmra.mrb[0].mxu0 %v2441_v15  ;;  %v1684_v4 = vshrl.u32 %v3569_v62, 16  ;;  %v1677_v14 = vor.u32 %v1676_v12, %v1673_v5  ;;  %v1714_v12 = vshll.u32 %v3644_v48, 16 }
  0x50   : > { %2736 = vmatprep.subr.bf16.mxu1 %v3059_v40  ;;  %2829 = vmatpush3.bf16.msra.mxu0 %v3055_v51  ;;  %v694_v51 = vrot.slane %v3390_v28, 5  ;;  %v3075_v28 = vld [vmem:[%s3770_s1 + $0x1c0] sm:$0xff]  }
  0x51   : > { %2824 = vmatprep.mubr.bf16.mxu0 %v2442_v17  ;;  %2830 = vmatprep.subr.bf16.mxu0 %v3058_v9  ;;  %v1686_v60 = vrot.slane %v1684_v4, 4  ;;  %v3653_v4 = vld [vmem:[%s3239_s28 + $0x38] sm:$0x1] }
  0x52   : > { %2729 = vmatmul.mubr.bf16.gmra.mrb[4].mxu1 %v2297_v22  ;;  %v695_v17 = vsel %vm3437_vm5, %v693_v47, %v694_v51  ;;  %v1678_v22 = vrot.slane %v1677_v14, 4  ;;  %v3091_v47 = vld [vmem:[%s3770_s1 + $0xf8] sm:$0xff]  }
  0x53   : > { %2737 = vmatpush3.bf16.msra.mxu1 %v3059_v40  ;;  %2748 = vmatprep.mubr.bf16.mxu1 %v2326_v35  ;;  %v3578_v40 = vld [vmem:[%s3239_s28 + $0x20] sm:$0x1]  ;;  %v1687_v15 = vor.u32 %v1686_v60, %v1682_v8  ;;  %v3082_v35 = vld [vmem:[%s3770_s1 + $0x1d8] sm:$0xff]   ;;  %v1756_v60 = vshrl.u32 %v3650_v3, 16 }
  0x54   : > { %2738 = vmatprep.subr.bf16.mxu1 %v3061_v27  ;;  %2831 = vmatpush3.bf16.msra.mxu0 %v3058_v9  ;;  %v1690_v50 = vshll.u32 %v3578_v40, 16  ;;  %v2329_v9 = vcombine.low %v692_v16, %v695_v17  ;;  %v1683_v32 = vsel %vm3279_vm2, %v1678_v22, %v1682_v8  ;;  %v1752_v8 = vshll.u32 %v3650_v3, 16 }
  0x55   : > { %2832 = vmatprep.subr.bf16.mxu0 %v3060_v37  ;;  %v1688_v24 = vrot.slane %v1687_v15, 4  ;;  %v1738_v15 = vshll.u32 %v3653_v4, 16  ;;  %v1716_v17 = vrot.slane %v1714_v12, 5  ;;  %v3102_v12 = vld [vmem:[%s3770_s1 + $0x228] sm:$0xff]  }
  0x56   : > { %v1692_v26 = vrot.slane %v1690_v50, 5  ;;  %v3092_v50 = vld [vmem:[%s3770_s1 + $0x1f8] sm:$0xff]   ;;  %v1754_v22 = vrot.slane %v1752_v8, 5 }
  0x57   : > { %2739 = vmatpush3.bf16.msra.mxu1 %v3061_v27  ;;  %2825 = vmatmul.mubr.bf16.gmra.mrb[4].mxu0 %v2443_v42  ;;  %v3081_v27 = vld [vmem:[%s3770_s1 + $0xd8] sm:$0xff]   ;;  %v2496_v42 = vld [vmem:[%s3239_s28 + $0x30] sm:$0xf] }
  0x58   : > { %2740 = vmatprep.subr.bf16.mxu1 %v3063_v41  ;;  %2833 = vmatpush3.bf16.msra.mxu0 %v3060_v37  ;;  %v1693_v19 = vsel %vm3279_vm2, %v1688_v24, %v1692_v26  ;;  %v2493_v37 = vld [vmem:[%s3239_s28 + $0x24] sm:$0xf]  ;;  %v1719_v54 = vshrl.u32 %v2496_v42, 16  ;;  %v1722_v57 = vshll.u32 %v2496_v42, 16  ;;  %v1758_v24 = vrot.slane %v1756_v60, 4 }
  0x59   : > { %2844 = vmatprep.mubr.bf16.mxu0 %v3074_v59  ;;  %2834 = vmatprep.subr.bf16.mxu0 %v3062_v44  ;;  %v2518_v39 = vcombine.low %v1683_v32, %v1693_v19  ;;  %v3626_v59 = vld [vmem:[%s3239_s28 + $0x34] sm:$0xf]  ;;  %v2532_v26 = vld [vmem:[%s3239_s28 + $0x30] sm:$0xe]  ;;  %v1740_v32 = vrot.slane %v1738_v15, 5  ;;  %v1955_v42 = vrot.slane %v3653_v4, 5 }
  0x5a   : > { %v1732_v30 = vshrl.u32 %v3626_v59, 16  ;;  %v1721_v1 = vrot.slane %v1719_v54, 4  ;;  %v1724_v61 = vrot.slane %v1722_v57, 5  ;;  %v3677_v19 = vld [vmem:[%s3239_s28 + $0x44] sm:$0x1]  ;;  %v1938_v54 = vrot.slane %v3569_v62, 5 }
  0x5b   : > { %2741 = vmatpush3.bf16.msra.mxu1 %v3063_v41  ;;  %v3619_v41 = vld [vmem:[%s3239_s28 + $0x28] sm:$0xf]  ;;  %v2530_v57 = vld [vmem:[%s3239_s28 + $0x18] sm:$0xe]  ;;  %v2533_v8 = vld [vmem:[%s3239_s28 + $0x3c] sm:$0xe] }
  0x5c   : > { %2742 = vmatprep.subr.bf16.mxu1 %v3065_v49  ;;  %2835 = vmatpush3.bf16.msra.mxu0 %v3062_v44  ;;  %v1695_v44 = vshrl.u32 %v2493_v37, 16  ;;  %v1734_v2 = vrot.slane %v1732_v30, 4  ;;  %v2531_v15 = vld [vmem:[%s3239_s28 + $0x24] sm:$0xe] }
  0x5d   : > { %2836 = vmatprep.subr.bf16.mxu0 %v3064_v55 }
  0x5e   : > { %v1697_v46 = vrot.slane %v1695_v44, 4  ;;  %v1759_v44 = vor.u32 %v1758_v24, %v1754_v22 }
  0x5f   : > { %2743 = vmatpush3.bf16.msra.mxu1 %v3065_v49  ;;  %v1698_v49 = vshll.u32 %v2493_v37, 16  ;;  %v2552_v37 = vrot.slane %v2532_v26, 9 }
  0x60   : > { %2744 = vmatprep.subr.bf16.mxu1 %v3068_v56  ;;  %2837 = vmatpush3.bf16.msra.mxu0 %v3064_v55  ;;  %v1704_v55 = vshll.u32 %v3619_v41, 16 }
  0x61   : > { %2838 = vmatprep.subr.bf16.mxu0 %v3066_v29 }
  0x62   : > { %v3638_v58 = vrot.slane %v1704_v55, 5 }
  0x63   : > { %2745 = vmatpush3.bf16.msra.mxu1 %v3068_v56  ;;  %v1708_v56 = vshrl.u32 %v3619_v41, 16 }
  0x64   : > { %2746 = vmatprep.subr.bf16.mxu1 %v3071_v43  ;;  %2839 = vmatpush3.bf16.msra.mxu0 %v3066_v29  ;;  %v3084_v29 = vld [vmem:[%s3770_s1 + $0x1e0] sm:$0xff]  }
  0x65   : > { %2840 = vmatprep.subr.bf16.mxu0 %v3069_v52 }
  0x67   : > { %2747 = vmatpush3.bf16.msra.mxu1 %v3071_v43  ;;  %v1728_v43 = vshll.u32 %v3626_v59, 16 }
  0x68   : > { %2756 = vmatprep.subr.bf16.mxu1 %v3073_v0  ;;  %2841 = vmatpush3.bf16.msra.mxu0 %v3069_v52  ;;  %v1700_v52 = vrot.slane %v1698_v49, 5  ;;  %v1762_v49 = vshll.u32 %v3677_v19, 16 }
  0x69   : > { %2842 = vmatprep.subr.bf16.mxu0 %v3072_v23  ;;  %v3646_v63 = vrot.slane %v1728_v43, 5  ;;  %v3099_v43 = vld [vmem:[%s3770_s1 + $0x210] sm:$0xff]  }
  0x6a   : > { %2749 = vmatmul.mubr.bf16.vlgmr.msra.gmra.mrb[0].mxu1 %v2327_v11  ;;  %v3085_v11 = vld [vmem:[%s3770_s1 + $0xe8] sm:$0xff]   ;;  %v1701_v51 = vor.u32 %v1700_v52, %v1697_v46  ;;  %v1764_v62 = vrot.slane %v1762_v49, 5 }
  0x6b   : > { %2757 = vmatpush3.bf16.msra.mxu1 %v3073_v0  ;;  %2752 = vmatprep.mubr.bf16.mxu1 %v2328_v45  ;;  %v1710_v0 = vrot.slane %v1708_v56, 4  ;;  %v1735_v14 = vor.u32 %v1734_v2, %v3646_v63  ;;  %v3100_v2 = vld [vmem:[%s3770_s1 + $0x218] sm:$0xff]  }
  0x6c   : > { %2758 = vmatprep.subr.bf16.mxu1 %v3077_v10  ;;  %2843 = vmatpush3.bf16.msra.mxu0 %v3072_v23  ;;  %v2499_v23 = vld [vmem:[%s3239_s28 + $0x3c] sm:$0xf] }
  0x6d   : > { %2852 = vmatprep.subr.bf16.mxu0 %v3075_v28  ;;  %v1711_v5 = vor.u32 %v1710_v0, %v3638_v58  ;;  %v1743_v45 = vshrl.u32 %v2499_v23, 16  ;;  %v1746_v6 = vshll.u32 %v2499_v23, 16  ;;  %v3098_v0 = vld [vmem:[%s3239_s28 + $0x30] sm:$0xff]  }
  0x6f   : > { %2759 = vmatpush3.bf16.msra.mxu1 %v3077_v10  ;;  %2845 = vmatmul.mubr.bf16.vlgmr.msra.gmra.mrb[0].mxu0 %v3076_v7  ;;  %v3090_v10 = vld [vmem:[%s3770_s1 + $0x1f0] sm:$0xff]   ;;  %v1702_v7 = vrot.slane %v1701_v51, 4  ;;  %v1712_v16 = vrot.slane %v1711_v5, 4  ;;  %v3101_v5 = vld [vmem:[%s3770_s1 + $0x220] sm:$0xff]  }
  0x70   : > { %2760 = vmatprep.subr.bf16.mxu1 %v3079_v18  ;;  %2853 = vmatpush3.bf16.msra.mxu0 %v3075_v28  ;;  %v1725_v28 = vor.u32 %v1724_v61, %v1721_v1  ;;  %v1940_v1 = vrot.slane %v1938_v54, 4  ;;  %v1941_v61 = vrot.slane %v3578_v40, 5 }
  0x71   : > { %2848 = vmatprep.mubr.bf16.mxu0 %v3087_v20  ;;  %2854 = vmatprep.subr.bf16.mxu0 %v3078_v21  ;;  %v1952_v20 = vrot.slane %v3626_v59, 5 }
  0x72   : > { %2753 = vmatmul.mubr.bf16.gmra.mrb[4].mxu1 %v2329_v9  ;;  %v1748_v9 = vrot.slane %v1746_v6, 5  ;;  %v3103_v6 = vld [vmem:[%s3770_s1 + $0x230] sm:$0xff]  }
  0x73   : > { %2761 = vmatpush3.bf16.msra.mxu1 %v3079_v18  ;;  %2772 = vmatprep.mubr.bf16.mxu1 %v3093_v53  ;;  %v3095_v18 = vld [vmem:[%s3770_s1 + $0x200] sm:$0xff]   ;;  %v3094_v53 = vld [vmem:[%s3239_s28 + $0x18] sm:$0xff]   ;;  %v1953_v30 = vsel %vm3437_vm5, %v2552_v37, %v1952_v20 }
  0x74   : > { %2762 = vmatprep.subr.bf16.mxu1 %v3081_v27  ;;  %2855 = vmatpush3.bf16.msra.mxu0 %v3078_v21  ;;  %v1745_v21 = vrot.slane %v1743_v45, 4  ;;  %v1959_v45 = vrot.slane %v3650_v3, 5  ;;  %v3104_v3 = vld [vmem:[%s3770_s1 + $0x238] sm:$0xff]  }
  0x75   : > { %2856 = vmatprep.subr.bf16.mxu0 %v3080_v31 }
  0x76   : > { %v1749_v59 = vor.u32 %v1748_v9, %v1745_v21  ;;  %v1961_v60 = vrot.slane %v1959_v45, 4 }
  0x77   : > { %2763 = vmatpush3.bf16.msra.mxu1 %v3081_v27  ;;  %2849 = vmatmul.mubr.bf16.gmra.mrb[4].mxu0 %v3089_v36  ;;  %v1726_v27 = vrot.slane %v1725_v28, 4  ;;  %v3096_v36 = vld [vmem:[%s3770_s1 + $0x208] sm:$0xff]   ;;  %v2553_v28 = vrot.slane %v2533_v8, 9 }
  0x78   : > { %2764 = vmatprep.subr.bf16.mxu1 %v3083_v25  ;;  %2857 = vmatpush3.bf16.msra.mxu0 %v3080_v31  ;;  %v1736_v31 = vrot.slane %v1735_v14, 4  ;;  %v1750_v52 = vrot.slane %v1749_v59, 4  ;;  %v1945_v14 = vrot.slane %v3619_v41, 5 }
  0x79   : > { %2868 = vmatprep.mubr.bf16.mxu0 %v2518_v39  ;;  %2858 = vmatprep.subr.bf16.mxu0 %v3082_v35  ;;  %v1954_v39 = vrot.slane %v1952_v20, 4  ;;  %v1731_v55 = vsel %vm3279_vm2, %v1726_v27, %v3646_v63 }
  0x7a   : > { %v1741_v56 = vsel %vm3279_vm2, %v1736_v31, %v1740_v32  ;;  %v1755_v23 = vsel %vm3279_vm2, %v1750_v52, %v1754_v22 }
  0x7b   : > { %2765 = vmatpush3.bf16.msra.mxu1 %v3083_v25  ;;  %v3097_v25 = vld [vmem:[%s3239_s28 + $0x24] sm:$0xff]   ;;  %v2520_v46 = vcombine.low %v1731_v55, %v1741_v56  ;;  %v2567_v55 = vld [vmem:[%s3772_s3] ss:$0 sm:$0xff] }
  0x7c   : > { %2766 = vmatprep.subr.bf16.mxu1 %v3085_v11  ;;  %2859 = vmatpush3.bf16.msra.mxu0 %v3082_v35  ;;  %v1707_v35 = vsel %vm3279_vm2, %v1702_v7, %v3638_v58  ;;  %v1760_v58 = vrot.slane %v1759_v44, 4 }
  0x7d   : > { %2860 = vmatprep.subr.bf16.mxu0 %v3084_v29 }
  0x7e   : > { %v1765_v4 = vsel %vm3279_vm2, %v1760_v58, %v1764_v62 }
  0x7f   : > { %2767 = vmatpush3.bf16.msra.mxu1 %v3085_v11  ;;  %v1717_v11 = vsel %vm3279_vm2, %v1712_v16, %v1716_v17  ;;  %v2521_v51 = vcombine.low %v1755_v23, %v1765_v4  ;;  %v2551_v16 = vrot.slane %v2531_v15, 9  ;;  %v1947_v17 = vrot.slane %v1945_v14, 4 }
  0x80   : > { %2768 = vmatprep.subr.bf16.mxu1 %v3088_v38  ;;  %2861 = vmatpush3.bf16.msra.mxu0 %v3084_v29  ;;  %v2519_v29 = vcombine.low %v1707_v35, %v1717_v11  ;;  %v2566_v11 = vld [vmem:[%s3771_s2] ss:$0 sm:$0xff] }
  0x81   : > { %2862 = vmatprep.subr.bf16.mxu0 %v3086_v13  ;;  %v1946_v41 = vsel %vm3437_vm5, %v2551_v16, %v1945_v14 }
  0x83   : > { %2769 = vmatpush3.bf16.msra.mxu1 %v3088_v38  ;;  %v1956_v38 = vsel %vm3437_vm5, %v1954_v39, %v1955_v42 }
  0x84   : > { %2770 = vmatprep.subr.bf16.mxu1 %v3091_v47  ;;  %2863 = vmatpush3.bf16.msra.mxu0 %v3086_v13  ;;  %v2550_v13 = vrot.slane %v2530_v57, 9  ;;  %v2556_v63 = vcombine.low %v1953_v30, %v1956_v38 }
  0x85   : > { %2864 = vmatprep.subr.bf16.mxu0 %v3090_v10 }
  0x86   : > { %v1939_v40 = vsel %vm3437_vm5, %v2550_v13, %v1938_v54 }
  0x87   : > { %2771 = vmatpush3.bf16.msra.mxu1 %v3091_v47  ;;  %v1942_v47 = vsel %vm3437_vm5, %v1940_v1, %v1941_v61 }
  0x88   : > { %2900 = vmatprep.subr.bf16.mxu1 %v3095_v18  ;;  %2865 = vmatpush3.bf16.msra.mxu0 %v3090_v10  ;;  %v2554_v34 = vcombine.low %v1939_v40, %v1942_v47  ;;  %v1962_v10 = vrot.slane %v3677_v19, 5 }
  0x89   : > { %2866 = vmatprep.subr.bf16.mxu0 %v3092_v50 }
  0x8a   : > { %2773 = vmatmul.mubr.bf16.vlgmr.msra.gmra.mrb[0].mxu1 %v3094_v53  ;;  %v1963_v7 = vsel %vm3437_vm5, %v1961_v60, %v1962_v10 }
  0x8b   : > { %2908 = vmatpush3.bf16.msra.mxu1 %v3095_v18  ;;  %2776 = vmatprep.mubr.bf16.mxu1 %v3097_v25 }
  0x8c   : > { %2901 = vmatprep.subr.bf16.mxu1 %v3096_v36  ;;  %2867 = vmatpush3.bf16.msra.mxu0 %v3092_v50  ;;  %v1960_v50 = vsel %vm3437_vm5, %v2553_v28, %v1959_v45 }
  0x8d   : > { %2876 = vmatprep.subr.bf16.mxu0 %v3095_v18  ;;  %v2557_v20 = vcombine.low %v1960_v50, %v1963_v7 }
  0x8f   : > { %2909 = vmatpush3.bf16.msra.mxu1 %v3096_v36  ;;  %2869 = vmatmul.mubr.bf16.vlgmr.msra.gmra.mrb[0].mxu0 %v2519_v29 }
  0x90   : > { %2902 = vmatprep.subr.bf16.mxu1 %v3099_v43  ;;  %2877 = vmatpush3.bf16.msra.mxu0 %v3095_v18  ;;  %v1948_v18 = vrot.slane %v3644_v48, 5 }
  0x91   : > { %2872 = vmatprep.mubr.bf16.mxu0 %v2520_v46  ;;  %2878 = vmatprep.subr.bf16.mxu0 %v3096_v36 }
  0x92   : > { %2777 = vmatmul.mubr.bf16.gmra.mrb[4].mxu1 %v3098_v0  ;;  %v1949_v21 = vsel %vm3437_vm5, %v1947_v17, %v1948_v18 }
  0x93   : > { %2910 = vmatpush3.bf16.msra.mxu1 %v3099_v43  ;;  %2896 = vmatprep.mubr.bf16.mxu1 %v2556_v63  ;;  %v2555_v9 = vcombine.low %v1946_v41, %v1949_v21 }
  0x94   : > { %2903 = vmatprep.subr.bf16.mxu1 %v3100_v2  ;;  %2879 = vmatpush3.bf16.msra.mxu0 %v3096_v36 }
  0x95   : > { %2880 = vmatprep.subr.bf16.mxu0 %v3099_v43 }
  0x97   : > { %2911 = vmatpush3.bf16.msra.mxu1 %v3100_v2  ;;  %2873 = vmatmul.mubr.bf16.gmra.mrb[4].mxu0 %v2521_v51 }
  0x98   : > { %2904 = vmatprep.subr.bf16.mxu1 %v3101_v5  ;;  %2881 = vmatpush3.bf16.msra.mxu0 %v3099_v43 }
  0x99   : > { %2892 = vmatprep.mubr.bf16.mxu0 %v2554_v34  ;;  %2882 = vmatprep.subr.bf16.mxu0 %v3100_v2 }
  0x9b   : > { %2912 = vmatpush3.bf16.msra.mxu1 %v3101_v5 }
  0x9c   : > { %2905 = vmatprep.subr.bf16.mxu1 %v3102_v12  ;;  %2883 = vmatpush3.bf16.msra.mxu0 %v3100_v2 }
  0x9d   : > { %2884 = vmatprep.subr.bf16.mxu0 %v3101_v5 }
  0x9f   : > { %2913 = vmatpush3.bf16.msra.mxu1 %v3102_v12 }
  0xa0   : > { %2906 = vmatprep.subr.bf16.mxu1 %v3103_v6  ;;  %2885 = vmatpush3.bf16.msra.mxu0 %v3101_v5 }
  0xa1   : > { %2886 = vmatprep.subr.bf16.mxu0 %v3102_v12 }
  0xa3   : > { %2914 = vmatpush3.bf16.msra.mxu1 %v3103_v6 }
  0xa4   : > { %2907 = vmatprep.subr.bf16.mxu1 %v3104_v3  ;;  %2887 = vmatpush3.bf16.msra.mxu0 %v3102_v12 }
  0xa5   : > { %2888 = vmatprep.subr.bf16.mxu0 %v3103_v6 }
  0xa7   : > { %2915 = vmatpush3.bf16.msra.mxu1 %v3104_v3 }
  0xa8   : > { %2889 = vmatpush3.bf16.msra.mxu0 %v3103_v6 }
  0xa9   : > { %2890 = vmatprep.subr.bf16.mxu0 %v3104_v3 }
  0xaa   : > { %2897 = vmatmul.mubr.bf16.vlgmr.msra.gmra.mrb[8].mxu1 %v2557_v20 }
  0xac   : > { %2891 = vmatpush3.bf16.msra.mxu0 %v3104_v3 }
  0xaf   : > { %2893 = vmatmul.mubr.bf16.vlgmr.msra.gmra.mrb[0].mxu0 %v2555_v9 }
 0x15d   : > { %v2774_v22 = vpop.f32.mrb[0].mxu1 }
 0x15e   : > { %v968_v24 = vpop.f32.mrb[1].mxu1 }
 0x15f   : > { %v2775_v26 = vpop.f32.mrb[2].mxu1 }
 0x160   : > { %v971_v53 = vpop.f32.mrb[3].mxu1 }
 0x165   : > { %v2778_v48 = vpop.f32.mrb[4].mxu1 }
 0x166   : > { %v984_v27 = vpop.f32.mrb[5].mxu1 }
 0x167   : > { %v2779_v31 = vpop.f32.mrb[6].mxu1 }
 0x168   : > { %v987_v32 = vpop.f32.mrb[7].mxu1 }
 0x16a   : > { %v2874_v19 = vpop.f32.mrb[4].mxu0 }
 0x16b   : > { %v2920_v25 = vadd.f32 %v2874_v19, %v2778_v48  ;;  %v1880_v35 = vpop.f32.mrb[5].mxu0 }
 0x16c   : > { %v2922_v36 = vadd.f32 %v1880_v35, %v984_v27  ;;  %v2875_v37 = vpop.f32.mrb[6].mxu0 }
 0x16d   : > { %v2924_v33 = vadd.f32 %v2875_v37, %v2779_v31  ;;  %v1883_v39 = vpop.f32.mrb[7].mxu0 }
 0x16e   : > { %v2926_v42 = vadd.f32 %v1883_v39, %v987_v32 }
 0x17d   : > { %v2898_v59 = vpop.f32.mrb[8].mxu1 }
 0x17e   : > { %v2921_v44 = vadd.f32 %v2920_v25, %v2898_v59  ;;  %v2078_v49 = vpop.f32.mrb[9].mxu1 }
 0x17f   : > { %v2923_v56 = vadd.f32 %v2922_v36, %v2078_v49  ;;  %v2899_v54 = vpop.f32.mrb[10].mxu1 }
 0x180   : > { %v2114_v57 = vmul.f32 %v2921_v44, %v2566_v11  ;;  %v2925_v29 = vadd.f32 %v2924_v33, %v2899_v54  ;;  %v2081_v43 = vpop.f32.mrb[11].mxu1 }
 0x181   : > { %v2112_v30 = vmul.f32 %v2923_v56, %v2566_v11  ;;  %v2927_v38 = vadd.f32 %v2926_v42, %v2081_v43 }
 0x182   : > { %v2129_v46 = vadd.f32 %v2567_v55, %v2114_v57  ;;  %v2115_v52 = vmul.f32 %v2925_v29, %v2566_v11  ;;  %v2894_v58 = vpop.f32.mrb[0].mxu0 }
 0x183   : > { %v2127_v62 = vadd.f32 %v2567_v55, %v2112_v30  ;;  %v2113_v0 = vmul.f32 %v2927_v38, %v2566_v11  ;;  %v2916_v13 = vadd.f32 %v2894_v58, %v2774_v22  ;;  %v2062_v61 = vpop.f32.mrb[1].mxu0 }
 0x184   : > { %v2137_v1 = vmax.f32 %v2129_v46, 0.0  ;;  %v2130_v63 = vadd.f32 %v2567_v55, %v2115_v52  ;;  %v2917_v2 = vadd.f32 %v2062_v61, %v968_v24  ;;  %v2895_v4 = vpop.f32.mrb[2].mxu0 }
 0x185   : > { %v2135_v23 = vmax.f32 %v2127_v62, 0.0  ;;  %v2128_v40 = vadd.f32 %v2567_v55, %v2113_v0  ;;  %v2110_v47 = vmul.f32 %v2916_v13, %v2566_v11  ;;  %v2918_v51 = vadd.f32 %v2895_v4, %v2775_v26  ;;  %v2065_v34 = vpop.f32.mrb[3].mxu0 }
 0x186   : > { %v2138_v5 = vmax.f32 %v2130_v63, 0.0  ;;  %v2108_v12 = vmul.f32 %v2917_v2, %v2566_v11  ;;  %v2919_v6 = vadd.f32 %v2065_v34, %v971_v53 }
 0x187   : > { %v2141_v45 = vmax.f32 %v2135_v23, %v2137_v1  ;;  %v2136_v8 = vmax.f32 %v2128_v40, 0.0  ;;  %v2125_v60 = vadd.f32 %v2567_v55, %v2110_v47  ;;  %v2111_v10 = vmul.f32 %v2918_v51, %v2566_v11 }
 0x188   : > { %v2123_v28 = vadd.f32 %v2567_v55, %v2108_v12  ;;  %v2109_v3 = vmul.f32 %v2919_v6, %v2566_v11 }
 0x189   : > { %2145 = vst [vmem:[#allocation2 + $0x10] sm:$0xff] %v2141_v45  ;;  %v2142_v14 = vmax.f32 %v2136_v8, %v2138_v5  ;;  %v2133_v15 = vmax.f32 %v2125_v60, 0.0  ;;  %v2126_v50 = vadd.f32 %v2567_v55, %v2111_v10 }
 0x18a   : > { %v2131_v7 = vmax.f32 %v2123_v28, 0.0  ;;  %v2124_v16 = vadd.f32 %v2567_v55, %v2109_v3 }
 0x18b   : > { %2146 = vst [vmem:[#allocation2 + $0x18] sm:$0xff] %v2142_v14  ;;  %v2134_v17 = vmax.f32 %v2126_v50, 0.0 }
 0x18c   : > { %v2139_v18 = vmax.f32 %v2131_v7, %v2133_v15  ;;  %v2132_v20 = vmax.f32 %v2124_v16, 0.0 }
 0x18e   : > { %2143 = vst [vmem:[#allocation2] sm:$0xff] %v2139_v18  ;;  %v2140_v41 = vmax.f32 %v2132_v20, %v2134_v17 }
 0x190   : > { %2144 = vst [vmem:[#allocation2 + $0x8] sm:$0xff] %v2140_v41 }
 0x192   : > { %v2149_v21 = vld [vmem:[#allocation2 + $0x10] ss:$2 sm:$0xff]  ;;  %v2153_v9 = vld [vmem:[#allocation2 + $0x11] ss:$2 sm:$0xff] }
 0x193   : > { %v2155_v22 = vmax.f32 %v2149_v21, %v2153_v9 }
 0x197   : > { %v2147_v24 = vld [vmem:[#allocation2] ss:$2 sm:$0xff]  ;;  %v2151_v26 = vld [vmem:[#allocation2 + $0x1] ss:$2 sm:$0xff] }
 0x198   : > { %v2154_v53 = vmax.f32 %v2147_v24, %v2151_v26 }
 0x19a   : > { %v2574_v48 = vpack.c.bf16 %v2155_v22, %v2154_v53 }
 0x19c   : > { %2575 = vst [vmem:[%s219_s9] sm:$0xff] %v2574_v48  }
 0x19d PF: > { %s14_s19 = sadd.s32 1, %s3143_s19   ;;  %s3778_s15 = smov %s3135_s17 }
 0x19e   : > { %p11_p7 = scmp.ge.s32.totalorder %s14_s19, 6   ;;  %s3779_s16 = smov %s3139_s18 }
 0x19f   : > { %s3780_s17 = smov %s3783_s20  ;;  %s3781_s18 = smov %s3787_s21 }
 0x1a0   :  { %13 = sbr.rel (!%p11_p7) target bundleno = 3 (0x3), region = 80 }

// kernel: cnn_lstm_forward.9
= control target key start
LH: loop header
LB: loop body
LE: loop exit
PB: predicated region body
PF: predicated region fallthrough
CT: control target
= control target key end

     0   :  { %s2524_s15 = smov 0   ;;  %s2526_s16 = smov 0   ;;  %s2964_s0 = inlined_call_operand.vmem [shape: bf16[2,6,10,128], index: 0, kind: input, shape index: {}]   ;;  %s2965_s1 = inlined_call_operand.vmem [shape: bf16[3,3,128,128], index: 1, kind: input, shape index: {}]   ;;  %s2966_s2 = inlined_call_operand.vmem [shape: f32[1,128], index: 2, kind: input, shape index: {}]   ;;  %s2967_s3 = inlined_call_operand.vmem [shape: f32[1,128], index: 3, kind: input, shape index: {}]   ;;  %s2968_s4 = inlined_call_operand.vmem [shape: bf16[2,2,4,128], index: 4, kind: output, shape index: {}]  }
   0x1   :  { %s2528_s17 = smov 0  }
   0x2 LB: > { %s26_s18 = sadd.s32 1, %s2493_s16  ;;  %p1799_p0 = scmp.ge.s32.totalorder %s2497_s17, 1  ;;  %s2497_s17 = sphi %s2528_s17, %s14_s17   ;;  %s2493_s16 = sphi %s2526_s16, %s2974_s16   ;;  %s2489_s15 = sphi %s2524_s15, %s2973_s15  }
   0x3   : > { %p28_p1 = scmp.ge.s32.totalorder %s26_s18, 2  ;;  %p176_p2 = scmp.lt.s32.totalorder %s2497_s17, 3 }
   0x5   : > { %s2976_s18 = smov (%p28_p1, %s26_s18), 0  ;;  %p177_p3 = pnand %p1799_p0, %p176_p2 }
   0x6   : > { %v2397_v0 = vld [vmem:[%s2965_s1 + $0x40] sm:$0xff] (!%p177_p3)   ;;  %p206_p4 = scmp.lt.s32.totalorder (!%p177_p3), %s2489_s15, 1  ;;  %v2399_v2 = vld [vmem:[%s2965_s1 + $0x48] sm:$0xff] (!%p177_p3)   ;;  %v2401_v4 = vld [vmem:[%s2965_s1 + $0x50] sm:$0xff] (!%p177_p3)   ;;  %vm267_vm0 = vsmask.f32 (!%p177_p3), 3328 }
   0x7   : > { %180 = sbr.rel (%p177_p3) target bundleno = 411 (0x19b), region = 36  ;;  %v2398_v1 = vld [vmem:[%s2965_s1 + $0x100] sm:$0xff] (!%p177_p3)   ;;  %2160 = vmatprep.subr.bf16.mxu1 (!%p177_p3), %v2397_v0  ;;  %v2400_v3 = vld [vmem:[%s2965_s1 + $0x108] sm:$0xff] (!%p177_p3)   ;;  %v2402_v5 = vld [vmem:[%s2965_s1 + $0x110] sm:$0xff] (!%p177_p3)   ;;  %vm268_vm1 = vsmask.f32 (!%p177_p3), 7440 }
   0x8   : > { %2240 = vmatprep.subr.bf16.mxu0 (!%p177_p3), %v2398_v1  ;;  %2161 = vmatpush3.bf16.msra.mxu1 (!%p177_p3), %v2397_v0  ;;  %v2403_v6 = vld [vmem:[%s2965_s1 + $0x58] sm:$0xff] (!%p177_p3)   ;;  %v2405_v8 = vld [vmem:[%s2965_s1 + $0x60] sm:$0xff] (!%p177_p3)   ;;  %v2407_v10 = vld [vmem:[%s2965_s1 + $0x68] sm:$0xff] (!%p177_p3)   ;;  %vm569_vm3 = vcmask (!%p177_p3), 1042432   ;;  %vm570_vm4 = vcmask (!%p177_p3), 1046532  }
   0x9   : > { %2241 = vmatpush3.bf16.msra.mxu0 (!%p177_p3), %v2398_v1  ;;  %2162 = vmatprep.subr.bf16.mxu1 (!%p177_p3), %v2399_v2  ;;  %v2404_v7 = vld [vmem:[%s2965_s1 + $0x118] sm:$0xff] (!%p177_p3)   ;;  %v2406_v9 = vld [vmem:[%s2965_s1 + $0x120] sm:$0xff] (!%p177_p3)   ;;  %v2408_v14 = vld [vmem:[%s2965_s1 + $0x128] sm:$0xff] (!%p177_p3)  }
   0xa   : > { %2242 = vmatprep.subr.bf16.mxu0 (!%p177_p3), %v2400_v3  ;;  %v2409_v22 = vld [vmem:[%s2965_s1 + $0x70] sm:$0xff] (!%p177_p3)   ;;  %v2411_v37 = vld [vmem:[%s2965_s1 + $0x78] sm:$0xff] (!%p177_p3)   ;;  %vm2623_vm2 = vmor (!%p177_p3), %vm267_vm0, %vm268_vm1 }
   0xb   : > { %v2410_v23 = vld [vmem:[%s2965_s1 + $0x130] sm:$0xff] (!%p177_p3)   ;;  %v2412_v47 = vld [vmem:[%s2965_s1 + $0x138] sm:$0xff] (!%p177_p3)   ;;  %v2413_v63 = vld [vmem:[%s2965_s1] sm:$0xff] (!%p177_p3)  }
   0xc   : > { %2163 = vmatpush3.bf16.msra.mxu1 (!%p177_p3), %v2399_v2  ;;  %v2655_v1 = vld [vmem:[%s2965_s1 + $0x140] sm:$0xff] (!%p177_p3)   ;;  %vm2696_vm5 = vmor (!%p177_p3), %vm569_vm3, %vm570_vm4  ;;  %v2468_v38 = vld [vmem:[%s2965_s1 + $0x208] sm:$0xff] (!%p177_p3)  }
   0xd   : > { %2243 = vmatpush3.bf16.msra.mxu0 (!%p177_p3), %v2400_v3  ;;  %2164 = vmatprep.subr.bf16.mxu1 (!%p177_p3), %v2401_v4 }
   0xe   : > { %s2978_s15 = smov (!%p206_p4, %s2489_s15), 1  ;;  %2244 = vmatprep.subr.bf16.mxu0 %v2402_v5 }
   0xf   : > { %s2372_s9 = smul.u32 48, %s2978_s15  ;;  %s2069_s22 = sshll.u32 %s2978_s15, 2 }
  0x10   : > { %2165 = vmatpush3.bf16.msra.mxu1 %v2401_v4  ;;  %s219_s25 = scalar_lea.vmem %s2968_s4, %s2069_s22 }
  0x11   : > { %2245 = vmatpush3.bf16.msra.mxu0 %v2402_v5  ;;  %2166 = vmatprep.subr.bf16.mxu1 %v2403_v6  ;;  %s2578_s20 = scalar_lea.vmem %s2964_s0, %s2372_s9 }
  0x12   : > { %2246 = vmatprep.subr.bf16.mxu0 %v2404_v7  ;;  %v2584_v11 = vld [vmem:[%s2578_s20] sm:$0xf]  ;;  %v2587_v12 = vld [vmem:[%s2578_s20 + $0x8] sm:$0xf]  ;;  %v2590_v13 = vld [vmem:[%s2578_s20 + $0x4] sm:$0x1] }
  0x13   : > { %v2596_v15 = vld [vmem:[%s2578_s20 + $0xc] sm:$0x1]  ;;  %v271_v16 = vshrl.u32 %v2584_v11, 16  ;;  %v274_v17 = vshll.u32 %v2584_v11, 16  ;;  %v280_v18 = vshll.u32 %v2590_v13, 16  ;;  %v285_v19 = vshrl.u32 %v2587_v12, 16 }
  0x14   : > { %2167 = vmatpush3.bf16.msra.mxu1 %v2403_v6  ;;  %v288_v20 = vshll.u32 %v2587_v12, 16  ;;  %v294_v21 = vshll.u32 %v2596_v15, 16  ;;  %v1899_v30 = vld [vmem:[%s2578_s20 + $0x8] sm:$0xf]  ;;  %v2612_v31 = vld [vmem:[%s2578_s20 + $0xc] sm:$0x1] }
  0x15   : > { %2247 = vmatpush3.bf16.msra.mxu0 %v2404_v7  ;;  %2168 = vmatprep.subr.bf16.mxu1 %v2405_v8  ;;  %v273_v24 = vrot.slane %v271_v16, 4  ;;  %v276_v25 = vrot.slane %v274_v17, 5  ;;  %v282_v26 = vrot.slane %v280_v18, 5  ;;  %v287_v27 = vrot.slane %v285_v19, 4  ;;  %v1901_v33 = vld [vmem:[%s2578_s20 + $0x10] sm:$0xf] }
  0x16   : > { %2248 = vmatprep.subr.bf16.mxu0 %v2406_v9  ;;  %v290_v28 = vrot.slane %v288_v20, 5  ;;  %v296_v29 = vrot.slane %v294_v21, 5  ;;  %v2616_v34 = vld [vmem:[%s2578_s20 + $0x14] sm:$0x1]  ;;  %v861_v35 = vshrl.u32 %v1899_v30, 16  ;;  %v864_v36 = vshll.u32 %v1899_v30, 16 }
  0x17   : > { %v277_v32 = vor.u32 %v276_v25, %v273_v24  ;;  %v870_v40 = vshll.u32 %v2612_v31, 16  ;;  %v875_v41 = vshrl.u32 %v1901_v33, 16  ;;  %v878_v42 = vshll.u32 %v1901_v33, 16  ;;  %v2633_v51 = vld [vmem:[%s2578_s20 + $0x10] sm:$0xf] }
  0x18   : > { %2169 = vmatpush3.bf16.msra.mxu1 %v2405_v8  ;;  %v291_v39 = vor.u32 %v290_v28, %v287_v27  ;;  %v863_v44 = vrot.slane %v861_v35, 4  ;;  %v866_v45 = vrot.slane %v864_v36, 5  ;;  %v884_v46 = vshll.u32 %v2616_v34, 16  ;;  %v2638_v55 = vld [vmem:[%s2578_s20 + $0x18] sm:$0xf] }
  0x19   : > { %2249 = vmatpush3.bf16.msra.mxu0 %v2406_v9  ;;  %2170 = vmatprep.subr.bf16.mxu1 %v2407_v10  ;;  %v278_v43 = vrot.slane %v277_v32, 4  ;;  %v877_v49 = vrot.slane %v875_v41, 4  ;;  %v880_v50 = vrot.slane %v878_v42, 5  ;;  %v872_v54 = vrot.slane %v870_v40, 5  ;;  %v2641_v56 = vld [vmem:[%s2578_s20 + $0x14] sm:$0x1] }
  0x1a   : > { %2250 = vmatprep.subr.bf16.mxu0 %v2408_v14  ;;  %v292_v48 = vrot.slane %v291_v39, 4  ;;  %v867_v53 = vor.u32 %v866_v45, %v863_v44  ;;  %v886_v59 = vrot.slane %v884_v46, 5  ;;  %v2646_v60 = vld [vmem:[%s2578_s20 + $0x1c] sm:$0x1]  ;;  %v299_v61 = vshrl.u32 %v2633_v51, 16 }
  0x1b   : > { %v283_v52 = vsel %vm2623_vm2, %v278_v43, %v282_v26  ;;  %v881_v58 = vor.u32 %v880_v50, %v877_v49  ;;  %v302_v2 = vshll.u32 %v2633_v51, 16  ;;  %v308_v3 = vshll.u32 %v2641_v56, 16  ;;  %v1903_v8 = vld [vmem:[%s2578_s20 + $0x18] sm:$0xf]  ;;  %v2666_v16 = vld [vmem:[%s2578_s20 + $0x1c] sm:$0x1] }
  0x1c   : > { %2171 = vmatpush3.bf16.msra.mxu1 %v2407_v10  ;;  %v297_v57 = vsel %vm2623_vm2, %v292_v48, %v296_v29  ;;  %v868_v0 = vrot.slane %v867_v53, 4  ;;  %v301_v5 = vrot.slane %v299_v61, 4  ;;  %v313_v6 = vshrl.u32 %v2638_v55, 16  ;;  %v1905_v17 = vld [vmem:[%s2578_s20 + $0x20] sm:$0xf]  ;;  %v2415_v43 = vld [vmem:[%s2965_s1 + $0x8] sm:$0xff]  }
  0x1d   : > { %2251 = vmatpush3.bf16.msra.mxu0 %v2408_v14  ;;  %2172 = vmatprep.subr.bf16.mxu1 %v2409_v22  ;;  %v1819_v62 = vcombine.low %v283_v52, %v297_v57  ;;  %v882_v4 = vrot.slane %v881_v58, 4  ;;  %v316_v7 = vshll.u32 %v2638_v55, 16  ;;  %v304_v10 = vrot.slane %v302_v2, 5  ;;  %v2672_v21 = vld [vmem:[%s2578_s20 + $0x24] sm:$0x1]  ;;  %v2416_v58 = vld [vmem:[%s2965_s1 + $0x148] sm:$0xff]  }
  0x1e   : > { %2252 = vmatprep.subr.bf16.mxu0 %v2410_v23  ;;  %v873_v9 = vsel %vm2623_vm2, %v868_v0, %v872_v54  ;;  %v322_v14 = vshll.u32 %v2646_v60, 16  ;;  %v315_v19 = vrot.slane %v313_v6, 4  ;;  %v310_v24 = vrot.slane %v308_v3, 5  ;;  %v2418_v0 = vld [vmem:[%s2965_s1 + $0x150] sm:$0xff]   ;;  %v1933_v2 = vld [vmem:[%s2578_s20 + $0x8] sm:$0xe] }
  0x1f   : > { %2176 = vmatprep.mubr.bf16.mxu1 %v1819_v62  ;;  %v887_v18 = vsel %vm2623_vm2, %v882_v4, %v886_v59  ;;  %v318_v20 = vrot.slane %v316_v7, 5  ;;  %v889_v27 = vshrl.u32 %v1903_v8, 16  ;;  %v892_v28 = vshll.u32 %v1903_v8, 16  ;;  %v2419_v62 = vld [vmem:[%s2965_s1 + $0x18] sm:$0xff]   ;;  %v1934_v3 = vld [vmem:[%s2578_s20 + $0x10] sm:$0xe] }
  0x20   : > { %2173 = vmatpush3.bf16.msra.mxu1 %v2409_v22  ;;  %v1923_v22 = vcombine.low %v873_v9, %v887_v18  ;;  %v324_v25 = vrot.slane %v322_v14, 5  ;;  %v898_v29 = vshll.u32 %v2666_v16, 16  ;;  %v903_v32 = vshrl.u32 %v1905_v17, 16  ;;  %v2423_v8 = vld [vmem:[%s2965_s1 + $0x28] sm:$0xff]   ;;  %v2422_v9 = vld [vmem:[%s2965_s1 + $0x160] sm:$0xff]  }
  0x21   : > { %2253 = vmatpush3.bf16.msra.mxu0 %v2410_v23  ;;  %2174 = vmatprep.subr.bf16.mxu1 %v2411_v37  ;;  %v305_v23 = vor.u32 %v304_v10, %v301_v5  ;;  %v319_v26 = vor.u32 %v318_v20, %v315_v19  ;;  %v906_v33 = vshll.u32 %v1905_v17, 16  ;;  %v912_v35 = vshll.u32 %v2672_v21, 16  ;;  %v2425_v10 = vld [vmem:[%s2965_s1 + $0x30] sm:$0xff]   ;;  %v2424_v17 = vld [vmem:[%s2965_s1 + $0x168] sm:$0xff]   ;;  %v2066_v59 = vld [vmem:[%s2967_s3] ss:$0 sm:$0xff] }
  0x22   : > { %2254 = vmatprep.subr.bf16.mxu0 %v2412_v47  ;;  %2256 = vmatprep.mubr.bf16.mxu0 %v1923_v22  ;;  %v894_v39 = vrot.slane %v892_v28, 5  ;;  %v905_v41 = vrot.slane %v903_v32, 4  ;;  %v1829_v44 = vcombine.low %v2584_v11, %v2587_v12  ;;  %v2417_v12 = vld [vmem:[%s2965_s1 + $0x10] sm:$0xff]   ;;  %v1056_v61 = vrot.slane %v2612_v31, 5  ;;  %v2421_v31 = vld [vmem:[%s2965_s1 + $0x20] sm:$0xff]  }
  0x23   : > { %v306_v30 = vrot.slane %v305_v23, 4  ;;  %v320_v36 = vrot.slane %v319_v26, 4  ;;  %v908_v42 = vrot.slane %v906_v33, 5  ;;  %v914_v48 = vrot.slane %v912_v35, 5  ;;  %v2426_v22 = vld [vmem:[%s2965_s1 + $0x170] sm:$0xff]  }
  0x24   : > { %2175 = vmatpush3.bf16.msra.mxu1 %v2411_v37  ;;  %v891_v37 = vrot.slane %v889_v27, 4  ;;  %v1953_v4 = vrot.slane %v1933_v2, 9  ;;  %v1954_v5 = vrot.slane %v1934_v3, 9  ;;  %v574_v14 = vrot.slane %v2590_v13, 5  ;;  %v2427_v13 = vld [vmem:[%s2965_s1 + $0x38] sm:$0xff]   ;;  %v2443_v2 = vld [vmem:[%s2965_s1 + $0xb0] sm:$0xff]  }
  0x25   : > { %2255 = vmatpush3.bf16.msra.mxu0 %v2412_v47  ;;  %2180 = vmatprep.subr.bf16.mxu1 %v2413_v63  ;;  %v311_v40 = vsel %vm2623_vm2, %v306_v30, %v310_v24  ;;  %v325_v45 = vsel %vm2623_vm2, %v320_v36, %v324_v25  ;;  %v900_v47 = vrot.slane %v898_v29, 5  ;;  %v909_v50 = vor.u32 %v908_v42, %v905_v41  ;;  %v1935_v23 = vld [vmem:[%s2578_s20 + $0x18] sm:$0xe]  ;;  %v1936_v24 = vld [vmem:[%s2578_s20 + $0x20] sm:$0xe]  ;;  %v2442_v3 = vld [vmem:[%s2965_s1 + $0x1a8] sm:$0xff]  }
  0x26   : > { %2260 = vmatprep.subr.bf16.mxu0 %v2655_v1  ;;  %v895_v46 = vor.u32 %v894_v39, %v891_v37  ;;  %v1820_v49 = vcombine.low %v311_v40, %v325_v45  ;;  %v578_v18 = vrot.slane %v2596_v15, 5  ;;  %v582_v19 = vrot.slane %v2641_v56, 5  ;;  %v2430_v56 = vld [vmem:[%s2965_s1 + $0x80] sm:$0xff]   ;;  %v541_v26 = vld [vmem:[%s2578_s20 + $0x8] sm:$0xe] }
  0x27   : > { %v910_v53 = vrot.slane %v909_v50, 4  ;;  %v1064_v20 = vrot.slane %v2666_v16, 5  ;;  %v1068_v15 = vrot.slane %v2672_v21, 5  ;;  %v540_v16 = vld [vmem:[%s2578_s20] sm:$0xe]  ;;  %v1955_v25 = vrot.slane %v1935_v23, 9 }
  0x28   : > { %v896_v52 = vrot.slane %v895_v46, 4  ;;  %2177 = vmatmul.mubr.bf16.vlgmr.msra.gmra.mrb[0].mxu1 %v1820_v49  ;;  %v1855_v27 = vrot.slane %v540_v16, 9  ;;  %v1956_v28 = vrot.slane %v1936_v24, 9  ;;  %v1856_v29 = vrot.slane %v541_v26, 9  ;;  %v2428_v21 = vld [vmem:[%s2965_s1 + $0x178] sm:$0xff]  }
  0x29   : > { %2181 = vmatpush3.bf16.msra.mxu1 %v2413_v63  ;;  %2196 = vmatprep.mubr.bf16.mxu1 %v1829_v44  ;;  %v915_v11 = vsel %vm2623_vm2, %v910_v53, %v914_v48  ;;  %v1060_v63 = vrot.slane %v2616_v34, 5  ;;  %v2420_v34 = vld [vmem:[%s2965_s1 + $0x158] sm:$0xff]   ;;  %v586_v30 = vrot.slane %v2646_v60, 5  ;;  %v1830_v33 = vcombine.low %v2633_v51, %v2638_v55  ;;  %v542_v36 = vld [vmem:[%s2578_s20 + $0x10] sm:$0xe]  ;;  %v2433_v51 = vld [vmem:[%s2965_s1 + $0x88] sm:$0xff]  }
  0x2a   : > { %v901_v54 = vsel %vm2623_vm2, %v896_v52, %v900_v47  ;;  %2182 = vmatprep.subr.bf16.mxu1 %v2415_v43  ;;  %v575_v32 = vsel %vm2696_vm5, %v1855_v27, %v574_v14  ;;  %v579_v35 = vsel %vm2696_vm5, %v1856_v29, %v578_v18  ;;  %v543_v37 = vld [vmem:[%s2578_s20 + $0x18] sm:$0xe]  ;;  %v1857_v40 = vrot.slane %v542_v36, 9  ;;  %v2431_v55 = vld [vmem:[%s2965_s1 + $0x180] sm:$0xff]   ;;  %v2434_v47 = vld [vmem:[%s2965_s1 + $0x188] sm:$0xff]  }
  0x2b   : > { %v1924_v57 = vcombine.low %v901_v54, %v915_v11  ;;  %v1061_v6 = vsel %vm2696_vm5, %v1954_v5, %v1060_v63  ;;  %v1859_v39 = vcombine.low %v575_v32, %v579_v35  ;;  %v1858_v60 = vrot.slane %v543_v37, 9  ;;  %v2435_v48 = vld [vmem:[%s2965_s1 + $0x90] sm:$0xff]   ;;  %v2437_v50 = vld [vmem:[%s2965_s1 + $0x98] sm:$0xff]   ;;  %v2439_v53 = vld [vmem:[%s2965_s1 + $0xa0] sm:$0xff]  }
  0x2c   : > { %v1065_v41 = vsel %vm2696_vm5, %v1955_v25, %v1064_v20  ;;  %v1069_v42 = vsel %vm2696_vm5, %v1956_v28, %v1068_v15  ;;  %v2448_v49 = vld [vmem:[%s2578_s20 + $0x10] ss:$8 sps:$4 sm:$0xff]   ;;  %v2441_v11 = vld [vmem:[%s2965_s1 + $0xa8] sm:$0xff]   ;;  %v2820_v5 = vld [vmem:[%s2578_s20 + $0x1c] sm:$0x1] }
  0x2d   : > { %2257 = vmatmul.mubr.bf16.vlgmr.msra.gmra.mrb[0].mxu0 %v1924_v57  ;;  %2183 = vmatpush3.bf16.msra.mxu1 %v2415_v43  ;;  %v2775_v43 = vsel %vm2696_vm5, %v1857_v40, %v582_v19  ;;  %v2779_v44 = vsel %vm2696_vm5, %v1858_v60, %v586_v30  ;;  %v1958_v46 = vcombine.low %v1065_v41, %v1069_v42  ;;  %v2436_v52 = vld [vmem:[%s2965_s1 + $0x190] sm:$0xff]   ;;  %v2438_v54 = vld [vmem:[%s2965_s1 + $0x198] sm:$0xff]   ;;  %v2440_v57 = vld [vmem:[%s2965_s1 + $0x1a0] sm:$0xff]  }
  0x2e   : > { %2261 = vmatpush3.bf16.msra.mxu0 %v2655_v1  ;;  %2184 = vmatprep.subr.bf16.mxu1 %v2417_v12  ;;  %v1057_v1 = vsel %vm2696_vm5, %v1953_v4, %v1056_v61  ;;  %v1860_v45 = vcombine.low %v2775_v43, %v2779_v44  ;;  %v2817_v4 = vld [vmem:[%s2578_s20 + $0x14] sm:$0x1]  ;;  %v2447_v18 = vld [vmem:[%s2965_s1 + $0xc0] sm:$0xff]   ;;  %v2446_v19 = vld [vmem:[%s2965_s1 + $0x1b8] sm:$0xff]  }
  0x2f   : > { %2262 = vmatprep.subr.bf16.mxu0 %v2416_v58  ;;  %v1957_v7 = vcombine.low %v1057_v1, %v1061_v6  ;;  %v2465_v24 = vld [vmem:[%s2578_s20 + $0x8] ss:$8 sps:$4 sm:$0xff]   ;;  %v2455_v30 = vld [vmem:[%s2965_s1 + $0xd8] sm:$0xff]   ;;  %v2457_v32 = vld [vmem:[%s2965_s1 + $0xe0] sm:$0xff]  }
  0x30   : > { %v2451_v15 = vld [vmem:[%s2965_s1 + $0xc8] sm:$0xff]   ;;  %v2453_v27 = vld [vmem:[%s2965_s1 + $0xd0] sm:$0xff]   ;;  %v2001_v35 = vld [vmem:[%s2578_s20 + $0x20] sm:$0xf] }
  0x31   : > { %2185 = vmatpush3.bf16.msra.mxu1 %v2417_v12  ;;  %2276 = vmatprep.mubr.bf16.mxu0 %v1957_v7  ;;  %v1997_v12 = vld [vmem:[%s2578_s20 + $0x10] sm:$0xf]  ;;  %v2445_v7 = vld [vmem:[%s2965_s1 + $0xb8] sm:$0xff]   ;;  %v2450_v26 = vld [vmem:[%s2578_s20 + $0x20] ss:$8 sps:$4 sm:$0xff]   ;;  %v1374_v40 = vshll.u32 %v2001_v35, 16 }
  0x32   : > { %2263 = vmatpush3.bf16.msra.mxu0 %v2416_v58  ;;  %2186 = vmatprep.subr.bf16.mxu1 %v2419_v62  ;;  %v1999_v58 = vld [vmem:[%s2578_s20 + $0x18] sm:$0xf]  ;;  %v1343_v61 = vshrl.u32 %v1997_v12, 16  ;;  %v2452_v28 = vld [vmem:[%s2965_s1 + $0x1c8] sm:$0xff]   ;;  %v2458_v42 = vld [vmem:[%s2965_s1 + $0x1e0] sm:$0xff]  }
  0x33   : > { %2264 = vmatprep.subr.bf16.mxu0 %v2418_v0  ;;  %v1357_v63 = vshrl.u32 %v1999_v58, 16  ;;  %v2003_v36 = vld [vmem:[%s2578_s20 + $0x28] sm:$0xf]  ;;  %v1376_v43 = vrot.slane %v1374_v40, 5 }
  0x34   : > { %v2459_v37 = vld [vmem:[%s2965_s1 + $0xe8] sm:$0xff]   ;;  %v1385_v60 = vshrl.u32 %v2003_v36, 16  ;;  %v1388_v41 = vshll.u32 %v2003_v36, 16 }
  0x35   : > { %2187 = vmatpush3.bf16.msra.mxu1 %v2419_v62  ;;  %v1346_v62 = vshll.u32 %v1997_v12, 16  ;;  %v1359_v1 = vrot.slane %v1357_v63, 4  ;;  %v2031_v12 = vld [vmem:[%s2578_s20 + $0x10] sm:$0xe] }
  0x36   : > { %2265 = vmatpush3.bf16.msra.mxu0 %v2418_v0  ;;  %2188 = vmatprep.subr.bf16.mxu1 %v2421_v31  ;;  %v1360_v0 = vshll.u32 %v1999_v58, 16  ;;  %v1387_v44 = vrot.slane %v1385_v60, 4 }
  0x37   : > { %2266 = vmatprep.subr.bf16.mxu0 %v2420_v34 }
  0x38   : > { %v1362_v6 = vrot.slane %v1360_v0, 5  ;;  %v2464_v0 = vld [vmem:[%s2965_s1 + $0x1f8] sm:$0xff]  }
  0x39   : > { %2189 = vmatpush3.bf16.msra.mxu1 %v2421_v31  ;;  %v1345_v31 = vrot.slane %v1343_v61, 4 }
  0x3a   : > { %2267 = vmatpush3.bf16.msra.mxu0 %v2420_v34  ;;  %2190 = vmatprep.subr.bf16.mxu1 %v2423_v8  ;;  %v1348_v34 = vrot.slane %v1346_v62, 5 }
  0x3b   : > { %2268 = vmatprep.subr.bf16.mxu0 %v2422_v9 }
  0x3c   : > { %v1349_v14 = vor.u32 %v1348_v34, %v1345_v31  ;;  %v1542_v34 = vrot.slane %v2820_v5, 5 }
  0x3d   : > { %2191 = vmatpush3.bf16.msra.mxu1 %v2423_v8  ;;  %v2444_v8 = vld [vmem:[%s2965_s1 + $0x1b0] sm:$0xff]  }
  0x3e   : > { %2269 = vmatpush3.bf16.msra.mxu0 %v2422_v9  ;;  %2192 = vmatprep.subr.bf16.mxu1 %v2425_v10  ;;  %v1352_v9 = vshll.u32 %v2817_v4, 16  ;;  %v1350_v20 = vrot.slane %v1349_v14, 4  ;;  %v2469_v14 = vld [vmem:[%s2965_s1 + $0x210] sm:$0xff]  }
  0x3f   : > { %2270 = vmatprep.subr.bf16.mxu0 %v2424_v17 }
  0x41   : > { %2193 = vmatpush3.bf16.msra.mxu1 %v2425_v10  ;;  %v1366_v10 = vshll.u32 %v2820_v5, 16 }
  0x42   : > { %2271 = vmatpush3.bf16.msra.mxu0 %v2424_v17  ;;  %2194 = vmatprep.subr.bf16.mxu1 %v2427_v13  ;;  %v1363_v17 = vor.u32 %v1362_v6, %v1359_v1  ;;  %v2466_v1 = vld [vmem:[%s2578_s20 + $0x18] ss:$8 sps:$4 sm:$0xff]  }
  0x43   : > { %2272 = vmatprep.subr.bf16.mxu0 %v2426_v22  ;;  %v1368_v23 = vrot.slane %v1366_v10, 5 }
  0x45   : > { %2195 = vmatpush3.bf16.msra.mxu1 %v2427_v13  ;;  %v1364_v13 = vrot.slane %v1363_v17, 4  ;;  %v2470_v17 = vld [vmem:[%s2965_s1 + $0x218] sm:$0xff]  }
  0x46   : > { %2273 = vmatpush3.bf16.msra.mxu0 %v2426_v22  ;;  %2200 = vmatprep.subr.bf16.mxu1 %v2430_v56  ;;  %v1354_v22 = vrot.slane %v1352_v9, 5 }
  0x47   : > { %2274 = vmatprep.subr.bf16.mxu0 %v2428_v21  ;;  %v1369_v25 = vsel %vm2623_vm2, %v1364_v13, %v1368_v23  ;;  %v2034_v13 = vld [vmem:[%s2578_s20 + $0x28] sm:$0xe] }
  0x48   : > { %2197 = vmatmul.mubr.bf16.vlgmr.msra.gmra.mrb[0].mxu1 %v1830_v33  ;;  %v1355_v16 = vsel %vm2623_vm2, %v1350_v20, %v1354_v22  ;;  %v2456_v33 = vld [vmem:[%s2965_s1 + $0x1d8] sm:$0xff]   ;;  %v2473_v20 = vld [vmem:[%s2965_s1 + $0x230] sm:$0xff]   ;;  %v2033_v22 = vld [vmem:[%s2578_s20 + $0x20] sm:$0xe] }
  0x49   : > { %2201 = vmatpush3.bf16.msra.mxu1 %v2430_v56  ;;  %2216 = vmatprep.mubr.bf16.mxu1 %v1859_v39  ;;  %v2449_v56 = vld [vmem:[%s2965_s1 + $0x1c0] sm:$0xff]   ;;  %v2021_v29 = vcombine.low %v1355_v16, %v1369_v25  ;;  %v1371_v39 = vshrl.u32 %v2001_v35, 16  ;;  %v2053_v23 = vrot.slane %v2033_v22, 9  ;;  %v2474_v16 = vld [vmem:[%s2965_s1 + $0x238] sm:$0xff]  }
  0x4a   : > { %2275 = vmatpush3.bf16.msra.mxu0 %v2428_v21  ;;  %2202 = vmatprep.subr.bf16.mxu1 %v2433_v51  ;;  %v2454_v21 = vld [vmem:[%s2965_s1 + $0x1d0] sm:$0xff]  }
  0x4b   : > { %2280 = vmatprep.subr.bf16.mxu0 %v2431_v55 }
  0x4d   : > { %2277 = vmatmul.mubr.bf16.vlgmr.msra.gmra.mrb[0].mxu0 %v1958_v46  ;;  %2203 = vmatpush3.bf16.msra.mxu1 %v2433_v51  ;;  %v2461_v51 = vld [vmem:[%s2965_s1 + $0xf0] sm:$0xff]   ;;  %v2460_v46 = vld [vmem:[%s2965_s1 + $0x1e8] sm:$0xff]  }
  0x4e   : > { %2281 = vmatpush3.bf16.msra.mxu0 %v2431_v55  ;;  %2204 = vmatprep.subr.bf16.mxu1 %v2435_v48  ;;  %v1373_v55 = vrot.slane %v1371_v39, 4 }
  0x4f   : > { %2282 = vmatprep.subr.bf16.mxu0 %v2434_v47  ;;  %2296 = vmatprep.mubr.bf16.mxu0 %v2448_v49  ;;  %v2463_v49 = vld [vmem:[%s2965_s1 + $0xf8] sm:$0xff]  }
  0x51   : > { %2205 = vmatpush3.bf16.msra.mxu1 %v2435_v48  ;;  %v2887_v48 = vld [vmem:[%s2578_s20 + $0x2c] sm:$0x1] }
  0x52   : > { %2283 = vmatpush3.bf16.msra.mxu0 %v2434_v47  ;;  %2206 = vmatprep.subr.bf16.mxu1 %v2437_v50  ;;  %v2884_v47 = vld [vmem:[%s2578_s20 + $0x24] sm:$0x1] }
  0x53   : > { %2284 = vmatprep.subr.bf16.mxu0 %v2436_v52 }
  0x55   : > { %2207 = vmatpush3.bf16.msra.mxu1 %v2437_v50  ;;  %v1377_v50 = vor.u32 %v1376_v43, %v1373_v55 }
  0x56   : > { %2285 = vmatpush3.bf16.msra.mxu0 %v2436_v52  ;;  %2208 = vmatprep.subr.bf16.mxu1 %v2439_v53  ;;  %v1380_v52 = vshll.u32 %v2884_v47, 16 }
  0x57   : > { %2286 = vmatprep.subr.bf16.mxu0 %v2438_v54  ;;  %v1378_v58 = vrot.slane %v1377_v50, 4 }
  0x58   : > { %v1382_v61 = vrot.slane %v1380_v52, 5 }
  0x59   : > { %2209 = vmatpush3.bf16.msra.mxu1 %v2439_v53 }
  0x5a   : > { %2287 = vmatpush3.bf16.msra.mxu0 %v2438_v54  ;;  %2210 = vmatprep.subr.bf16.mxu1 %v2441_v11  ;;  %v1394_v54 = vshll.u32 %v2887_v48, 16  ;;  %v1383_v6 = vsel %vm2623_vm2, %v1378_v58, %v1382_v61 }
  0x5b   : > { %2288 = vmatprep.subr.bf16.mxu0 %v2440_v57 }
  0x5c   : > { %v1396_v63 = vrot.slane %v1394_v54, 5 }
  0x5d   : > { %2211 = vmatpush3.bf16.msra.mxu1 %v2441_v11  ;;  %v2462_v11 = vld [vmem:[%s2965_s1 + $0x1f0] sm:$0xff]  }
  0x5e   : > { %2289 = vmatpush3.bf16.msra.mxu0 %v2440_v57  ;;  %2212 = vmatprep.subr.bf16.mxu1 %v2443_v2  ;;  %v2032_v57 = vld [vmem:[%s2578_s20 + $0x18] sm:$0xe] }
  0x5f   : > { %2290 = vmatprep.subr.bf16.mxu0 %v2442_v3  ;;  %v2052_v31 = vrot.slane %v2032_v57, 9 }
  0x61   : > { %2213 = vmatpush3.bf16.msra.mxu1 %v2443_v2  ;;  %v2051_v2 = vrot.slane %v2031_v12, 9  ;;  %v1543_v5 = vsel %vm2696_vm5, %v2052_v31, %v1542_v34 }
  0x62   : > { %2291 = vmatpush3.bf16.msra.mxu0 %v2442_v3  ;;  %2214 = vmatprep.subr.bf16.mxu1 %v2445_v7  ;;  %v1538_v3 = vrot.slane %v2817_v4, 5 }
  0x63   : > { %2292 = vmatprep.subr.bf16.mxu0 %v2444_v8 }
  0x64   : > { %v1539_v4 = vsel %vm2696_vm5, %v2051_v2, %v1538_v3 }
  0x65   : > { %2215 = vmatpush3.bf16.msra.mxu1 %v2445_v7  ;;  %v2055_v10 = vcombine.low %v1539_v4, %v1543_v5 }
  0x66   : > { %2293 = vmatpush3.bf16.msra.mxu0 %v2444_v8  ;;  %2220 = vmatprep.subr.bf16.mxu1 %v2447_v18  ;;  %v2467_v8 = vld [vmem:[%s2965_s1 + $0x200] sm:$0xff]  }
  0x67   : > { %2294 = vmatprep.subr.bf16.mxu0 %v2446_v19 }
  0x68   : > { %2217 = vmatmul.mubr.bf16.vlgmr.msra.gmra.mrb[0].mxu1 %v1860_v45  ;;  %v1390_v45 = vrot.slane %v1388_v41, 5 }
  0x69   : > { %2221 = vmatpush3.bf16.msra.mxu1 %v2447_v18  ;;  %2236 = vmatprep.mubr.bf16.mxu1 %v2465_v24  ;;  %v2471_v18 = vld [vmem:[%s2965_s1 + $0x220] sm:$0xff]   ;;  %v1546_v24 = vrot.slane %v2884_v47, 5 }
  0x6a   : > { %2295 = vmatpush3.bf16.msra.mxu0 %v2446_v19  ;;  %2222 = vmatprep.subr.bf16.mxu1 %v2451_v15  ;;  %v1391_v53 = vor.u32 %v1390_v45, %v1387_v44  ;;  %v2472_v19 = vld [vmem:[%s2965_s1 + $0x228] sm:$0xff]  }
  0x6b   : > { %2300 = vmatprep.subr.bf16.mxu0 %v2449_v56  ;;  %v1547_v25 = vsel %vm2696_vm5, %v2053_v23, %v1546_v24 }
  0x6c   : > { %v1392_v62 = vrot.slane %v1391_v53, 4 }
  0x6d   : > { %2297 = vmatmul.mubr.bf16.vlgmr.msra.gmra.mrb[0].mxu0 %v2450_v26  ;;  %2223 = vmatpush3.bf16.msra.mxu1 %v2451_v15  ;;  %v2054_v15 = vrot.slane %v2034_v13, 9 }
  0x6e   : > { %2301 = vmatpush3.bf16.msra.mxu0 %v2449_v56  ;;  %2224 = vmatprep.subr.bf16.mxu1 %v2453_v27  ;;  %v1397_v7 = vsel %vm2623_vm2, %v1392_v62, %v1396_v63  ;;  %v1550_v56 = vrot.slane %v2887_v48, 5 }
  0x6f   : > { %2302 = vmatprep.subr.bf16.mxu0 %v2452_v28  ;;  %2316 = vmatprep.mubr.bf16.mxu0 %v2021_v29  ;;  %v2022_v9 = vcombine.low %v1383_v6, %v1397_v7 }
  0x70   : > { %v1551_v26 = vsel %vm2696_vm5, %v2054_v15, %v1550_v56 }
  0x71   : > { %2225 = vmatpush3.bf16.msra.mxu1 %v2453_v27  ;;  %v2056_v27 = vcombine.low %v1547_v25, %v1551_v26 }
  0x72   : > { %2303 = vmatpush3.bf16.msra.mxu0 %v2452_v28  ;;  %2226 = vmatprep.subr.bf16.mxu1 %v2455_v30 }
  0x73   : > { %2304 = vmatprep.subr.bf16.mxu0 %v2454_v21 }
  0x75   : > { %2227 = vmatpush3.bf16.msra.mxu1 %v2455_v30 }
  0x76   : > { %2305 = vmatpush3.bf16.msra.mxu0 %v2454_v21  ;;  %2228 = vmatprep.subr.bf16.mxu1 %v2457_v32 }
  0x77   : > { %2306 = vmatprep.subr.bf16.mxu0 %v2456_v33 }
  0x79   : > { %2229 = vmatpush3.bf16.msra.mxu1 %v2457_v32 }
  0x7a   : > { %2307 = vmatpush3.bf16.msra.mxu0 %v2456_v33  ;;  %2230 = vmatprep.subr.bf16.mxu1 %v2459_v37  ;;  %v2065_v33 = vld [vmem:[%s2966_s2] ss:$0 sm:$0xff] }
  0x7b   : > { %2308 = vmatprep.subr.bf16.mxu0 %v2458_v42 }
  0x7d   : > { %2231 = vmatpush3.bf16.msra.mxu1 %v2459_v37 }
  0x7e   : > { %2309 = vmatpush3.bf16.msra.mxu0 %v2458_v42  ;;  %2232 = vmatprep.subr.bf16.mxu1 %v2461_v51 }
  0x7f   : > { %2310 = vmatprep.subr.bf16.mxu0 %v2460_v46 }
  0x81   : > { %2233 = vmatpush3.bf16.msra.mxu1 %v2461_v51 }
  0x82   : > { %2311 = vmatpush3.bf16.msra.mxu0 %v2460_v46  ;;  %2234 = vmatprep.subr.bf16.mxu1 %v2463_v49 }
  0x83   : > { %2312 = vmatprep.subr.bf16.mxu0 %v2462_v11 }
  0x85   : > { %2235 = vmatpush3.bf16.msra.mxu1 %v2463_v49 }
  0x86   : > { %2313 = vmatpush3.bf16.msra.mxu0 %v2462_v11 }
  0x87   : > { %2314 = vmatprep.subr.bf16.mxu0 %v2464_v0 }
  0x88   : > { %2237 = vmatmul.mubr.bf16.vlgmr.msra.gmra.mrb[0].mxu1 %v2466_v1 }
  0x8a   : > { %2315 = vmatpush3.bf16.msra.mxu0 %v2464_v0 }
  0x8b   : > { %2320 = vmatprep.subr.bf16.mxu0 %v2467_v8 }
  0x8d   : > { %2317 = vmatmul.mubr.bf16.vlgmr.msra.gmra.mrb[0].mxu0 %v2022_v9 }
  0x8e   : > { %2321 = vmatpush3.bf16.msra.mxu0 %v2467_v8  ;;  %2336 = vmatprep.mubr.bf16.mxu0 %v2055_v10 }
  0x8f   : > { %2322 = vmatprep.subr.bf16.mxu0 %v2468_v38 }
  0x92   : > { %2323 = vmatpush3.bf16.msra.mxu0 %v2468_v38 }
  0x93   : > { %2324 = vmatprep.subr.bf16.mxu0 %v2469_v14 }
  0x96   : > { %2325 = vmatpush3.bf16.msra.mxu0 %v2469_v14 }
  0x97   : > { %2326 = vmatprep.subr.bf16.mxu0 %v2470_v17 }
  0x9a   : > { %2327 = vmatpush3.bf16.msra.mxu0 %v2470_v17 }
  0x9b   : > { %2328 = vmatprep.subr.bf16.mxu0 %v2471_v18 }
  0x9e   : > { %2329 = vmatpush3.bf16.msra.mxu0 %v2471_v18 }
  0x9f   : > { %2330 = vmatprep.subr.bf16.mxu0 %v2472_v19 }
  0xa2   : > { %2331 = vmatpush3.bf16.msra.mxu0 %v2472_v19 }
  0xa3   : > { %2332 = vmatprep.subr.bf16.mxu0 %v2473_v20 }
  0xa6   : > { %2333 = vmatpush3.bf16.msra.mxu0 %v2473_v20 }
  0xa7   : > { %2334 = vmatprep.subr.bf16.mxu0 %v2474_v16 }
  0xaa   : > { %2335 = vmatpush3.bf16.msra.mxu0 %v2474_v16 }
  0xad   : > { %2337 = vmatmul.mubr.bf16.vlgmr.msra.gmra.mrb[0].mxu0 %v2056_v27 }
 0x15b   : > { %v2238_v28 = vpop.f32.mrb[0].mxu1 }
 0x15c   : > { %v816_v29 = vpop.f32.mrb[1].mxu1 }
 0x15d   : > { %v2239_v30 = vpop.f32.mrb[2].mxu1 }
 0x15e   : > { %v819_v21 = vpop.f32.mrb[3].mxu1 }
 0x180   : > { %v2338_v32 = vpop.f32.mrb[0].mxu0 }
 0x181   : > { %v2340_v35 = vadd.f32 %v2338_v32, %v2238_v28  ;;  %v1642_v36 = vpop.f32.mrb[1].mxu0 }
 0x182   : > { %v2341_v37 = vadd.f32 %v1642_v36, %v816_v29  ;;  %v2339_v39 = vpop.f32.mrb[2].mxu0 }
 0x183   : > { %v1670_v40 = vmul.f32 %v2340_v35, %v2065_v33  ;;  %v2342_v60 = vadd.f32 %v2339_v39, %v2239_v30  ;;  %v1645_v41 = vpop.f32.mrb[3].mxu0 }
 0x184   : > { %v1668_v42 = vmul.f32 %v2341_v37, %v2065_v33  ;;  %v2343_v51 = vadd.f32 %v1645_v41, %v819_v21 }
 0x185   : > { %v1681_v55 = vadd.f32 %v2066_v59, %v1670_v40  ;;  %v1671_v43 = vmul.f32 %v2342_v60, %v2065_v33 }
 0x186   : > { %v1679_v44 = vadd.f32 %v2066_v59, %v1668_v42  ;;  %v1669_v45 = vmul.f32 %v2343_v51, %v2065_v33 }
 0x187   : > { %v1682_v46 = vadd.f32 %v2066_v59, %v1671_v43  ;;  %v1685_v48 = vmax.f32 %v1681_v55, 0.0 }
 0x188   : > { %v1680_v47 = vadd.f32 %v2066_v59, %v1669_v45  ;;  %v1683_v50 = vmax.f32 %v1679_v44, 0.0 }
 0x189   : > { %v1686_v49 = vmax.f32 %v1682_v46, 0.0 }
 0x18a   : > { %v1684_v52 = vmax.f32 %v1680_v47, 0.0 }
 0x18b   : > { %v1688_v53 = vmax.f32 %v1685_v48, %v1686_v49 }
 0x18c   : > { %v1687_v54 = vmax.f32 %v1683_v50, %v1684_v52 }
 0x18d   : > { %1690 = vst [vmem:[#allocation2 + $0x8] sm:$0xff] %v1688_v53 }
 0x18e   : > { %1689 = vst [vmem:[#allocation2] sm:$0xff] %v1687_v54 }
 0x194   : > { %v1693_v11 = vld [vmem:[#allocation2 + $0x8] ss:$2 sm:$0xf]  ;;  %v1697_v12 = vld [vmem:[#allocation2 + $0x9] ss:$2 sm:$0xf] }
 0x195   : > { %v1699_v57 = vmax.f32 %v1693_v11, %v1697_v12  ;;  %v1691_v58 = vld [vmem:[#allocation2] ss:$2 sm:$0xf]  ;;  %v1695_v61 = vld [vmem:[#allocation2 + $0x1] ss:$2 sm:$0xf] }
 0x196   : > { %v1698_v62 = vmax.f32 %v1691_v58, %v1695_v61 }
 0x197   : > { %v1701_v63 = vpack.c.bf16 %v1699_v57, %v1699_v57 }
 0x198   : > { %v1700_v0 = vpack.c.bf16 %v1698_v62, %v1698_v62 }
 0x199   : > { %1703 = vst [vmem:[%s219_s25 + $0x2] sm:$0x3] %v1701_v63 }
 0x19a   : > { %1702 = vst [vmem:[%s219_s25] sm:$0x3] %v1700_v0 }
 0x19b PF: > { %s14_s17 = sadd.s32 1, %s2497_s17   ;;  %s2973_s15 = smov %s2493_s16 }
 0x19c   : > { %p11_p5 = scmp.ge.s32.totalorder %s14_s17, 4   ;;  %s2974_s16 = smov %s2976_s18 }
 0x19e   :  { %13 = sbr.rel (!%p11_p5) target bundleno = 2 (0x2), region = 80 }

// kernel: cnn_lstm_forward.10
= control target key start
LH: loop header
LB: loop body
LE: loop exit
PB: predicated region body
PF: predicated region fallthrough
CT: control target
= control target key end

     0   :  { %s671_s1 = inlined_call_operand.vmem [shape: bf16[1,2,256,128], index: 1, kind: input, shape index: {}]   ;;  %s672_s0 = inlined_call_operand.vmem [shape: bf16[1,8,256], index: 0, kind: input, shape index: {}]   ;;  %s673_s2 = inlined_call_operand.vmem [shape: f32[2,1,128], index: 2, kind: input, shape index: {}]   ;;  %s674_s3 = inlined_call_operand.vmem [shape: f32[2,8,128], index: 3, kind: output, shape index: {}]  }
   0x1   :  { %v506_v0 = vld [vmem:[%s671_s1 + $0x40] sm:$0xff]   ;;  %v510_v4 = vld [vmem:[%s671_s1 + $0x48] sm:$0xff]   ;;  %v514_v8 = vld [vmem:[%s671_s1 + $0x50] sm:$0xff]  }
   0x2   :  { %v507_v1 = vld [vmem:[%s671_s1 + $0xc0] sm:$0xff]   ;;  %462 = vmatprep.subr.bf16.mxu0 %v506_v0  ;;  %v511_v5 = vld [vmem:[%s671_s1 + $0xc8] sm:$0xff]   ;;  %v515_v9 = vld [vmem:[%s671_s1 + $0xd0] sm:$0xff]  }
   0x3   :  { %v508_v2 = vld [vmem:[%s671_s1] sm:$0xff]   ;;  %484 = vmatprep.subr.bf16.mxu1 %v507_v1  ;;  %v512_v6 = vld [vmem:[%s671_s1 + $0x8] sm:$0xff]   ;;  %v516_v10 = vld [vmem:[%s671_s1 + $0x10] sm:$0xff]  }
   0x4   :  { %v509_v3 = vld [vmem:[%s671_s1 + $0x80] sm:$0xff]   ;;  %463 = vmatpush3.bf16.msra.mxu0 %v508_v2  ;;  %v513_v7 = vld [vmem:[%s671_s1 + $0x88] sm:$0xff]   ;;  %v517_v11 = vld [vmem:[%s671_s1 + $0x90] sm:$0xff]  }
   0x5   :  { %485 = vmatpush3.bf16.msra.mxu1 %v509_v3  ;;  %464 = vmatprep.subr.bf16.mxu0 %v510_v4  ;;  %v518_v12 = vld [vmem:[%s671_s1 + $0x58] sm:$0xff]   ;;  %v522_v16 = vld [vmem:[%s671_s1 + $0x60] sm:$0xff]   ;;  %v526_v20 = vld [vmem:[%s671_s1 + $0x68] sm:$0xff]  }
   0x6   :  { %486 = vmatprep.subr.bf16.mxu1 %v511_v5  ;;  %v519_v13 = vld [vmem:[%s671_s1 + $0xd8] sm:$0xff]   ;;  %v523_v17 = vld [vmem:[%s671_s1 + $0xe0] sm:$0xff]   ;;  %v527_v21 = vld [vmem:[%s671_s1 + $0xe8] sm:$0xff]  }
   0x7   :  { %v520_v14 = vld [vmem:[%s671_s1 + $0x18] sm:$0xff]   ;;  %v524_v18 = vld [vmem:[%s671_s1 + $0x20] sm:$0xff]   ;;  %v528_v22 = vld [vmem:[%s671_s1 + $0x28] sm:$0xff]  }
   0x8   :  { %465 = vmatpush3.bf16.msra.mxu0 %v512_v6  ;;  %v521_v15 = vld [vmem:[%s671_s1 + $0x98] sm:$0xff]   ;;  %v525_v19 = vld [vmem:[%s671_s1 + $0xa0] sm:$0xff]   ;;  %v529_v23 = vld [vmem:[%s671_s1 + $0xa8] sm:$0xff]  }
   0x9   :  { %487 = vmatpush3.bf16.msra.mxu1 %v513_v7  ;;  %466 = vmatprep.subr.bf16.mxu0 %v514_v8  ;;  %v530_v24 = vld [vmem:[%s671_s1 + $0x70] sm:$0xff]   ;;  %v534_v28 = vld [vmem:[%s671_s1 + $0x78] sm:$0xff]   ;;  %v15_v32 = vld [vmem:[%s672_s0] sm:$0xff] }
   0xa   :  { %488 = vmatprep.subr.bf16.mxu1 %v515_v9  ;;  %v531_v25 = vld [vmem:[%s671_s1 + $0xf0] sm:$0xff]   ;;  %v535_v29 = vld [vmem:[%s671_s1 + $0xf8] sm:$0xff]   ;;  %v391_v33 = vcombine.low %v15_v32, %v15_v32  ;;  %v392_v34 = vcombine.high %v15_v32, %v15_v32  ;;  %v390_v37 = vld [vmem:[%s673_s2] ss:$0 sm:$0xff] }
   0xb   :  { %v532_v26 = vld [vmem:[%s671_s1 + $0x30] sm:$0xff]   ;;  %v536_v30 = vld [vmem:[%s671_s1 + $0x38] sm:$0xff]   ;;  %v442_v39 = vld [vmem:[%s673_s2 + $0x1] ss:$0 sm:$0xff] }
   0xc   :  { %467 = vmatpush3.bf16.msra.mxu0 %v516_v10  ;;  %v533_v27 = vld [vmem:[%s671_s1 + $0xb0] sm:$0xff]   ;;  %v537_v31 = vld [vmem:[%s671_s1 + $0xb8] sm:$0xff]   ;;  %190 = vmatprep.mubr.bf16.mxu0 %v392_v34 }
   0xd   :  { %489 = vmatpush3.bf16.msra.mxu1 %v517_v11  ;;  %468 = vmatprep.subr.bf16.mxu0 %v518_v12 }
   0xe   :  { %490 = vmatprep.subr.bf16.mxu1 %v519_v13  ;;  %376 = vmatprep.mubr.bf16.mxu1 %v392_v34 }
  0x10   :  { %469 = vmatpush3.bf16.msra.mxu0 %v520_v14 }
  0x11   :  { %491 = vmatpush3.bf16.msra.mxu1 %v521_v15  ;;  %470 = vmatprep.subr.bf16.mxu0 %v522_v16 }
  0x12   :  { %492 = vmatprep.subr.bf16.mxu1 %v523_v17 }
  0x14   :  { %471 = vmatpush3.bf16.msra.mxu0 %v524_v18 }
  0x15   :  { %493 = vmatpush3.bf16.msra.mxu1 %v525_v19  ;;  %472 = vmatprep.subr.bf16.mxu0 %v526_v20 }
  0x16   :  { %494 = vmatprep.subr.bf16.mxu1 %v527_v21 }
  0x18   :  { %473 = vmatpush3.bf16.msra.mxu0 %v528_v22 }
  0x19   :  { %495 = vmatpush3.bf16.msra.mxu1 %v529_v23  ;;  %474 = vmatprep.subr.bf16.mxu0 %v530_v24 }
  0x1a   :  { %496 = vmatprep.subr.bf16.mxu1 %v531_v25 }
  0x1c   :  { %475 = vmatpush3.bf16.msra.mxu0 %v532_v26 }
  0x1d   :  { %497 = vmatpush3.bf16.msra.mxu1 %v533_v27  ;;  %476 = vmatprep.subr.bf16.mxu0 %v534_v28 }
  0x1e   :  { %498 = vmatprep.subr.bf16.mxu1 %v535_v29 }
  0x20   :  { %477 = vmatpush3.bf16.msra.mxu0 %v536_v30 }
  0x21   :  { %499 = vmatpush3.bf16.msra.mxu1 %v537_v31 }
  0x23   :  { %191 = vmatmul.mubr.bf16.vlgmr.msra.gmra.mrb[0].mxu0 %v391_v33 }
  0x24   :  { %377 = vmatmul.mubr.bf16.vlgmr.msra.gmra.mrb[0].mxu1 %v391_v33 }
  0xf6   :  { %v478_v35 = vpop.f32.mrb[0].mxu0 }
  0xf7   :  { %v500_v36 = vpop.f32.mrb[0].mxu1  ;;  %v479_v38 = vpop.f32.mrb[1].mxu0 }
  0xf8   :  { %v501_v40 = vpop.f32.mrb[1].mxu1  ;;  %v480_v41 = vadd.f32 %v479_v38, %v478_v35  ;;  %v481_v43 = vpop.f32.mrb[2].mxu0 }
  0xf9   :  { %v502_v42 = vadd.f32 %v501_v40, %v500_v36  ;;  %v503_v44 = vpop.f32.mrb[2].mxu1  ;;  %v482_v45 = vpop.f32.mrb[3].mxu0 }
  0xfa   :  { %v504_v46 = vpop.f32.mrb[3].mxu1  ;;  %v193_v47 = vadd.f32 %v480_v41, %v390_v37 }
  0xfb   :  { %v379_v48 = vadd.f32 %v502_v42, %v442_v39 }
  0xfc   :  { %198 = vst [vmem:[%s674_s3] sm:$0xff] %v193_v47 }
  0xfd   :  { %461 = vst [vmem:[%s674_s3 + $0x8] sm:$0xff] %v379_v48 }

// kernel: cnn_lstm_forward.11
= control target key start
LH: loop header
LB: loop body
LE: loop exit
PB: predicated region body
PF: predicated region fallthrough
CT: control target
= control target key end

     0   :  { %9 = vsyncpa [#allocation4], 0  ;;  %s1412_s0 = inlined_call_operand.vmem [shape: f32[2,2,4,128], index: 0, kind: input, shape index: {}]   ;;  %s1413_s1 = inlined_call_operand.vmem [shape: bf16[2,32,128], index: 1, kind: input, shape index: {}]   ;;  %s1414_s2 = inlined_call_operand.vmem [shape: bf16[2,2,4,32], index: 2, kind: output, shape index: {0}]   ;;  %s1415_s3 = inlined_call_operand.hbm [shape: f32[2,2,32], index: 3, kind: output, shape index: {1}]  }
   0x1   :  { %11 = vsyncpa [#allocation4 + $0x1], 0  ;;  %s1152_s12 = smov 0   ;;  %s1154_s13 = smov 0  }
   0x2   :  { %s1156_s14 = smov 0   ;;  %s1158_s15 = smov 0  }
   0x3 LB: > { %s1173_s16 = sadd.s32 4294967295, %s1124_s15   ;;  %s863_s17 = sadd.s32 4294967294, %s1124_s15   ;;  %s1124_s15 = sphi %s1158_s15, %s1421_s15   ;;  %s1120_s14 = sphi %s1156_s14, %s1420_s14   ;;  %s1116_s13 = sphi %s1154_s13, %s1419_s13   ;;  %s1112_s12 = sphi %s1152_s12, %s1418_s12  }
   0x4   : > { %s1177_s18 = sadd.s32 1, %s1124_s15   ;;  %s102_s19 = sadd.s32 1, %s1120_s14 }
   0x5   : > { %s99_s20 = ssub.s32 %s1124_s15, %s1177_s18  ;;  %p112_p0 = scmp.ne.s32.totalorder %s1120_s14, %s1116_s13 }
   0x6   : > { %p100_p1 = scmp.eq.s32.totalorder %s99_s20, 0  ;;  %p113_p2 = scmp.eq.s32.totalorder %s1173_s16, 1 }
   0x7   : > { %p118_p3 = scmp.ne.s32.totalorder %s1116_s13, %s1112_s12  ;;  %p119_p4 = scmp.eq.s32.totalorder %s863_s17, 1 }
   0x8   : > { %s1188_s21 = scalar_select %p100_p1, %s1120_s14, %s102_s19  }
   0x9   : > { %p1190_p5 = por %p113_p2, %p112_p0  ;;  %p1194_p6 = por %p119_p4, %p118_p3 }
   0xa   : > { %p866_p7 = scmp.ge.s32.totalorder %s1124_s15, 1  ;;  %p153_p8 = scmp.lt.s32.totalorder %s1124_s15, 3 }
   0xc   : > { %p154_p9 = pnand %p866_p7, %p153_p8 }
   0xd   : > { %p187_p10 = scmp.lt.s32.totalorder (!%p154_p9), %s1173_s16, 1  ;;  %v1126_v0 = vmov (!%p154_p9), 0.0   ;;  %vm1127_vm0 = vmmov (!%p154_p9), 0   ;;  %v1128_v3 = vmov (!%p154_p9), 0   ;;  %s207_s30 = smul.u32 (!%p154_p9), 3, %s1173_s16  ;;  %vm346_vm1 = vcmask (!%p154_p9), 1041409  }
   0xe   : > { %157 = sbr.rel (%p154_p9) target bundleno = 2900 (0xb54), region = 28  ;;  %920 = vmatprep.subr.bf16.mxu0 (!%p154_p9), %v1126_v0  ;;  %924 = vmatprep.mubr.msk.bf16.mxu0 (!%p154_p9), %vm1127_vm0, %v1126_v0  ;;  %s1129_s8 = smov (!%p154_p9), 64   ;;  %vm223_vm2 = vcmask (!%p154_p9), 261120   ;;  %vm332_vm3 = vcmask (!%p154_p9), 253952   ;;  %vm716_vm4 = vcmask (!%p154_p9), 254976  }
   0xf   : > { %928 = vmatprep.subr.bf16.mxu1 (!%p154_p9), %v1126_v0  ;;  %932 = vmatprep.mubr.msk.bf16.mxu1 (!%p154_p9), %vm1127_vm0, %v1126_v0  ;;  %s1130_s9 = smov (!%p154_p9), 32   ;;  %s461_s11 = ssub.s32 (!%p154_p9), 2, %s1173_s16 }
  0x10   : > { %s809_s19 = smul.u32 (!%p154_p9), 4294967293, %s1173_s16  ;;  %s903_s26 = scalar_lea.vmem (!%p154_p9), [#allocation2], %s1124_s15 }
  0x11   : > { %s583_s27 = scalar_lea.vmem (!%p154_p9), [#allocation2], %s461_s11  ;;  %s897_s4 = sshll.u32 (!%p154_p9), %s1173_s16, 5 }
  0x15   : > { %s1205_s24 = scalar_select %p187_p10, %s1173_s16, 1 }
  0x17   : > { %s901_s25 = sshll.u32 %s1205_s24, 4  ;;  %s900_s29 = sshll.u32 %s1205_s24, 3 }
  0x18   : > { %s196_s28 = scalar_lea.vmem %s1413_s1, %s901_s25  ;;  %s1236_s6 = scalar_lea.vmem %s1412_s0, %s900_s29 }
  0x19   : > { %v1214_v1 = vld [vmem:[%s196_s28] sm:$0xff]   ;;  %v1217_v2 = vld [vmem:[%s196_s28 + $0x8] sm:$0xff]   ;;  %s208_s7 = scalar_lea.vmem %s1236_s6, %s207_s30  ;;  %s803_s10 = scalar_lea.vmem %s1236_s6, %s1173_s16 }
  0x1a   : > { %921 = vmatpush3.bf16.msra.mxu0 %v1214_v1  ;;  %929 = vmatpush3.bf16.msra.mxu1 %v1214_v1  ;;  %v210_v4 = vld [vmem:[%s208_s7 + $0x4] sm:$0x1]  ;;  %v209_v9 = vld [vmem:[%s208_s7] sm:$0x1]  ;;  %v878_v47 = vld [vmem:[%s803_s10 + $0x1] sm:$0x1]  ;;  %s462_s17 = scalar_lea.vmem %s1236_s6, %s461_s11  ;;  %s810_s20 = scalar_lea.vmem %s1236_s6, %s809_s19 }
  0x1b   : > { %922 = vmatprep.subr.bf16.mxu0 %v1126_v0  ;;  %930 = vmatprep.subr.bf16.mxu1 %v1126_v0  ;;  %v879_v48 = vld [vmem:[%s803_s10 + $0x5] sm:$0x1]  ;;  %s331_s25 = scalar_lea.vmem [#allocation2], %s207_s30  ;;  %s184_s28 = sand.u32 1, %s1116_s13  }
  0x1c   : > { %s867_s29 = sshll.u32 %s184_s28, 1  ;;  %s813_s30 = scalar_lea.vmem [#allocation2], %s809_s19 }
  0x1d   : > { %s186_s5 = scalar_lea.vmem [#allocation3], %s867_s29  ;;  %s902_s7 = sshll.u32 %s1205_s24, 2 }
  0x1e   : > { %923 = vmatpush3.bf16.msra.mxu0 %v1217_v2  ;;  %931 = vmatpush3.bf16.msra.mxu1 %v1217_v2  ;;  %s751_s6 = sshll.u32 %s186_s5, 4  ;;  %s1360_s10 = scalar_lea.hbm %s1415_s3, %s897_s4  ;;  %s1362_s6 = int_to_ptr.vmem [resolvable:$true] %s751_s6 }
  0x1f   : > { %936 = vmatprep.subr.bf16.mxu0 %v1126_v0  ;;  %944 = vmatprep.subr.bf16.mxu1 %v1126_v0  ;;  %s1367_s16 = scalar_lea.vmem %s1414_s2, %s902_s7  ;;  %s735_s24 = scalar_lea.sflag [#allocation4], %s184_s28 }
  0x20   : > { %s1062_s19 = scalar_lea.vmem %s1362_s6, 32 }
  0x21   : > { %925 = vmatmul.mubr.bf16.vlgmr.msra.gmra.mrb[0].mxu0 %v1128_v3  ;;  %p1063_p11 = scmp.ne.s32.totalorder %s1362_s6, %s1062_s19 }
  0x22   : > { %937 = vmatpush3.bf16.msra.mxu0 %v1214_v1  ;;  %940 = vmatprep.mubr.msk.bf16.mxu0 %vm1127_vm0, %v1126_v0 }
  0x23   : > { %938 = vmatprep.subr.bf16.mxu0 %v1126_v0  ;;  %p1064_p12 = pnand %p1063_p11, %p1190_p5 }
  0x25   : > { %p1065_p13 = pneg %p1064_p12 }
  0x26   : > { %939 = vmatpush3.bf16.msra.mxu0 %v1217_v2 }
  0xf4   : > { %v261_v5 = vpop.f32.mrb[0].mxu0 }
  0xf5   : > { %v268_v6 = vrot.slane %v261_v5, 1  ;;  %v926_v7 = vpop.f32.mrb[1].mxu0  ;;  %v271_v12 = vadd.f32 %v261_v5, %v209_v9 }
  0xf6   : > { %v264_v8 = vpop.f32.mrb[2].mxu0 }
  0xf7   : > { %v272_v10 = vadd.f32 %v268_v6, %v210_v4  ;;  %v927_v11 = vpop.f32.mrb[3].mxu0  ;;  %v876_v16 = vmul.f32 -1.442695, %v271_v12 }
  0xf9   : > { %998 = vtanh.f32 %v272_v10  ;;  %v877_v15 = vmul.f32 -1.442695, %v272_v10 }
  0xfa   : > { %1000 = vtanh.f32 %v271_v12 }
  0xfb   : > { %1002 = vpow2.f32 %v877_v15 }
  0xfc   : > { %1004 = vpow2.f32 %v876_v16 }
 0x103   : > { %v999_v13 = vpop.eup %998 }
 0x104   : > { %293 = vrot.lane.b32.xlu0 %v999_v13, %s1129_s8  ;;  %v1001_v14 = vpop.eup %1000 }
 0x105   : > { %v1003_v17 = vpop.eup %1002 }
 0x106   : > { %v280_v18 = vadd.f32 1.0, %v1003_v17  ;;  %v1005_v19 = vpop.eup %1004 }
 0x107   : > { %v279_v20 = vadd.f32 1.0, %v1005_v19 }
 0x108   : > { %291 = vrot.lane.b32.xlu0 %v1001_v14, %s1129_s8  ;;  %1006 = vrcp.f32 %v280_v18 }
 0x109   : > { %1008 = vrcp.f32 %v279_v20 }
 0x112   : > { %v1007_v21 = vpop.eup %1006 }
 0x113   : > { %v1009_v24 = vpop.eup %1008  ;;  %v288_v27 = vmul.f32 0.0, %v1007_v21 }
 0x114   : > { %v287_v30 = vmul.f32 0.0, %v1009_v24 }
 0x176   : > { %v294_v22 = vpop.permute.xlu0 %293 }
 0x177   : > { %v298_v23 = vmul.f32 %v1007_v21, %v294_v22 }
 0x179   : > { %303 = vrot.lane.b32.xlu1 %v298_v23, %s1130_s9 }
 0x17a   : > { %v292_v25 = vpop.permute.xlu0 %291 }
 0x17b   : > { %v297_v26 = vmul.f32 %v1009_v24, %v292_v25 }
 0x17d   : > { %301 = vrot.lane.b32.xlu1 %v297_v26, %s1130_s9  ;;  %v463_v26 = vld [vmem:[%s462_s17] sm:$0x1] }
 0x1eb   : > { %v304_v28 = vpop.permute.xlu1 %303 }
 0x1ec   : > { %v1245_v29 = vadd.f32 %v304_v28, %v288_v27  ;;  %v464_v27 = vld [vmem:[%s462_s17 + $0x4] sm:$0x1] }
 0x1ee   : > { %1010 = vtanh.f32 %v1245_v29 }
 0x1ef   : > { %v302_v31 = vpop.permute.xlu1 %301 }
 0x1f0   : > { %v307_v32 = vadd.f32 %v302_v31, %v287_v30 }
 0x1f2   : > { %1012 = vtanh.f32 %v307_v32 }
 0x1f8   : > { %v1011_v33 = vpop.eup %1010 }
 0x1f9   : > { %315 = vrot.lane.b32.xlu0 %v1011_v33, %s1129_s8 }
 0x1fc   : > { %v1013_v34 = vpop.eup %1012 }
 0x1fd   : > { %313 = vrot.lane.b32.xlu1 %v1013_v34, %s1129_s8 }
 0x26b   : > { %v316_v35 = vpop.permute.xlu0 %315 }
 0x26c   : > { %v1250_v36 = vmul.f32 %v1007_v21, %v316_v35 }
 0x26e   : > { %v340_v37 = vpack.c.bf16 %v1250_v36, %v1250_v36 }
 0x26f   : > { %v314_v38 = vpop.permute.xlu1 %313 }
 0x270   : > { %v344_v39 = vunpack.c.l.b16 %v340_v37  ;;  %v1254_v40 = vmul.f32 %v1009_v24, %v314_v38 }
 0x272   : > { %v339_v41 = vpack.c.bf16 %v1254_v40, %v1254_v40  ;;  %v345_v42 = vrot.slane %v344_v39, 7 }
 0x274   : > { %v343_v43 = vunpack.c.l.b16 %v339_v41 }
 0x276   : > { %v347_v44 = vsel %vm346_vm1, %v345_v42, %v343_v43 }
 0x277   : > { %v348_v45 = vpack.c.b16 %v347_v44, %v347_v44 }
 0x279   : > { %349 = vrot.lane.b32.xlu0 %v348_v45, %s1130_s9 }
 0x2eb   : > { %v350_v46 = vpop.permute.xlu0 %349 }
 0x2ec   : > { %933 = vmatmul.mubr.msk.bf16.vlgmr.msra.gmra.mrb[0].mxu1 %vm223_vm2, %v350_v46 }
 0x2ed   : > { %945 = vmatpush3.bf16.msra.mxu1 %v1214_v1  ;;  %948 = vmatprep.mubr.msk.bf16.mxu1 %vm1127_vm0, %v1126_v0 }
 0x2ee   : > { %946 = vmatprep.subr.bf16.mxu1 %v1126_v0 }
 0x2f1   : > { %947 = vmatpush3.bf16.msra.mxu1 %v1217_v2 }
 0x3bf   : > { %v388_v49 = vpop.f32.mrb[0].mxu1 }
 0x3c0   : > { %v395_v50 = vrot.slane %v388_v49, 1  ;;  %v398_v51 = vadd.f32 %v878_v47, %v388_v49  ;;  %v934_v52 = vpop.f32.mrb[1].mxu1 }
 0x3c1   : > { %v391_v53 = vpop.f32.mrb[2].mxu1 }
 0x3c2   : > { %v399_v54 = vadd.f32 %v879_v48, %v395_v50  ;;  %1014 = vtanh.f32 %v398_v51  ;;  %v935_v55 = vpop.f32.mrb[3].mxu1  ;;  %v881_v58 = vmul.f32 -1.442695, %v398_v51 }
 0x3c4   : > { %1016 = vtanh.f32 %v399_v54  ;;  %v882_v59 = vmul.f32 -1.442695, %v399_v54 }
 0x3c5   : > { %1018 = vpow2.f32 %v881_v58 }
 0x3c6   : > { %1020 = vpow2.f32 %v882_v59 }
 0x3cc   : > { %v1015_v56 = vpop.eup %1014 }
 0x3cd   : > { %418 = vrot.lane.b32.xlu0 %v1015_v56, %s1129_s8 }
 0x3ce   : > { %v1017_v57 = vpop.eup %1016 }
 0x3cf   : > { %420 = vrot.lane.b32.xlu1 %v1017_v57, %s1129_s8  ;;  %v1019_v60 = vpop.eup %1018 }
 0x3d0   : > { %v1021_v61 = vpop.eup %1020  ;;  %v406_v62 = vadd.f32 1.0, %v1019_v60 }
 0x3d1   : > { %v407_v63 = vadd.f32 1.0, %v1021_v61 }
 0x3d2   : > { %1022 = vrcp.f32 %v406_v62 }
 0x3d3   : > { %1024 = vrcp.f32 %v407_v63 }
 0x3dc   : > { %v1023_v0 = vpop.eup %1022 }
 0x3dd   : > { %v1025_v3 = vpop.eup %1024  ;;  %v414_v6 = vmul.f32 %v1023_v0, %v307_v32 }
 0x3de   : > { %v415_v9 = vmul.f32 %v1025_v3, %v1245_v29 }
 0x43f   : > { %v419_v1 = vpop.permute.xlu0 %418 }
 0x440   : > { %v424_v2 = vmul.f32 %v1023_v0, %v419_v1 }
 0x441   : > { %v421_v4 = vpop.permute.xlu1 %420 }
 0x442   : > { %428 = vrot.lane.b32.xlu0 %v424_v2, %s1130_s9  ;;  %v425_v5 = vmul.f32 %v1025_v3, %v421_v4 }
 0x444   : > { %430 = vrot.lane.b32.xlu1 %v425_v5, %s1130_s9 }
 0x4b4   : > { %v429_v7 = vpop.permute.xlu0 %428 }
 0x4b5   : > { %v434_v8 = vadd.f32 %v429_v7, %v414_v6  ;;  %v889_v7 = vld [vmem:[%s810_s20 + $0x3] sm:$0x1] }
 0x4b6   : > { %v431_v10 = vpop.permute.xlu1 %430 }
 0x4b7   : > { %1026 = vtanh.f32 %v434_v8  ;;  %v435_v11 = vadd.f32 %v431_v10, %v415_v9 }
 0x4b9   : > { %1028 = vtanh.f32 %v435_v11 }
 0x4c1   : > { %v1027_v12 = vpop.eup %1026 }
 0x4c2   : > { %440 = vrot.lane.b32.xlu0 %v1027_v12, %s1129_s8 }
 0x4c3   : > { %v1029_v13 = vpop.eup %1028 }
 0x4c4   : > { %442 = vrot.lane.b32.xlu1 %v1029_v13, %s1129_s8 }
 0x534   : > { %v441_v14 = vpop.permute.xlu0 %440 }
 0x535   : > { %v1275_v15 = vmul.f32 %v1023_v0, %v441_v14 }
 0x536   : > { %v443_v16 = vpop.permute.xlu1 %442 }
 0x537   : > { %v1277_v17 = vmul.f32 %v1025_v3, %v443_v16  ;;  %v465_v18 = vpack.c.bf16 %v1275_v15, %v1275_v15 }
 0x539   : > { %v466_v19 = vpack.c.bf16 %v1277_v17, %v1277_v17  ;;  %v469_v21 = vunpack.c.l.b16 %v465_v18 }
 0x53b   : > { %v470_v20 = vunpack.c.l.b16 %v466_v19 }
 0x53d   : > { %v471_v22 = vrot.slane %v470_v20, 7 }
 0x53f   : > { %v472_v23 = vsel %vm346_vm1, %v471_v22, %v469_v21 }
 0x540   : > { %v473_v24 = vpack.c.b16 %v472_v23, %v472_v23 }
 0x542   : > { %474 = vrot.lane.b32.xlu1 %v473_v24, %s1130_s9 }
 0x5b4   : > { %v475_v25 = vpop.permute.xlu1 %474 }
 0x5b5   : > { %941 = vmatmul.mubr.msk.bf16.vlgmr.msra.gmra.mrb[4].mxu0 %vm223_vm2, %v475_v25 }
 0x688   : > { %v513_v28 = vpop.f32.mrb[4].mxu0 }
 0x689   : > { %v520_v29 = vrot.slane %v513_v28, 1  ;;  %v523_v30 = vadd.f32 %v513_v28, %v463_v26  ;;  %v942_v31 = vpop.f32.mrb[5].mxu0 }
 0x68a   : > { %v516_v32 = vpop.f32.mrb[6].mxu0 }
 0x68b   : > { %v524_v33 = vadd.f32 %v520_v29, %v464_v27  ;;  %1030 = vtanh.f32 %v523_v30  ;;  %v943_v34 = vpop.f32.mrb[7].mxu0  ;;  %v887_v38 = vmul.f32 -1.442695, %v523_v30 }
 0x68d   : > { %1032 = vtanh.f32 %v524_v33  ;;  %v888_v39 = vmul.f32 -1.442695, %v524_v33 }
 0x68e   : > { %1034 = vpow2.f32 %v887_v38 }
 0x68f   : > { %1036 = vpow2.f32 %v888_v39 }
 0x695   : > { %v1031_v35 = vpop.eup %1030 }
 0x696   : > { %543 = vrot.lane.b32.xlu1 %v1031_v35, %s1129_s8 }
 0x697   : > { %v1033_v37 = vpop.eup %1032 }
 0x698   : > { %545 = vrot.lane.b32.xlu0 %v1033_v37, %s1129_s8  ;;  %v1035_v41 = vpop.eup %1034 }
 0x699   : > { %v1037_v42 = vpop.eup %1036  ;;  %v531_v43 = vadd.f32 1.0, %v1035_v41 }
 0x69a   : > { %v532_v44 = vadd.f32 1.0, %v1037_v42 }
 0x69b   : > { %1038 = vrcp.f32 %v531_v43 }
 0x69c   : > { %1040 = vrcp.f32 %v532_v44  ;;  %v448_v44 = vadd.f32 %v1275_v15, %v1254_v40 }
 0x6a5   : > { %v1039_v45 = vpop.eup %1038 }
 0x6a6   : > { %v1041_v48 = vpop.eup %1040  ;;  %v539_v51 = vmul.f32 %v1039_v45, %v434_v8  ;;  %v890_v8 = vld [vmem:[%s810_s20 + $0x7] sm:$0x1]  ;;  %s1131_s20 = smov [#allocation3]  }
 0x6a7   : > { %v540_v54 = vmul.f32 %v1041_v48, %v435_v11 }
 0x708   : > { %v544_v46 = vpop.permute.xlu1 %543 }
 0x709   : > { %v549_v47 = vmul.f32 %v1039_v45, %v544_v46 }
 0x70a   : > { %v546_v49 = vpop.permute.xlu0 %545 }
 0x70b   : > { %553 = vrot.lane.b32.xlu1 %v549_v47, %s1130_s9  ;;  %v550_v50 = vmul.f32 %v1041_v48, %v546_v49 }
 0x70d   : > { %555 = vrot.lane.b32.xlu0 %v550_v50, %s1130_s9 }
 0x77d   : > { %v554_v52 = vpop.permute.xlu1 %553 }
 0x77e   : > { %v559_v53 = vadd.f32 %v554_v52, %v539_v51 }
 0x77f   : > { %v556_v55 = vpop.permute.xlu0 %555 }
 0x780   : > { %1042 = vtanh.f32 %v559_v53  ;;  %v560_v56 = vadd.f32 %v556_v55, %v540_v54 }
 0x782   : > { %1044 = vtanh.f32 %v560_v56 }
 0x78a   : > { %v1043_v57 = vpop.eup %1042 }
 0x78b   : > { %565 = vrot.lane.b32.xlu1 %v1043_v57, %s1129_s8 }
 0x78c   : > { %v1045_v58 = vpop.eup %1044 }
 0x78d   : > { %567 = vrot.lane.b32.xlu0 %v1045_v58, %s1129_s8 }
 0x7fd   : > { %v566_v59 = vpop.permute.xlu1 %565 }
 0x7fe   : > { %v1296_v60 = vmul.f32 %v1039_v45, %v566_v59  ;;  %v449_v45 = vadd.f32 %v1277_v17, %v1250_v36 }
 0x7ff   : > { %v568_v61 = vpop.permute.xlu0 %567 }
 0x800   : > { %v1298_v62 = vmul.f32 %v1041_v48, %v568_v61  ;;  %v591_v63 = vpack.c.bf16 %v1296_v60, %v1296_v60  ;;  %v573_v47 = vadd.f32 %v1296_v60, %v448_v44 }
 0x802   : > { %v592_v0 = vpack.c.bf16 %v1298_v62, %v1298_v62  ;;  %v595_v2 = vunpack.c.l.b16 %v591_v63  ;;  %v574_v48 = vadd.f32 %v1298_v62, %v449_v45 }
 0x804   : > { %v596_v1 = vunpack.c.l.b16 %v592_v0 }
 0x806   : > { %v597_v3 = vrot.slane %v596_v1, 7 }
 0x808   : > { %v598_v4 = vsel %vm346_vm1, %v597_v3, %v595_v2 }
 0x809   : > { %v599_v5 = vpack.c.b16 %v598_v4, %v598_v4 }
 0x80b   : > { %600 = vrot.lane.b32.xlu0 %v599_v5, %s1130_s9 }
 0x87d   : > { %v601_v6 = vpop.permute.xlu0 %600 }
 0x87e   : > { %949 = vmatmul.mubr.msk.bf16.vlgmr.msra.gmra.mrb[4].mxu1 %vm223_vm2, %v601_v6 }
 0x951   : > { %v639_v9 = vpop.f32.mrb[4].mxu1 }
 0x952   : > { %v646_v10 = vrot.slane %v639_v9, 1  ;;  %v649_v11 = vadd.f32 %v889_v7, %v639_v9  ;;  %v950_v12 = vpop.f32.mrb[5].mxu1 }
 0x953   : > { %v642_v13 = vpop.f32.mrb[6].mxu1 }
 0x954   : > { %v650_v14 = vadd.f32 %v890_v8, %v646_v10  ;;  %1046 = vtanh.f32 %v649_v11  ;;  %v951_v16 = vpop.f32.mrb[7].mxu1  ;;  %v892_v20 = vmul.f32 -1.442695, %v649_v11 }
 0x956   : > { %1048 = vtanh.f32 %v650_v14  ;;  %v893_v21 = vmul.f32 -1.442695, %v650_v14 }
 0x957   : > { %1050 = vpow2.f32 %v892_v20 }
 0x958   : > { %1052 = vpow2.f32 %v893_v21 }
 0x95e   : > { %v1047_v18 = vpop.eup %1046 }
 0x95f   : > { %669 = vrot.lane.b32.xlu1 %v1047_v18, %s1129_s8 }
 0x960   : > { %v1049_v19 = vpop.eup %1048 }
 0x961   : > { %671 = vrot.lane.b32.xlu0 %v1049_v19, %s1129_s8  ;;  %v1051_v22 = vpop.eup %1050 }
 0x962   : > { %v1053_v23 = vpop.eup %1052  ;;  %v657_v24 = vadd.f32 1.0, %v1051_v22 }
 0x963   : > { %v658_v25 = vadd.f32 1.0, %v1053_v23 }
 0x964   : > { %1054 = vrcp.f32 %v657_v24 }
 0x965   : > { %1056 = vrcp.f32 %v658_v25 }
 0x96e   : > { %v1055_v26 = vpop.eup %1054 }
 0x96f   : > { %v1057_v29 = vpop.eup %1056  ;;  %v665_v32 = vmul.f32 %v1055_v26, %v559_v53 }
 0x970   : > { %v666_v35 = vmul.f32 %v1057_v29, %v560_v56 }
 0x9d1   : > { %v670_v27 = vpop.permute.xlu1 %669 }
 0x9d2   : > { %v675_v28 = vmul.f32 %v1055_v26, %v670_v27 }
 0x9d3   : > { %v672_v30 = vpop.permute.xlu0 %671 }
 0x9d4   : > { %679 = vrot.lane.b32.xlu1 %v675_v28, %s1130_s9  ;;  %v676_v31 = vmul.f32 %v1057_v29, %v672_v30 }
 0x9d6   : > { %681 = vrot.lane.b32.xlu0 %v676_v31, %s1130_s9 }
 0xa46   : > { %v680_v33 = vpop.permute.xlu1 %679 }
 0xa47   : > { %v685_v34 = vadd.f32 %v680_v33, %v665_v32 }
 0xa48   : > { %v682_v37 = vpop.permute.xlu0 %681 }
 0xa49   : > { %1058 = vtanh.f32 %v685_v34  ;;  %v686_v38 = vadd.f32 %v682_v37, %v666_v35 }
 0xa4b   : > { %1060 = vtanh.f32 %v686_v38 }
 0xa53   : > { %v1059_v39 = vpop.eup %1058 }
 0xa54   : > { %691 = vrot.lane.b32.xlu1 %v1059_v39, %s1129_s8 }
 0xa55   : > { %v1061_v41 = vpop.eup %1060 }
 0xa56   : > { %693 = vrot.lane.b32.xlu0 %v1061_v41, %s1129_s8 }
 0xa58   : > { %325 = vrot.lane.b32.xlu1 %v1254_v40, %s1130_s9 }
 0xa5a   : > { %327 = vrot.lane.b32.xlu0 %v1250_v36, %s1130_s9 }
 0xa5c   : > { %452 = vrot.lane.b32.xlu1 %v1275_v15, %s1130_s9 }
 0xa5e   : > { %454 = vrot.lane.b32.xlu0 %v1277_v17, %s1130_s9 }
 0xa60   : > { %577 = vrot.lane.b32.xlu1 %v1296_v60, %s1130_s9 }
 0xa62   : > { %579 = vrot.lane.b32.xlu0 %v1298_v62, %s1130_s9 }
 0xac6   : > { %v692_v42 = vpop.permute.xlu1 %691 }
 0xac7   : > { %v697_v43 = vmul.f32 %v1055_v26, %v692_v42 }
 0xac8   : > { %v694_v46 = vpop.permute.xlu0 %693 }
 0xac9   : > { %703 = vrot.lane.b32.xlu1 %v697_v43, %s1130_s9  ;;  %v698_v49 = vmul.f32 %v1057_v29, %v694_v46  ;;  %v699_v40 = vadd.f32 %v697_v43, %v573_v47 }
 0xaca   : > { %v326_v50 = vpop.permute.xlu1 %325 }
 0xacb   : > { %333 = vst.msk [vmem:[%s331_s25] sm:$0x1] %vm332_vm3, %v326_v50  ;;  %v700_v15 = vadd.f32 %v698_v49, %v574_v48  ;;  %705 = vrot.lane.b32.xlu0 %v698_v49, %s1130_s9  ;;  %v719_v52 = vmul.f32 0.25, %v699_v40 }
 0xacc   : > { %v328_v36 = vpop.permute.xlu0 %327 }
 0xacd   : > { %v720_v17 = vmul.f32 0.25, %v700_v15  ;;  %334 = vst.msk [vmem:[%s331_s25 + $0x4] sm:$0x1] %vm332_vm3, %v328_v36  ;;  %s1066_s25 = sshll.u32 %s1131_s20, 4  ;;  %s1067_s25 = int_to_ptr.vmem [resolvable:$false] %s1066_s25 }
 0xace   : > { %v453_v51 = vpop.permute.xlu1 %452  ;;  %p1069_p0 = scmp.lt.s32.totalorder %s1362_s6, %s1067_s25 }
 0xacf   : > { %906 = vst.msk [vmem:[%s903_s26] sm:$0x1] %vm332_vm3, %v453_v51  ;;  %v723_v53 = vrot.slane %v720_v17, 7 }
 0xad0   : > { %v455_v54 = vpop.permute.xlu0 %454 }
 0xad1   : > { %907 = vst.msk [vmem:[%s903_s26 + $0x4] sm:$0x1] %vm332_vm3, %v455_v54  ;;  %v724_v56 = vsel %vm346_vm1, %v723_v53, %v719_v52  ;;  %s1068_s26 = scalar_lea.vmem %s1067_s25, 64 }
 0xad2   : > { %v578_v55 = vpop.permute.xlu1 %577  ;;  %725 = vrot.lane.b32.xlu1 %v724_v56, %s1130_s9  ;;  %p1070_p1 = scmp.lt.s32.totalorder %s1068_s26, %s1062_s19 }
 0xad3   : > { %584 = vst.msk [vmem:[%s583_s27] sm:$0x1] %vm332_vm3, %v578_v55 }
 0xad4   : > { %v580_v57 = vpop.permute.xlu0 %579  ;;  %p1071_p2 = por %p1070_p1, %p1069_p0 }
 0xad5   : > { %585 = vst.msk [vmem:[%s583_s27 + $0x4] sm:$0x1] %vm332_vm3, %v580_v57 }
 0xad6   : > { %p1072_p3 = pnand %p1071_p2, %p1065_p13 }
 0xb3b   : > { %v704_v58 = vpop.permute.xlu1 %703 }
 0xb3c   : > { %894 = vst.msk [vmem:[%s813_s30 + $0x3] sm:$0x1] %vm332_vm3, %v704_v58 }
 0xb3d   : > { %v706_v59 = vpop.permute.xlu0 %705 }
 0xb3e   : > { %895 = vst.msk [vmem:[%s813_s30 + $0x7] sm:$0x1] %vm332_vm3, %v706_v59 }
 0xb44   : > { %v726_v60 = vpop.permute.xlu1 %725 }
 0xb45   : > { %v712_v61 = vld [vmem:[#allocation2] sm:$0xf]  ;;  %v713_v62 = vld [vmem:[#allocation2 + $0x4] sm:$0xf]  ;;  %728 = vst.msk [vmem:[%s186_s5] sm:$0x3] %vm716_vm4, %v726_v60 }
 0xb46   : > { %v714_v63 = vpack.c.bf16 %v712_v61, %v712_v61  ;;  %v715_v0 = vpack.c.bf16 %v713_v62, %v713_v62 }
 0xb47   : > { %1075 = shalt.err (!%p1072_p3)
}
 0xb48   : > { %s1076_s27 = scalar_lea.hbm %s1360_s10, 32  ;;  %s1080_s30 = scalar_lea.hbm %s1415_s3, 64 }
 0xb49   : > { %p1077_p4 = scmp.ne.s32.totalorder %s1360_s10, %s1076_s27  ;;  %p1081_p9 = scmp.lt.u32.totalorder %s1360_s10, %s1415_s3 }
 0xb4a   : > { %p1082_p10 = scmp.lt.u32.totalorder %s1080_s30, %s1076_s27  ;;  %p1084_p12 = scmp.lt.u32.totalorder %s1076_s27, %s1360_s10 }
 0xb4b   : > { %p1078_p7 = pnand %p1077_p4, %p1190_p5 }
 0xb4c   : > { %p1083_p11 = por %p1082_p10, %p1081_p9 }
 0xb4d   : > { %p1079_p8 = pneg %p1078_p7 }
 0xb4e   : > { %p1085_p13 = por %p1084_p12, %p1083_p11 }
 0xb50   : > { %p1086_p0 = pnand %p1085_p13, %p1079_p8 }
 0xb52   : > { %1089 = shalt.err (!%p1086_p0)
}
 0xb53   : > { %952 = dma.vmem_to_hbm [thread:$0]  (%p1190_p5), %s1362_s6, 32, %s1360_s10, %s735_s24   ;;  %717 = vst.msk [vmem:[%s1367_s16] sm:$0x3] %vm716_vm4, %v714_v63  ;;  %718 = vst.msk [vmem:[%s1367_s16 + $0x2] sm:$0x3] %vm716_vm4, %v715_v0 }
 0xb54 PF: > { %p958_p1 = scmp.ge.s32.totalorder %s1124_s15, 2  ;;  %s771_s7 = sand.u32 1, %s1112_s12  }
 0xb55   : > { %s772_s8 = scalar_lea.sflag [#allocation4], %s771_s7 }
 0xb56   : > { %p955_p2 = pnand %p958_p1, %p1194_p6 }
 0xb58   : > { %1107 = dma.done.wait (!%p955_p2), %s772_s8, 32  }
 0xb59   : > { %1109 = vsyncadd (!%p955_p2), %s772_s8, 4294967264  ;;  %p14_p5 = scmp.ge.s32.totalorder %s1177_s18, 4   ;;  %s1418_s12 = smov %s1116_s13 }
 0xb5a   : > { %s1419_s13 = smov %s1120_s14  ;;  %s1420_s14 = smov %s1188_s21 }
 0xb5b   : > { %s1421_s15 = smov %s1177_s18  ;;  %16 = sbr.rel (!%p14_p5) target bundleno = 3 (0x3), region = 86 }
 0xb62   :  { %777 = vsyncpa [#allocation4], 1 }
 0xb63   :  { %779 = vsyncpa [#allocation4 + $0x1], 1 }

// kernel: cnn_lstm_forward.12
= control target key start
LH: loop header
LB: loop body
LE: loop exit
PB: predicated region body
PF: predicated region fallthrough
CT: control target
= control target key end

     0   :  { %v368_v0 = vmov 0.0   ;;  %vm369_vm0 = vmmov 0   ;;  %vm39_vm1 = vcmask 261120   ;;  %s446_s1 = inlined_call_operand.vmem [shape: bf16[2,2,32,128], index: 1, kind: input, shape index: {}]   ;;  %s447_s0 = inlined_call_operand.vmem [shape: bf16[2,8,32], index: 0, kind: input, shape index: {}]   ;;  %s448_s2 = inlined_call_operand.vmem [shape: f32[2,1,128], index: 2, kind: input, shape index: {}]   ;;  %s449_s3 = inlined_call_operand.vmem [shape: f32[2,8,128], index: 3, kind: output, shape index: {}]  }
   0x1   :  { %326 = vmatprep.subr.bf16.mxu0 %v368_v0  ;;  %334 = vmatprep.subr.bf16.mxu1 %v368_v0  ;;  %v360_v1 = vld [vmem:[%s446_s1 + $0x20] sm:$0xff]   ;;  %v362_v3 = vld [vmem:[%s446_s1 + $0x28] sm:$0xff]   ;;  %v364_v7 = vld [vmem:[%s446_s1 + $0x30] sm:$0xff]  }
   0x2   :  { %v361_v2 = vld [vmem:[%s446_s1] sm:$0xff]   ;;  %330 = vmatprep.mubr.msk.bf16.mxu0 %vm369_vm0, %v368_v0  ;;  %338 = vmatprep.mubr.msk.bf16.mxu1 %vm369_vm0, %v368_v0  ;;  %v363_v4 = vld [vmem:[%s446_s1 + $0x8] sm:$0xff]   ;;  %v365_v8 = vld [vmem:[%s446_s1 + $0x10] sm:$0xff]  }
   0x3   :  { %327 = vmatpush3.bf16.msra.mxu0 %v360_v1  ;;  %335 = vmatpush3.bf16.msra.mxu1 %v361_v2  ;;  %v284_v5 = vld [vmem:[%s447_s0 + $0x4] sm:$0xf]  ;;  %v15_v6 = vld [vmem:[%s447_s0] sm:$0xf]  ;;  %v366_v9 = vld [vmem:[%s446_s1 + $0x38] sm:$0xff]  }
   0x4   :  { %328 = vmatprep.subr.bf16.mxu0 %v368_v0  ;;  %336 = vmatprep.subr.bf16.mxu1 %v368_v0  ;;  %v367_v10 = vld [vmem:[%s446_s1 + $0x18] sm:$0xff]   ;;  %v300_v11 = vld [vmem:[%s447_s0 + $0x4] sm:$0xf]  ;;  %v147_v12 = vld [vmem:[%s447_s0] sm:$0xf] }
   0x5   :  { %v295_v15 = vld [vmem:[%s448_s2] ss:$0 sm:$0xff]  ;;  %v312_v26 = vld [vmem:[%s448_s2 + $0x1] ss:$0 sm:$0xff] }
   0x7   :  { %329 = vmatpush3.bf16.msra.mxu0 %v362_v3  ;;  %337 = vmatpush3.bf16.msra.mxu1 %v363_v4 }
   0x8   :  { %342 = vmatprep.subr.bf16.mxu0 %v368_v0  ;;  %350 = vmatprep.subr.bf16.mxu1 %v368_v0 }
   0xa   :  { %331 = vmatmul.mubr.msk.bf16.vlgmr.msra.gmra.mrb[0].mxu0 %vm39_vm1, %v284_v5  ;;  %339 = vmatmul.mubr.msk.bf16.vlgmr.msra.gmra.mrb[0].mxu1 %vm39_vm1, %v15_v6 }
   0xb   :  { %343 = vmatpush3.bf16.msra.mxu0 %v364_v7  ;;  %351 = vmatpush3.bf16.msra.mxu1 %v365_v8 }
   0xc   :  { %344 = vmatprep.subr.bf16.mxu0 %v368_v0  ;;  %352 = vmatprep.subr.bf16.mxu1 %v368_v0 }
   0xd   :  { %346 = vmatprep.mubr.msk.bf16.mxu0 %vm369_vm0, %v368_v0  ;;  %354 = vmatprep.mubr.msk.bf16.mxu1 %vm369_vm0, %v368_v0 }
   0xf   :  { %345 = vmatpush3.bf16.msra.mxu0 %v366_v9  ;;  %353 = vmatpush3.bf16.msra.mxu1 %v367_v10 }
  0x12   :  { %347 = vmatmul.mubr.msk.bf16.vlgmr.msra.gmra.mrb[4].mxu0 %vm39_vm1, %v300_v11  ;;  %355 = vmatmul.mubr.msk.bf16.vlgmr.msra.gmra.mrb[4].mxu1 %vm39_vm1, %v147_v12 }
  0xdd   :  { %v77_v13 = vpop.f32.mrb[0].mxu0  ;;  %v132_v14 = vpop.f32.mrb[0].mxu1 }
  0xde   :  { %v332_v16 = vpop.f32.mrb[1].mxu0  ;;  %v133_v17 = vadd.f32 %v132_v14, %v77_v13  ;;  %v340_v18 = vpop.f32.mrb[1].mxu1 }
  0xdf   :  { %v80_v19 = vpop.f32.mrb[2].mxu0  ;;  %v135_v20 = vpop.f32.mrb[2].mxu1 }
  0xe0   :  { %v333_v21 = vpop.f32.mrb[3].mxu0  ;;  %v145_v22 = vadd.f32 %v295_v15, %v133_v17  ;;  %v341_v23 = vpop.f32.mrb[3].mxu1 }
  0xe2   :  { %146 = vst [vmem:[%s449_s3] sm:$0xff] %v145_v22 }
  0xe5   :  { %v208_v24 = vpop.f32.mrb[4].mxu0  ;;  %v263_v25 = vpop.f32.mrb[4].mxu1 }
  0xe6   :  { %v348_v27 = vpop.f32.mrb[5].mxu0  ;;  %v264_v28 = vadd.f32 %v263_v25, %v208_v24  ;;  %v356_v29 = vpop.f32.mrb[5].mxu1 }
  0xe7   :  { %v211_v30 = vpop.f32.mrb[6].mxu0  ;;  %v266_v31 = vpop.f32.mrb[6].mxu1 }
  0xe8   :  { %v349_v32 = vpop.f32.mrb[7].mxu0  ;;  %v277_v33 = vadd.f32 %v312_v26, %v264_v28  ;;  %v357_v34 = vpop.f32.mrb[7].mxu1 }
  0xea   :  { %313 = vst [vmem:[%s449_s3 + $0x8] sm:$0xff] %v277_v33 }

// kernel: cnn_lstm_forward.13
= control target key start
LH: loop header
LB: loop body
LE: loop exit
PB: predicated region body
PF: predicated region fallthrough
CT: control target
= control target key end

     0   :  { %s893_s9 = smov 0   ;;  %s1021_s0 = inlined_call_operand.vmem [shape: f32[2,2,4,128], index: 0, kind: input, shape index: {}]   ;;  %s1022_s1 = inlined_call_operand.vmem [shape: bf16[2,32,128], index: 1, kind: input, shape index: {}]   ;;  %s1023_s2 = inlined_call_operand.vmem [shape: f32[2,2,32], index: 2, kind: output, shape index: {}]  }
   0x1 LB: > { %s899_s10 = sadd.s32 4294967295, %s871_s9   ;;  %p715_p0 = scmp.ge.s32.totalorder %s871_s9, 1  ;;  %s871_s9 = sphi %s893_s9, %s12_s9  }
   0x2   : > { %p122_p1 = scmp.lt.s32.totalorder %s871_s9, 3 }
   0x4   : > { %p123_p2 = pnand %p715_p0, %p122_p1 }
   0x5   : > { %p148_p3 = scmp.lt.s32.totalorder (!%p123_p2), %s899_s10, 1  ;;  %v873_v0 = vmov (!%p123_p2), 0.0   ;;  %vm874_vm0 = vmmov (!%p123_p2), 0   ;;  %v875_v3 = vmov (!%p123_p2), 0   ;;  %s167_s17 = smul.u32 (!%p123_p2), 3, %s899_s10  ;;  %vm294_vm1 = vcmask (!%p123_p2), 1041409  }
   0x6   : > { %126 = sbr.rel (%p123_p2) target bundleno = 2878 (0xb3e), region = 28  ;;  %754 = vmatprep.subr.bf16.mxu0 (!%p123_p2), %v873_v0  ;;  %758 = vmatprep.mubr.msk.bf16.mxu0 (!%p123_p2), %vm874_vm0, %v873_v0  ;;  %s876_s22 = smov (!%p123_p2), 64   ;;  %vm183_vm2 = vcmask (!%p123_p2), 261120   ;;  %vm636_vm3 = vcmask (!%p123_p2), 254976  }
   0x7   : > { %762 = vmatprep.subr.bf16.mxu1 (!%p123_p2), %v873_v0  ;;  %766 = vmatprep.mubr.msk.bf16.mxu1 (!%p123_p2), %vm874_vm0, %v873_v0  ;;  %s877_s23 = smov (!%p123_p2), 32   ;;  %s398_s25 = ssub.s32 (!%p123_p2), 2, %s899_s10 }
   0x8   : > { %s678_s27 = smul.u32 (!%p123_p2), 4294967293, %s899_s10 }
   0xd   : > { %s908_s11 = scalar_select %p148_p3, %s899_s10, 1 }
   0xf   : > { %s741_s12 = sshll.u32 %s908_s11, 4  ;;  %s740_s16 = sshll.u32 %s908_s11, 3 }
  0x10   : > { %s157_s15 = scalar_lea.vmem %s1022_s1, %s741_s12  ;;  %s939_s20 = scalar_lea.vmem %s1021_s0, %s740_s16 }
  0x11   : > { %v917_v1 = vld [vmem:[%s157_s15] sm:$0xff]   ;;  %v920_v2 = vld [vmem:[%s157_s15 + $0x8] sm:$0xff]   ;;  %s168_s21 = scalar_lea.vmem %s939_s20, %s167_s17  ;;  %s675_s24 = scalar_lea.vmem %s939_s20, %s899_s10 }
  0x12   : > { %755 = vmatpush3.bf16.msra.mxu0 %v917_v1  ;;  %763 = vmatpush3.bf16.msra.mxu1 %v917_v1  ;;  %v170_v4 = vld [vmem:[%s168_s21 + $0x4] sm:$0x1]  ;;  %v169_v9 = vld [vmem:[%s168_s21] sm:$0x1]  ;;  %v725_v47 = vld [vmem:[%s675_s24 + $0x1] sm:$0x1]  ;;  %s399_s26 = scalar_lea.vmem %s939_s20, %s398_s25  ;;  %s679_s28 = scalar_lea.vmem %s939_s20, %s678_s27 }
  0x13   : > { %756 = vmatprep.subr.bf16.mxu0 %v873_v0  ;;  %764 = vmatprep.subr.bf16.mxu1 %v873_v0  ;;  %v726_v48 = vld [vmem:[%s675_s24 + $0x5] sm:$0x1]  ;;  %s720_s29 = sshll.u32 %s908_s11, 1 }
  0x14   : > { %s161_s4 = scalar_lea.vmem %s1023_s2, %s720_s29 }
  0x16   : > { %757 = vmatpush3.bf16.msra.mxu0 %v920_v2  ;;  %765 = vmatpush3.bf16.msra.mxu1 %v920_v2 }
  0x17   : > { %770 = vmatprep.subr.bf16.mxu0 %v873_v0  ;;  %778 = vmatprep.subr.bf16.mxu1 %v873_v0 }
  0x19   : > { %759 = vmatmul.mubr.bf16.vlgmr.msra.gmra.mrb[0].mxu0 %v875_v3 }
  0x1a   : > { %771 = vmatpush3.bf16.msra.mxu0 %v917_v1  ;;  %774 = vmatprep.mubr.msk.bf16.mxu0 %vm874_vm0, %v873_v0 }
  0x1b   : > { %772 = vmatprep.subr.bf16.mxu0 %v873_v0 }
  0x1e   : > { %773 = vmatpush3.bf16.msra.mxu0 %v920_v2 }
  0xec   : > { %v221_v5 = vpop.f32.mrb[0].mxu0 }
  0xed   : > { %v228_v6 = vrot.slane %v221_v5, 1  ;;  %v760_v7 = vpop.f32.mrb[1].mxu0  ;;  %v231_v12 = vadd.f32 %v221_v5, %v169_v9 }
  0xee   : > { %v224_v8 = vpop.f32.mrb[2].mxu0 }
  0xef   : > { %v232_v10 = vadd.f32 %v228_v6, %v170_v4  ;;  %v761_v11 = vpop.f32.mrb[3].mxu0  ;;  %v723_v16 = vmul.f32 -1.442695, %v231_v12 }
  0xf1   : > { %801 = vtanh.f32 %v232_v10  ;;  %v724_v15 = vmul.f32 -1.442695, %v232_v10 }
  0xf2   : > { %803 = vtanh.f32 %v231_v12 }
  0xf3   : > { %805 = vpow2.f32 %v724_v15 }
  0xf4   : > { %807 = vpow2.f32 %v723_v16 }
  0xfb   : > { %v802_v13 = vpop.eup %801 }
  0xfc   : > { %253 = vrot.lane.b32.xlu0 %v802_v13, %s876_s22  ;;  %v804_v14 = vpop.eup %803 }
  0xfd   : > { %v806_v17 = vpop.eup %805 }
  0xfe   : > { %v240_v18 = vadd.f32 1.0, %v806_v17  ;;  %v808_v19 = vpop.eup %807 }
  0xff   : > { %v239_v20 = vadd.f32 1.0, %v808_v19 }
 0x100   : > { %251 = vrot.lane.b32.xlu0 %v804_v14, %s876_s22  ;;  %809 = vrcp.f32 %v240_v18 }
 0x101   : > { %811 = vrcp.f32 %v239_v20 }
 0x10a   : > { %v810_v21 = vpop.eup %809 }
 0x10b   : > { %v812_v24 = vpop.eup %811  ;;  %v248_v27 = vmul.f32 0.0, %v810_v21 }
 0x10c   : > { %v247_v30 = vmul.f32 0.0, %v812_v24 }
 0x16e   : > { %v254_v22 = vpop.permute.xlu0 %253 }
 0x16f   : > { %v258_v23 = vmul.f32 %v810_v21, %v254_v22 }
 0x171   : > { %263 = vrot.lane.b32.xlu1 %v258_v23, %s877_s23 }
 0x172   : > { %v252_v25 = vpop.permute.xlu0 %251 }
 0x173   : > { %v257_v26 = vmul.f32 %v812_v24, %v252_v25 }
 0x175   : > { %261 = vrot.lane.b32.xlu1 %v257_v26, %s877_s23  ;;  %v400_v26 = vld [vmem:[%s399_s26] sm:$0x1] }
 0x1e3   : > { %v264_v28 = vpop.permute.xlu1 %263 }
 0x1e4   : > { %v946_v29 = vadd.f32 %v264_v28, %v248_v27  ;;  %v401_v27 = vld [vmem:[%s399_s26 + $0x4] sm:$0x1] }
 0x1e6   : > { %813 = vtanh.f32 %v946_v29 }
 0x1e7   : > { %v262_v31 = vpop.permute.xlu1 %261 }
 0x1e8   : > { %v267_v32 = vadd.f32 %v262_v31, %v247_v30 }
 0x1ea   : > { %815 = vtanh.f32 %v267_v32 }
 0x1f0   : > { %v814_v33 = vpop.eup %813 }
 0x1f1   : > { %275 = vrot.lane.b32.xlu0 %v814_v33, %s876_s22 }
 0x1f4   : > { %v816_v34 = vpop.eup %815 }
 0x1f5   : > { %273 = vrot.lane.b32.xlu1 %v816_v34, %s876_s22 }
 0x263   : > { %v276_v35 = vpop.permute.xlu0 %275 }
 0x264   : > { %v951_v36 = vmul.f32 %v810_v21, %v276_v35 }
 0x266   : > { %v288_v37 = vpack.c.bf16 %v951_v36, %v951_v36 }
 0x267   : > { %v274_v38 = vpop.permute.xlu1 %273 }
 0x268   : > { %v292_v39 = vunpack.c.l.b16 %v288_v37  ;;  %v955_v40 = vmul.f32 %v812_v24, %v274_v38 }
 0x26a   : > { %v287_v41 = vpack.c.bf16 %v955_v40, %v955_v40  ;;  %v293_v42 = vrot.slane %v292_v39, 7 }
 0x26c   : > { %v291_v43 = vunpack.c.l.b16 %v287_v41 }
 0x26e   : > { %v295_v44 = vsel %vm294_vm1, %v293_v42, %v291_v43 }
 0x26f   : > { %v296_v45 = vpack.c.b16 %v295_v44, %v295_v44 }
 0x271   : > { %297 = vrot.lane.b32.xlu0 %v296_v45, %s877_s23 }
 0x2e3   : > { %v298_v46 = vpop.permute.xlu0 %297 }
 0x2e4   : > { %767 = vmatmul.mubr.msk.bf16.vlgmr.msra.gmra.mrb[0].mxu1 %vm183_vm2, %v298_v46 }
 0x2e5   : > { %779 = vmatpush3.bf16.msra.mxu1 %v917_v1  ;;  %782 = vmatprep.mubr.msk.bf16.mxu1 %vm874_vm0, %v873_v0 }
 0x2e6   : > { %780 = vmatprep.subr.bf16.mxu1 %v873_v0 }
 0x2e9   : > { %781 = vmatpush3.bf16.msra.mxu1 %v920_v2 }
 0x3b7   : > { %v336_v49 = vpop.f32.mrb[0].mxu1 }
 0x3b8   : > { %v343_v50 = vrot.slane %v336_v49, 1  ;;  %v346_v51 = vadd.f32 %v725_v47, %v336_v49  ;;  %v768_v52 = vpop.f32.mrb[1].mxu1 }
 0x3b9   : > { %v339_v53 = vpop.f32.mrb[2].mxu1 }
 0x3ba   : > { %v347_v54 = vadd.f32 %v726_v48, %v343_v50  ;;  %817 = vtanh.f32 %v346_v51  ;;  %v769_v55 = vpop.f32.mrb[3].mxu1  ;;  %v728_v58 = vmul.f32 -1.442695, %v346_v51 }
 0x3bc   : > { %819 = vtanh.f32 %v347_v54  ;;  %v729_v59 = vmul.f32 -1.442695, %v347_v54 }
 0x3bd   : > { %821 = vpow2.f32 %v728_v58 }
 0x3be   : > { %823 = vpow2.f32 %v729_v59 }
 0x3c4   : > { %v818_v56 = vpop.eup %817 }
 0x3c5   : > { %366 = vrot.lane.b32.xlu0 %v818_v56, %s876_s22 }
 0x3c6   : > { %v820_v57 = vpop.eup %819 }
 0x3c7   : > { %368 = vrot.lane.b32.xlu1 %v820_v57, %s876_s22  ;;  %v822_v60 = vpop.eup %821 }
 0x3c8   : > { %v824_v61 = vpop.eup %823  ;;  %v354_v62 = vadd.f32 1.0, %v822_v60 }
 0x3c9   : > { %v355_v63 = vadd.f32 1.0, %v824_v61 }
 0x3ca   : > { %825 = vrcp.f32 %v354_v62 }
 0x3cb   : > { %827 = vrcp.f32 %v355_v63 }
 0x3d4   : > { %v826_v0 = vpop.eup %825 }
 0x3d5   : > { %v828_v3 = vpop.eup %827  ;;  %v362_v6 = vmul.f32 %v826_v0, %v267_v32 }
 0x3d6   : > { %v363_v9 = vmul.f32 %v828_v3, %v946_v29 }
 0x437   : > { %v367_v1 = vpop.permute.xlu0 %366 }
 0x438   : > { %v372_v2 = vmul.f32 %v826_v0, %v367_v1 }
 0x439   : > { %v369_v4 = vpop.permute.xlu1 %368 }
 0x43a   : > { %376 = vrot.lane.b32.xlu0 %v372_v2, %s877_s23  ;;  %v373_v5 = vmul.f32 %v828_v3, %v369_v4 }
 0x43c   : > { %378 = vrot.lane.b32.xlu1 %v373_v5, %s877_s23 }
 0x4ac   : > { %v377_v7 = vpop.permute.xlu0 %376 }
 0x4ad   : > { %v382_v8 = vadd.f32 %v377_v7, %v362_v6 }
 0x4ae   : > { %v379_v10 = vpop.permute.xlu1 %378 }
 0x4af   : > { %829 = vtanh.f32 %v382_v8  ;;  %v383_v11 = vadd.f32 %v379_v10, %v363_v9  ;;  %v733_v10 = vld [vmem:[%s679_s28 + $0x3] sm:$0x1] }
 0x4b1   : > { %831 = vtanh.f32 %v383_v11 }
 0x4b9   : > { %v830_v12 = vpop.eup %829 }
 0x4ba   : > { %388 = vrot.lane.b32.xlu0 %v830_v12, %s876_s22 }
 0x4bb   : > { %v832_v13 = vpop.eup %831 }
 0x4bc   : > { %390 = vrot.lane.b32.xlu1 %v832_v13, %s876_s22 }
 0x52c   : > { %v389_v14 = vpop.permute.xlu0 %388 }
 0x52d   : > { %v394_v15 = vmul.f32 %v826_v0, %v389_v14 }
 0x52e   : > { %v391_v16 = vpop.permute.xlu1 %390 }
 0x52f   : > { %v976_v17 = vmul.f32 %v828_v3, %v391_v16  ;;  %v402_v18 = vpack.c.bf16 %v394_v15, %v394_v15  ;;  %v396_v60 = vadd.f32 %v394_v15, %v955_v40 }
 0x531   : > { %v403_v19 = vpack.c.bf16 %v976_v17, %v976_v17  ;;  %v406_v21 = vunpack.c.l.b16 %v402_v18  ;;  %v397_v0 = vadd.f32 %v976_v17, %v951_v36 }
 0x533   : > { %v407_v20 = vunpack.c.l.b16 %v403_v19 }
 0x535   : > { %v408_v22 = vrot.slane %v407_v20, 7 }
 0x537   : > { %v409_v23 = vsel %vm294_vm1, %v408_v22, %v406_v21 }
 0x538   : > { %v410_v24 = vpack.c.b16 %v409_v23, %v409_v23 }
 0x53a   : > { %411 = vrot.lane.b32.xlu1 %v410_v24, %s877_s23 }
 0x5ac   : > { %v412_v25 = vpop.permute.xlu1 %411 }
 0x5ad   : > { %775 = vmatmul.mubr.msk.bf16.vlgmr.msra.gmra.mrb[4].mxu0 %vm183_vm2, %v412_v25 }
 0x680   : > { %v450_v28 = vpop.f32.mrb[4].mxu0 }
 0x681   : > { %v457_v29 = vrot.slane %v450_v28, 1  ;;  %v460_v30 = vadd.f32 %v450_v28, %v400_v26  ;;  %v776_v31 = vpop.f32.mrb[5].mxu0 }
 0x682   : > { %v453_v32 = vpop.f32.mrb[6].mxu0 }
 0x683   : > { %v461_v33 = vadd.f32 %v457_v29, %v401_v27  ;;  %833 = vtanh.f32 %v460_v30  ;;  %v777_v34 = vpop.f32.mrb[7].mxu0  ;;  %v731_v38 = vmul.f32 -1.442695, %v460_v30 }
 0x685   : > { %835 = vtanh.f32 %v461_v33  ;;  %v732_v39 = vmul.f32 -1.442695, %v461_v33 }
 0x686   : > { %837 = vpow2.f32 %v731_v38 }
 0x687   : > { %839 = vpow2.f32 %v732_v39 }
 0x68d   : > { %v834_v35 = vpop.eup %833 }
 0x68e   : > { %480 = vrot.lane.b32.xlu1 %v834_v35, %s876_s22 }
 0x68f   : > { %v836_v37 = vpop.eup %835 }
 0x690   : > { %482 = vrot.lane.b32.xlu0 %v836_v37, %s876_s22  ;;  %v838_v41 = vpop.eup %837 }
 0x691   : > { %v840_v42 = vpop.eup %839  ;;  %v468_v43 = vadd.f32 1.0, %v838_v41 }
 0x692   : > { %v469_v44 = vadd.f32 1.0, %v840_v42 }
 0x693   : > { %841 = vrcp.f32 %v468_v43 }
 0x694   : > { %843 = vrcp.f32 %v469_v44 }
 0x69d   : > { %v842_v45 = vpop.eup %841 }
 0x69e   : > { %v844_v48 = vpop.eup %843  ;;  %v476_v51 = vmul.f32 %v842_v45, %v382_v8 }
 0x69f   : > { %v477_v54 = vmul.f32 %v844_v48, %v383_v11  ;;  %v734_v11 = vld [vmem:[%s679_s28 + $0x7] sm:$0x1] }
 0x700   : > { %v481_v46 = vpop.permute.xlu1 %480 }
 0x701   : > { %v486_v47 = vmul.f32 %v842_v45, %v481_v46 }
 0x702   : > { %v483_v49 = vpop.permute.xlu0 %482 }
 0x703   : > { %490 = vrot.lane.b32.xlu1 %v486_v47, %s877_s23  ;;  %v487_v50 = vmul.f32 %v844_v48, %v483_v49 }
 0x705   : > { %492 = vrot.lane.b32.xlu0 %v487_v50, %s877_s23 }
 0x775   : > { %v491_v52 = vpop.permute.xlu1 %490 }
 0x776   : > { %v989_v53 = vadd.f32 %v491_v52, %v476_v51 }
 0x777   : > { %v493_v55 = vpop.permute.xlu0 %492 }
 0x778   : > { %845 = vtanh.f32 %v989_v53  ;;  %v497_v56 = vadd.f32 %v493_v55, %v477_v54 }
 0x77a   : > { %847 = vtanh.f32 %v497_v56 }
 0x782   : > { %v846_v57 = vpop.eup %845 }
 0x783   : > { %502 = vrot.lane.b32.xlu1 %v846_v57, %s876_s22 }
 0x784   : > { %v848_v58 = vpop.eup %847 }
 0x785   : > { %504 = vrot.lane.b32.xlu0 %v848_v58, %s876_s22 }
 0x7f5   : > { %v503_v59 = vpop.permute.xlu1 %502 }
 0x7f6   : > { %v508_v61 = vmul.f32 %v842_v45, %v503_v59 }
 0x7f7   : > { %v505_v63 = vpop.permute.xlu0 %504 }
 0x7f8   : > { %v995_v62 = vadd.f32 %v508_v61, %v396_v60  ;;  %v509_v1 = vmul.f32 %v844_v48, %v505_v63  ;;  %v517_v2 = vpack.c.bf16 %v508_v61, %v508_v61 }
 0x7fa   : > { %v511_v3 = vadd.f32 %v509_v1, %v397_v0  ;;  %v518_v4 = vpack.c.bf16 %v509_v1, %v509_v1  ;;  %v521_v6 = vunpack.c.l.b16 %v517_v2 }
 0x7fc   : > { %v522_v5 = vunpack.c.l.b16 %v518_v4 }
 0x7fe   : > { %v523_v7 = vrot.slane %v522_v5, 7 }
 0x800   : > { %v524_v8 = vsel %vm294_vm1, %v523_v7, %v521_v6 }
 0x801   : > { %v525_v9 = vpack.c.b16 %v524_v8, %v524_v8 }
 0x803   : > { %526 = vrot.lane.b32.xlu0 %v525_v9, %s877_s23 }
 0x875   : > { %v527_v40 = vpop.permute.xlu0 %526 }
 0x876   : > { %783 = vmatmul.mubr.msk.bf16.vlgmr.msra.gmra.mrb[4].mxu1 %vm183_vm2, %v527_v40 }
 0x949   : > { %v565_v36 = vpop.f32.mrb[4].mxu1 }
 0x94a   : > { %v572_v12 = vrot.slane %v565_v36, 1  ;;  %v575_v13 = vadd.f32 %v733_v10, %v565_v36  ;;  %v784_v14 = vpop.f32.mrb[5].mxu1 }
 0x94b   : > { %v568_v15 = vpop.f32.mrb[6].mxu1 }
 0x94c   : > { %v576_v16 = vadd.f32 %v734_v11, %v572_v12  ;;  %849 = vtanh.f32 %v575_v13  ;;  %v785_v17 = vpop.f32.mrb[7].mxu1  ;;  %v736_v20 = vmul.f32 -1.442695, %v575_v13 }
 0x94e   : > { %851 = vtanh.f32 %v576_v16  ;;  %v737_v21 = vmul.f32 -1.442695, %v576_v16 }
 0x94f   : > { %853 = vpow2.f32 %v736_v20 }
 0x950   : > { %855 = vpow2.f32 %v737_v21 }
 0x956   : > { %v850_v18 = vpop.eup %849 }
 0x957   : > { %595 = vrot.lane.b32.xlu0 %v850_v18, %s876_s22 }
 0x958   : > { %v852_v19 = vpop.eup %851 }
 0x959   : > { %597 = vrot.lane.b32.xlu1 %v852_v19, %s876_s22  ;;  %v854_v22 = vpop.eup %853 }
 0x95a   : > { %v856_v23 = vpop.eup %855  ;;  %v583_v24 = vadd.f32 1.0, %v854_v22 }
 0x95b   : > { %v584_v25 = vadd.f32 1.0, %v856_v23 }
 0x95c   : > { %857 = vrcp.f32 %v583_v24 }
 0x95d   : > { %859 = vrcp.f32 %v584_v25 }
 0x966   : > { %v858_v26 = vpop.eup %857 }
 0x967   : > { %v860_v29 = vpop.eup %859  ;;  %v591_v32 = vmul.f32 %v858_v26, %v989_v53 }
 0x968   : > { %v592_v35 = vmul.f32 %v860_v29, %v497_v56 }
 0x9c9   : > { %v596_v27 = vpop.permute.xlu0 %595 }
 0x9ca   : > { %v601_v28 = vmul.f32 %v858_v26, %v596_v27 }
 0x9cb   : > { %v598_v30 = vpop.permute.xlu1 %597 }
 0x9cc   : > { %605 = vrot.lane.b32.xlu0 %v601_v28, %s877_s23  ;;  %v602_v31 = vmul.f32 %v860_v29, %v598_v30 }
 0x9ce   : > { %607 = vrot.lane.b32.xlu1 %v602_v31, %s877_s23 }
 0xa3e   : > { %v606_v33 = vpop.permute.xlu0 %605 }
 0xa3f   : > { %v611_v34 = vadd.f32 %v606_v33, %v591_v32 }
 0xa40   : > { %v608_v37 = vpop.permute.xlu1 %607 }
 0xa41   : > { %861 = vtanh.f32 %v611_v34  ;;  %v612_v38 = vadd.f32 %v608_v37, %v592_v35 }
 0xa43   : > { %863 = vtanh.f32 %v612_v38 }
 0xa4b   : > { %v862_v39 = vpop.eup %861 }
 0xa4c   : > { %617 = vrot.lane.b32.xlu0 %v862_v39, %s876_s22 }
 0xa4d   : > { %v864_v41 = vpop.eup %863 }
 0xa4e   : > { %619 = vrot.lane.b32.xlu1 %v864_v41, %s876_s22 }
 0xabe   : > { %v618_v42 = vpop.permute.xlu0 %617 }
 0xabf   : > { %v623_v43 = vmul.f32 %v858_v26, %v618_v42 }
 0xac0   : > { %v620_v44 = vpop.permute.xlu1 %619 }
 0xac1   : > { %v624_v45 = vmul.f32 %v860_v29, %v620_v44  ;;  %v625_v46 = vadd.f32 %v623_v43, %v995_v62 }
 0xac3   : > { %v626_v47 = vadd.f32 %v624_v45, %v511_v3  ;;  %v627_v49 = vmul.f32 0.25, %v625_v46 }
 0xac5   : > { %v628_v48 = vmul.f32 0.25, %v626_v47 }
 0xac7   : > { %v631_v50 = vrot.slane %v628_v48, 7 }
 0xac9   : > { %v632_v51 = vsel %vm294_vm1, %v631_v50, %v627_v49 }
 0xaca   : > { %633 = vrot.lane.b32.xlu1 %v632_v51, %s877_s23 }
 0xb3c   : > { %v634_v52 = vpop.permute.xlu1 %633 }
 0xb3d   : > { %637 = vst.msk [vmem:[%s161_s4] sm:$0x3] %vm636_vm3, %v634_v52 }
 0xb3e PF: > { %s12_s9 = sadd.s32 1, %s871_s9  }
 0xb3f   : > { %p9_p4 = scmp.ge.s32.totalorder %s12_s9, 4  }
 0xb41   :  { %11 = sbr.rel (!%p9_p4) target bundleno = 1 (0x1), region = 65 }

</bundles_post_ra>
